<compile_context>
chip_gen: v7x
topology: tpu7x:2x2x1
jax: 0.10.0
libtpu: 0.0.40
codegen_flags: <defaults>
</compile_context>

<pallas_src>
import functools

import jax
import jax.numpy as jnp
from jax import lax
from jax.experimental import pallas as pl
from jax.experimental.pallas import tpu as pltpu


def _round_up(x, m):
    return (x + m - 1) // m * m


def _sigmoid1(x):
    # sigmoid(x) = 0.5 * (1 + tanh(0.5 x)): single EUP transcendental per gate.
    return 0.5 * (jnp.tanh(0.5 * x) + 1.0)


# ----------------------------- fused model kernel ------------------------------
def _fused_lstm_kernel(*refs, n_layers, T, B, Hp):
    """Whole forward pass: n_layers stacked LSTM layers + Linear(·,1) + Sigmoid.

    refs layout (all VMEM):
      inputs : x (T*B, F) bf16,
               [w_ih_t (Din_l, 4Hp) bf16, w_hh_t (Hp, 4Hp) bf16, bias (1, 4Hp) f32] * n_layers,
               w_cls (1, Hp) f32, b_cls (1, 1) f32
      outputs: out (B, 1) f32
      scratch: gx ping-pong buffers (T*B, 4Hp) f32  (1 buffer if n_layers == 1, else 2)
    """
    x_ref = refs[0]
    layer_refs = [refs[1 + 3 * l: 4 + 3 * l] for l in range(n_layers)]
    rest = refs[1 + 3 * n_layers:]
    w_cls_ref, b_cls_ref, out_ref = rest[0], rest[1], rest[2]
    gx_refs = list(rest[3:])  # ping-pong gate-preactivation buffers

    # Layer 0 input projection hoisted out of the recurrence: one M = T*B matmul
    # (bias folded in). Later layers get their projection fused into the previous
    # layer's time loop (off the serial dependence chain).
    w_ih0_ref, _, b0_ref = layer_refs[0]
    gx_refs[0][...] = (
        jnp.dot(x_ref[...], w_ih0_ref[...], preferred_element_type=jnp.float32)
        + b0_ref[...]
    )

    h_last = None
    for l in range(n_layers):
        _, w_hh_ref, _ = layer_refs[l]
        is_last = l == n_layers - 1
        gx_cur = gx_refs[l % len(gx_refs)]
        if is_last:
            gx_next = w_ih_next_ref = b_next_ref = None
        else:
            gx_next = gx_refs[(l + 1) % len(gx_refs)]
            w_ih_next_ref, _, b_next_ref = layer_refs[l + 1]

        def step(t, carry):
            # NOTE: closure over this iteration's refs is safe (traced immediately below).
            h, c = carry
            row = pl.multiple_of(t * B, B)  # sublane-aligned dynamic slice
            # Recurrent weight is read from VMEM inside the loop (not hoisted as a value):
            # keeps it out of the vreg file across the unrolled steps.
            gates = gx_cur[pl.ds(row, B), :] + jnp.dot(
                h.astype(jnp.bfloat16), w_hh_ref[...],
                preferred_element_type=jnp.float32,
            )  # (B, 4Hp) f32
            # Each gate occupies its own 128-lane block -> vreg-aligned slices.
            i_g = _sigmoid1(gates[:, 0 * Hp:1 * Hp])
            f_g = _sigmoid1(gates[:, 1 * Hp:2 * Hp])
            g_g = jnp.tanh(gates[:, 2 * Hp:3 * Hp])
            o_g = _sigmoid1(gates[:, 3 * Hp:4 * Hp])
            c_new = f_g * c + i_g * g_g
            h_new = o_g * jnp.tanh(c_new)
            if not is_last:
                # Next layer's input projection, fused here so the MXU does it in the idle
                # time between serially-dependent h @ W_hh matmuls.
                gx_next[pl.ds(row, B), :] = (
                    jnp.dot(h_new.astype(jnp.bfloat16), w_ih_next_ref[...],
                            preferred_element_type=jnp.float32)
                    + b_next_ref[...]
                )
            return h_new, c_new

        h0 = jnp.zeros((B, Hp), jnp.float32)
        c0 = jnp.zeros((B, Hp), jnp.float32)
        h_last, _ = lax.fori_loop(0, T, step, (h0, c0), unroll=True)

    # Classifier on the last layer's final hidden state:
    # VPU multiply + lane reduction instead of an N=1 MXU matmul.
    logits = jnp.sum(h_last * w_cls_ref[...], axis=-1, keepdims=True) + b_cls_ref[...]
    out_ref[...] = jax.nn.sigmoid(logits)
    # TODO(synk): for even lower per-step weight traffic, hold W_hh in the MXU across the
    # unrolled steps with pltpu.matmul_push_rhs / matmul_acc_lhs / matmul_pop.


# --------------------------------- wrapper -------------------------------------
def lstm_classifier_forward(x, kparams):
    """x: (B, T, F) float32 -> sigmoid(Linear(h_T of last layer)), shape (B, 1)."""
    B, T, F = x.shape
    Hp = kparams["Hp"]
    n_layers = len(kparams["layers"])

    # Time-major + flattened so layer 0's input projection is one big matmul.
    x_tm = jnp.transpose(x, (1, 0, 2)).reshape(T * B, F).astype(jnp.bfloat16)

    flat = [x_tm]
    for (w_ih_t, w_hh_t, bias) in kparams["layers"]:
        flat += [w_ih_t, w_hh_t, bias]
    flat += [kparams["w_cls_t"], kparams["b_cls"]]

    num_gx = 2 if n_layers > 1 else 1
    scratch = [pltpu.VMEM((T * B, 4 * Hp), jnp.float32) for _ in range(num_gx)]

    # Explicit VMEM budget (inputs + output + gate scratch, 2x headroom), capped at 64 MiB so
    # the same kernel remains legal on v7x's smaller physical VMEM.
    in_bytes = sum(int(a.size) * a.dtype.itemsize for a in flat)
    scratch_bytes = num_gx * T * B * 4 * Hp * 4 + B * 4
    vmem_limit = int(min(max(2 * (in_bytes + scratch_bytes) + (1 << 20), 16 << 20), 64 << 20))

    vmem = pl.BlockSpec(memory_space=pltpu.MemorySpace.VMEM)
    kernel = functools.partial(_fused_lstm_kernel, n_layers=n_layers, T=T, B=B, Hp=Hp)
    # TODO(synk): for long sequences chunk the time axis (grid / pltpu.emit_pipeline) so only a
    # T-slice of the gate scratch is resident, and for large batches add a leading parallel
    # batch-chunk grid axis (keeps weights VMEM-resident across steps, uses both v7x
    # TensorCores); at B=8, T=8 the recurrence is latency-bound and neither pays off.
    return pl.pallas_call(
        kernel,
        out_shape=jax.ShapeDtypeStruct((B, 1), jnp.float32),
        in_specs=[vmem] * len(flat),
        out_specs=vmem,
        scratch_shapes=scratch,
        compiler_params=pltpu.CompilerParams(vmem_limit_bytes=vmem_limit),
    )(*flat)


# --------------------------- parameters & reference ----------------------------
def init_params(key, n_features, hidden_dim, layer_dim):
    """PyTorch-layout LSTM/Linear parameters (unpadded f32; used by the pure-JAX reference)."""
    scale = 1.0 / float(hidden_dim) ** 0.5
    layers = []
    for l in range(layer_dim):
        din = n_features if l == 0 else hidden_dim
        key, k1, k2, k3, k4 = jax.random.split(key, 5)
        w_ih = jax.random.uniform(k1, (4 * hidden_dim, din), jnp.float32, -scale, scale)
        w_hh = jax.random.uniform(k2, (4 * hidden_dim, hidden_dim), jnp.float32, -scale, scale)
        b_ih = jax.random.uniform(k3, (4 * hidden_dim,), jnp.float32, -scale, scale)
        b_hh = jax.random.uniform(k4, (4 * hidden_dim,), jnp.float32, -scale, scale)
        layers.append((w_ih, w_hh, b_ih, b_hh))
    key, kc1, kc2 = jax.random.split(key, 3)
    w_fc = jax.random.uniform(kc1, (1, hidden_dim), jnp.float32, -scale, scale)
    b_fc = jax.random.uniform(kc2, (1,), jnp.float32, -scale, scale)
    return {"layers": layers, "w_fc": w_fc, "b_fc": b_fc, "hidden_dim": hidden_dim}


def prepare_kernel_params(params):
    """Transpose + zero-pad weights into the kernel layout (gate-per-128-lane-block).

    Matmul weights are cast to bf16 (MXU-native input dtype); biases / classifier stay f32.
    Padded rows/cols/lanes are exactly zero, so padded h/c lanes stay zero in the recurrence.
    """
    H = params["hidden_dim"]
    Hp = _round_up(H, 128)
    k_layers = []
    for idx, (w_ih, w_hh, b_ih, b_hh) in enumerate(params["layers"]):
        din = w_ih.shape[1]
        din_pad = din if idx == 0 else Hp          # layers >= 1 consume the Hp-wide hidden state
        w_ih_t = jnp.zeros((din_pad, 4 * Hp), jnp.float32)
        w_hh_t = jnp.zeros((Hp, 4 * Hp), jnp.float32)
        bias = jnp.zeros((1, 4 * Hp), jnp.float32)
        b_sum = b_ih + b_hh
        for g in range(4):                          # PyTorch gate order: i, f, g, o
            w_ih_t = w_ih_t.at[:din, g * Hp:g * Hp + H].set(w_ih[g * H:(g + 1) * H, :].T)
            w_hh_t = w_hh_t.at[:H, g * Hp:g * Hp + H].set(w_hh[g * H:(g + 1) * H, :].T)
            bias = bias.at[0, g * Hp:g * Hp + H].set(b_sum[g * H:(g + 1) * H])
        k_layers.append(
            (w_ih_t.astype(jnp.bfloat16), w_hh_t.astype(jnp.bfloat16), bias)
        )
    w_cls_t = jnp.zeros((1, Hp), jnp.float32).at[0, :H].set(params["w_fc"][0])
    b_cls = params["b_fc"].reshape(1, 1)
    return {"layers": k_layers, "w_cls_t": w_cls_t, "b_cls": b_cls, "Hp": Hp, "H": H}


def reference_forward(x, params):
    """Pure-JAX f32 reference matching torch.nn.LSTM(batch_first=True) + Linear + Sigmoid."""
    B, T, _ = x.shape
    H = params["hidden_dim"]
    layer_in = x.astype(jnp.float32)
    h = None
    for (w_ih, w_hh, b_ih, b_hh) in params["layers"]:
        h = jnp.zeros((B, H), jnp.float32)
        c = jnp.zeros((B, H), jnp.float32)
        outs = []
        for t in range(T):
            g = layer_in[:, t, :] @ w_ih.T + h @ w_hh.T + b_ih + b_hh
            i_g = jax.nn.sigmoid(g[:, 0 * H:1 * H])
            f_g = jax.nn.sigmoid(g[:, 1 * H:2 * H])
            g_g = jnp.tanh(g[:, 2 * H:3 * H])
            o_g = jax.nn.sigmoid(g[:, 3 * H:4 * H])
            c = f_g * c + i_g * g_g
            h = o_g * jnp.tanh(c)
            outs.append(h)
        layer_in = jnp.stack(outs, axis=1)
    logits = h @ params["w_fc"].T + params["b_fc"]
    return jax.nn.sigmoid(logits)


if __name__ == "__main__":
    # Small shapes consistent with the module: (batch, seq, n_features); hidden_dim=48, layer_dim=2.
    batch, seq, n_features = 8, 8, 16
    hidden_dim, layer_dim = 48, 2

    key = jax.random.PRNGKey(0)
    key, kx = jax.random.split(key)
    x = jax.random.normal(kx, (batch, seq, n_features), dtype=jnp.float32)

    params = init_params(key, n_features, hidden_dim, layer_dim)
    kparams = prepare_kernel_params(params)

    out = jax.block_until_ready(lstm_classifier_forward(x, kparams))
    assert out.shape == (batch, 1)
    assert bool(jnp.all(jnp.isfinite(out)))

    ref = jax.block_until_ready(reference_forward(x, params))
    max_err = float(jnp.max(jnp.abs(out - ref)))
    # Tolerance is loose on purpose: matmul operands are bf16 (MXU-native); reference is f32.
    assert max_err < 2e-2, f"kernel/reference mismatch: {max_err}"

    print("KERNEL_OK")
</pallas_src>

<mosaic_0001>
module attributes {stable_mosaic.version = 11 : i64} {
  func.func @_fused_lstm_kernel(%arg0: memref<64x16xbf16, #tpu.memory_space<vmem>>, %arg1: memref<16x512xbf16, #tpu.memory_space<vmem>>, %arg2: memref<128x512xbf16, #tpu.memory_space<vmem>>, %arg3: memref<1x512xf32, #tpu.memory_space<vmem>>, %arg4: memref<128x512xbf16, #tpu.memory_space<vmem>>, %arg5: memref<128x512xbf16, #tpu.memory_space<vmem>>, %arg6: memref<1x512xf32, #tpu.memory_space<vmem>>, %arg7: memref<1x128xf32, #tpu.memory_space<vmem>>, %arg8: memref<1x1xf32, #tpu.memory_space<vmem>>, %arg9: memref<8x1xf32, #tpu.memory_space<vmem>>, %arg10: memref<64x512xf32, #tpu.memory_space<vmem>>, %arg11: memref<64x512xf32, #tpu.memory_space<vmem>>) attributes {dimension_semantics = [], scalar_prefetch = 0 : i64, scratch_operands = 2 : i64, tpu.core_type = #tpu.core_type<tc>} {
    %c0 = arith.constant 0 : index
    %c0_0 = arith.constant 0 : index
    %0 = vector.load %arg0[%c0, %c0_0] : memref<64x16xbf16, #tpu.memory_space<vmem>>, vector<64x16xbf16>
    %c0_1 = arith.constant 0 : index
    %c0_2 = arith.constant 0 : index
    %1 = vector.load %arg1[%c0_1, %c0_2] : memref<16x512xbf16, #tpu.memory_space<vmem>>, vector<16x512xbf16>
    %cst = arith.constant dense<0.000000e+00> : vector<64x512xf32>
    %2 = tpu.matmul %0, %1, %cst {dimension_numbers = #tpu.dot_dimension_numbers<[1], [0], [0], [1], [0, 0, 1, 1], [], []>} : vector<64x16xbf16>, vector<16x512xbf16>, vector<64x512xf32> -> vector<64x512xf32>
    %c0_3 = arith.constant 0 : index
    %c0_4 = arith.constant 0 : index
    %3 = vector.load %arg3[%c0_3, %c0_4] : memref<1x512xf32, #tpu.memory_space<vmem>>, vector<1x512xf32>
    %4 = vector.broadcast %3 : vector<1x512xf32> to vector<64x512xf32>
    %5 = arith.addf %2, %4 : vector<64x512xf32>
    %c0_5 = arith.constant 0 : index
    %c0_6 = arith.constant 0 : index
    %6 = vector.load %arg10[%c0_5, %c0_6] : memref<64x512xf32, #tpu.memory_space<vmem>>, vector<64x512xf32>
    tpu.vector_store %arg10[%c0_5, %c0_6], %5 {strides = array<i32>} : memref<64x512xf32, #tpu.memory_space<vmem>>, vector<64x512xf32>,
    %cst_7 = arith.constant 0.000000e+00 : f32
    %7 = vector.broadcast %cst_7 : f32 to vector<8x128xf32>
    %cst_8 = arith.constant 0.000000e+00 : f32
    %8 = vector.broadcast %cst_8 : f32 to vector<8x128xf32>
    %c0_i32 = arith.constant 0 : i32
    %c8_i32 = arith.constant 8 : i32
    %9 = arith.muli %c0_i32, %c8_i32 : i32
    %10 = tpu.assume_multiple %9, 8 : i32
    %11 = arith.index_cast %10 : i32 to index
    %c0_9 = arith.constant 0 : index
    %12 = vector.load %arg10[%11, %c0_9] : memref<64x512xf32, #tpu.memory_space<vmem>>, vector<8x512xf32>
    %13 = arith.truncf %7 : vector<8x128xf32> to vector<8x128xbf16>
    %c0_10 = arith.constant 0 : index
    %c0_11 = arith.constant 0 : index
    %14 = vector.load %arg2[%c0_10, %c0_11] : memref<128x512xbf16, #tpu.memory_space<vmem>>, vector<128x512xbf16>
    %cst_12 = arith.constant dense<0.000000e+00> : vector<8x512xf32>
    %15 = tpu.matmul %13, %14, %cst_12 {dimension_numbers = #tpu.dot_dimension_numbers<[1], [0], [0], [1], [0, 0, 1, 1], [], []>} : vector<8x128xbf16>, vector<128x512xbf16>, vector<8x512xf32> -> vector<8x512xf32>
    %16 = arith.addf %12, %15 : vector<8x512xf32>
    %17 = vector.extract_strided_slice %16 {offsets = [0, 0], sizes = [8, 128], strides = [1, 1]} : vector<8x512xf32> to vector<8x128xf32>
    %cst_13 = arith.constant 5.000000e-01 : f32
    %18 = vector.broadcast %cst_13 : f32 to vector<8x128xf32>
    %19 = arith.mulf %18, %17 : vector<8x128xf32>
    %20 = math.tanh %19 : vector<8x128xf32>
    %cst_14 = arith.constant 1.000000e+00 : f32
    %21 = vector.broadcast %cst_14 : f32 to vector<8x128xf32>
    %22 = arith.addf %20, %21 : vector<8x128xf32>
    %cst_15 = arith.constant 5.000000e-01 : f32
    %23 = vector.broadcast %cst_15 : f32 to vector<8x128xf32>
    %24 = arith.mulf %23, %22 : vector<8x128xf32>
    %25 = vector.extract_strided_slice %16 {offsets = [0, 128], sizes = [8, 128], strides = [1, 1]} : vector<8x512xf32> to vector<8x128xf32>
    %cst_16 = arith.constant 5.000000e-01 : f32
    %26 = vector.broadcast %cst_16 : f32 to vector<8x128xf32>
    %27 = arith.mulf %26, %25 : vector<8x128xf32>
    %28 = math.tanh %27 : vector<8x128xf32>
    %cst_17 = arith.constant 1.000000e+00 : f32
    %29 = vector.broadcast %cst_17 : f32 to vector<8x128xf32>
    %30 = arith.addf %28, %29 : vector<8x128xf32>
    %cst_18 = arith.constant 5.000000e-01 : f32
    %31 = vector.broadcast %cst_18 : f32 to vector<8x128xf32>
    %32 = arith.mulf %31, %30 : vector<8x128xf32>
    %33 = vector.extract_strided_slice %16 {offsets = [0, 256], sizes = [8, 128], strides = [1, 1]} : vector<8x512xf32> to vector<8x128xf32>
    %34 = math.tanh %33 : vector<8x128xf32>
    %35 = vector.extract_strided_slice %16 {offsets = [0, 384], sizes = [8, 128], strides = [1, 1]} : vector<8x512xf32> to vector<8x128xf32>
    %cst_19 = arith.constant 5.000000e-01 : f32
    %36 = vector.broadcast %cst_19 : f32 to vector<8x128xf32>
    %37 = arith.mulf %36, %35 : vector<8x128xf32>
    %38 = math.tanh %37 : vector<8x128xf32>
    %cst_20 = arith.constant 1.000000e+00 : f32
    %39 = vector.broadcast %cst_20 : f32 to vector<8x128xf32>
    %40 = arith.addf %38, %39 : vector<8x128xf32>
    %cst_21 = arith.constant 5.000000e-01 : f32
    %41 = vector.broadcast %cst_21 : f32 to vector<8x128xf32>
    %42 = arith.mulf %41, %40 : vector<8x128xf32>
    %43 = arith.mulf %32, %8 : vector<8x128xf32>
    %44 = arith.mulf %24, %34 : vector<8x128xf32>
    %45 = arith.addf %43, %44 : vector<8x128xf32>
    %46 = math.tanh %45 : vector<8x128xf32>
    %47 = arith.mulf %42, %46 : vector<8x128xf32>
    %48 = arith.truncf %47 : vector<8x128xf32> to vector<8x128xbf16>
    %c0_22 = arith.constant 0 : index
    %c0_23 = arith.constant 0 : index
    %49 = vector.load %arg4[%c0_22, %c0_23] : memref<128x512xbf16, #tpu.memory_space<vmem>>, vector<128x512xbf16>
    %cst_24 = arith.constant dense<0.000000e+00> : vector<8x512xf32>
    %50 = tpu.matmul %48, %49, %cst_24 {dimension_numbers = #tpu.dot_dimension_numbers<[1], [0], [0], [1], [0, 0, 1, 1], [], []>} : vector<8x128xbf16>, vector<128x512xbf16>, vector<8x512xf32> -> vector<8x512xf32>
    %c0_25 = arith.constant 0 : index
    %c0_26 = arith.constant 0 : index
    %51 = vector.load %arg6[%c0_25, %c0_26] : memref<1x512xf32, #tpu.memory_space<vmem>>, vector<1x512xf32>
    %52 = vector.broadcast %51 : vector<1x512xf32> to vector<8x512xf32>
    %53 = arith.addf %50, %52 : vector<8x512xf32>
    %54 = arith.index_cast %10 : i32 to index
    %c0_27 = arith.constant 0 : index
    %55 = vector.load %arg11[%54, %c0_27] : memref<64x512xf32, #tpu.memory_space<vmem>>, vector<8x512xf32>
    tpu.vector_store %arg11[%54, %c0_27], %53 {strides = array<i32>} : memref<64x512xf32, #tpu.memory_space<vmem>>, vector<8x512xf32>,
    %c1_i32 = arith.constant 1 : i32
    %c8_i32_28 = arith.constant 8 : i32
    %56 = arith.muli %c1_i32, %c8_i32_28 : i32
    %57 = tpu.assume_multiple %56, 8 : i32
    %58 = arith.index_cast %57 : i32 to index
    %c0_29 = arith.constant 0 : index
    %59 = vector.load %arg10[%58, %c0_29] : memref<64x512xf32, #tpu.memory_space<vmem>>, vector<8x512xf32>
    %60 = arith.truncf %47 : vector<8x128xf32> to vector<8x128xbf16>
    %c0_30 = arith.constant 0 : index
    %c0_31 = arith.constant 0 : index
    %61 = vector.load %arg2[%c0_30, %c0_31] : memref<128x512xbf16, #tpu.memory_space<vmem>>, vector<128x512xbf16>
    %cst_32 = arith.constant dense<0.000000e+00> : vector<8x512xf32>
    %62 = tpu.matmul %60, %61, %cst_32 {dimension_numbers = #tpu.dot_dimension_numbers<[1], [0], [0], [1], [0, 0, 1, 1], [], []>} : vector<8x128xbf16>, vector<128x512xbf16>, vector<8x512xf32> -> vector<8x512xf32>
    %63 = arith.addf %59, %62 : vector<8x512xf32>
    %64 = vector.extract_strided_slice %63 {offsets = [0, 0], sizes = [8, 128], strides = [1, 1]} : vector<8x512xf32> to vector<8x128xf32>
    %cst_33 = arith.constant 5.000000e-01 : f32
    %65 = vector.broadcast %cst_33 : f32 to vector<8x128xf32>
    %66 = arith.mulf %65, %64 : vector<8x128xf32>
    %67 = math.tanh %66 : vector<8x128xf32>
    %cst_34 = arith.constant 1.000000e+00 : f32
    %68 = vector.broadcast %cst_34 : f32 to vector<8x128xf32>
    %69 = arith.addf %67, %68 : vector<8x128xf32>
    %cst_35 = arith.constant 5.000000e-01 : f32
    %70 = vector.broadcast %cst_35 : f32 to vector<8x128xf32>
    %71 = arith.mulf %70, %69 : vector<8x128xf32>
    %72 = vector.extract_strided_slice %63 {offsets = [0, 128], sizes = [8, 128], strides = [1, 1]} : vector<8x512xf32> to vector<8x128xf32>
    %cst_36 = arith.constant 5.000000e-01 : f32
    %73 = vector.broadcast %cst_36 : f32 to vector<8x128xf32>
    %74 = arith.mulf %73, %72 : vector<8x128xf32>
    %75 = math.tanh %74 : vector<8x128xf32>
    %cst_37 = arith.constant 1.000000e+00 : f32
    %76 = vector.broadcast %cst_37 : f32 to vector<8x128xf32>
    %77 = arith.addf %75, %76 : vector<8x128xf32>
    %cst_38 = arith.constant 5.000000e-01 : f32
    %78 = vector.broadcast %cst_38 : f32 to vector<8x128xf32>
    %79 = arith.mulf %78, %77 : vector<8x128xf32>
    %80 = vector.extract_strided_slice %63 {offsets = [0, 256], sizes = [8, 128], strides = [1, 1]} : vector<8x512xf32> to vector<8x128xf32>
    %81 = math.tanh %80 : vector<8x128xf32>
    %82 = vector.extract_strided_slice %63 {offsets = [0, 384], sizes = [8, 128], strides = [1, 1]} : vector<8x512xf32> to vector<8x128xf32>
    %cst_39 = arith.constant 5.000000e-01 : f32
    %83 = vector.broadcast %cst_39 : f32 to vector<8x128xf32>
    %84 = arith.mulf %83, %82 : vector<8x128xf32>
    %85 = math.tanh %84 : vector<8x128xf32>
    %cst_40 = arith.constant 1.000000e+00 : f32
    %86 = vector.broadcast %cst_40 : f32 to vector<8x128xf32>
    %87 = arith.addf %85, %86 : vector<8x128xf32>
    %cst_41 = arith.constant 5.000000e-01 : f32
    %88 = vector.broadcast %cst_41 : f32 to vector<8x128xf32>
    %89 = arith.mulf %88, %87 : vector<8x128xf32>
    %90 = arith.mulf %79, %45 : vector<8x128xf32>
    %91 = arith.mulf %71, %81 : vector<8x128xf32>
    %92 = arith.addf %90, %91 : vector<8x128xf32>
    %93 = math.tanh %92 : vector<8x128xf32>
    %94 = arith.mulf %89, %93 : vector<8x128xf32>
    %95 = arith.truncf %94 : vector<8x128xf32> to vector<8x128xbf16>
    %c0_42 = arith.constant 0 : index
    %c0_43 = arith.constant 0 : index
    %96 = vector.load %arg4[%c0_42, %c0_43] : memref<128x512xbf16, #tpu.memory_space<vmem>>, vector<128x512xbf16>
    %cst_44 = arith.constant dense<0.000000e+00> : vector<8x512xf32>
    %97 = tpu.matmul %95, %96, %cst_44 {dimension_numbers = #tpu.dot_dimension_numbers<[1], [0], [0], [1], [0, 0, 1, 1], [], []>} : vector<8x128xbf16>, vector<128x512xbf16>, vector<8x512xf32> -> vector<8x512xf32>
    %c0_45 = arith.constant 0 : index
    %c0_46 = arith.constant 0 : index
    %98 = vector.load %arg6[%c0_45, %c0_46] : memref<1x512xf32, #tpu.memory_space<vmem>>, vector<1x512xf32>
    %99 = vector.broadcast %98 : vector<1x512xf32> to vector<8x512xf32>
    %100 = arith.addf %97, %99 : vector<8x512xf32>
    %101 = arith.index_cast %57 : i32 to index
    %c0_47 = arith.constant 0 : index
    %102 = vector.load %arg11[%101, %c0_47] : memref<64x512xf32, #tpu.memory_space<vmem>>, vector<8x512xf32>
    tpu.vector_store %arg11[%101, %c0_47], %100 {strides = array<i32>} : memref<64x512xf32, #tpu.memory_space<vmem>>, vector<8x512xf32>,
    %c2_i32 = arith.constant 2 : i32
    %c8_i32_48 = arith.constant 8 : i32
    %103 = arith.muli %c2_i32, %c8_i32_48 : i32
    %104 = tpu.assume_multiple %103, 8 : i32
    %105 = arith.index_cast %104 : i32 to index
    %c0_49 = arith.constant 0 : index
    %106 = vector.load %arg10[%105, %c0_49] : memref<64x512xf32, #tpu.memory_space<vmem>>, vector<8x512xf32>
    %107 = arith.truncf %94 : vector<8x128xf32> to vector<8x128xbf16>
    %c0_50 = arith.constant 0 : index
    %c0_51 = arith.constant 0 : index
    %108 = vector.load %arg2[%c0_50, %c0_51] : memref<128x512xbf16, #tpu.memory_space<vmem>>, vector<128x512xbf16>
    %cst_52 = arith.constant dense<0.000000e+00> : vector<8x512xf32>
    %109 = tpu.matmul %107, %108, %cst_52 {dimension_numbers = #tpu.dot_dimension_numbers<[1], [0], [0], [1], [0, 0, 1, 1], [], []>} : vector<8x128xbf16>, vector<128x512xbf16>, vector<8x512xf32> -> vector<8x512xf32>
    %110 = arith.addf %106, %109 : vector<8x512xf32>
    %111 = vector.extract_strided_slice %110 {offsets = [0, 0], sizes = [8, 128], strides = [1, 1]} : vector<8x512xf32> to vector<8x128xf32>
    %cst_53 = arith.constant 5.000000e-01 : f32
    %112 = vector.broadcast %cst_53 : f32 to vector<8x128xf32>
    %113 = arith.mulf %112, %111 : vector<8x128xf32>
    %114 = math.tanh %113 : vector<8x128xf32>
    %cst_54 = arith.constant 1.000000e+00 : f32
    %115 = vector.broadcast %cst_54 : f32 to vector<8x128xf32>
    %116 = arith.addf %114, %115 : vector<8x128xf32>
    %cst_55 = arith.constant 5.000000e-01 : f32
    %117 = vector.broadcast %cst_55 : f32 to vector<8x128xf32>
    %118 = arith.mulf %117, %116 : vector<8x128xf32>
    %119 = vector.extract_strided_slice %110 {offsets = [0, 128], sizes = [8, 128], strides = [1, 1]} : vector<8x512xf32> to vector<8x128xf32>
    %cst_56 = arith.constant 5.000000e-01 : f32
    %120 = vector.broadcast %cst_56 : f32 to vector<8x128xf32>
    %121 = arith.mulf %120, %119 : vector<8x128xf32>
    %122 = math.tanh %121 : vector<8x128xf32>
    %cst_57 = arith.constant 1.000000e+00 : f32
    %123 = vector.broadcast %cst_57 : f32 to vector<8x128xf32>
    %124 = arith.addf %122, %123 : vector<8x128xf32>
    %cst_58 = arith.constant 5.000000e-01 : f32
    %125 = vector.broadcast %cst_58 : f32 to vector<8x128xf32>
    %126 = arith.mulf %125, %124 : vector<8x128xf32>
    %127 = vector.extract_strided_slice %110 {offsets = [0, 256], sizes = [8, 128], strides = [1, 1]} : vector<8x512xf32> to vector<8x128xf32>
    %128 = math.tanh %127 : vector<8x128xf32>
    %129 = vector.extract_strided_slice %110 {offsets = [0, 384], sizes = [8, 128], strides = [1, 1]} : vector<8x512xf32> to vector<8x128xf32>
    %cst_59 = arith.constant 5.000000e-01 : f32
    %130 = vector.broadcast %cst_59 : f32 to vector<8x128xf32>
    %131 = arith.mulf %130, %129 : vector<8x128xf32>
    %132 = math.tanh %131 : vector<8x128xf32>
    %cst_60 = arith.constant 1.000000e+00 : f32
    %133 = vector.broadcast %cst_60 : f32 to vector<8x128xf32>
    %134 = arith.addf %132, %133 : vector<8x128xf32>
    %cst_61 = arith.constant 5.000000e-01 : f32
    %135 = vector.broadcast %cst_61 : f32 to vector<8x128xf32>
    %136 = arith.mulf %135, %134 : vector<8x128xf32>
    %137 = arith.mulf %126, %92 : vector<8x128xf32>
    %138 = arith.mulf %118, %128 : vector<8x128xf32>
    %139 = arith.addf %137, %138 : vector<8x128xf32>
    %140 = math.tanh %139 : vector<8x128xf32>
    %141 = arith.mulf %136, %140 : vector<8x128xf32>
    %142 = arith.truncf %141 : vector<8x128xf32> to vector<8x128xbf16>
    %c0_62 = arith.constant 0 : index
    %c0_63 = arith.constant 0 : index
    %143 = vector.load %arg4[%c0_62, %c0_63] : memref<128x512xbf16, #tpu.memory_space<vmem>>, vector<128x512xbf16>
    %cst_64 = arith.constant dense<0.000000e+00> : vector<8x512xf32>
    %144 = tpu.matmul %142, %143, %cst_64 {dimension_numbers = #tpu.dot_dimension_numbers<[1], [0], [0], [1], [0, 0, 1, 1], [], []>} : vector<8x128xbf16>, vector<128x512xbf16>, vector<8x512xf32> -> vector<8x512xf32>
    %c0_65 = arith.constant 0 : index
    %c0_66 = arith.constant 0 : index
    %145 = vector.load %arg6[%c0_65, %c0_66] : memref<1x512xf32, #tpu.memory_space<vmem>>, vector<1x512xf32>
    %146 = vector.broadcast %145 : vector<1x512xf32> to vector<8x512xf32>
    %147 = arith.addf %144, %146 : vector<8x512xf32>
    %148 = arith.index_cast %104 : i32 to index
    %c0_67 = arith.constant 0 : index
    %149 = vector.load %arg11[%148, %c0_67] : memref<64x512xf32, #tpu.memory_space<vmem>>, vector<8x512xf32>
    tpu.vector_store %arg11[%148, %c0_67], %147 {strides = array<i32>} : memref<64x512xf32, #tpu.memory_space<vmem>>, vector<8x512xf32>,
    %c3_i32 = arith.constant 3 : i32
    %c8_i32_68 = arith.constant 8 : i32
    %150 = arith.muli %c3_i32, %c8_i32_68 : i32
    %151 = tpu.assume_multiple %150, 8 : i32
    %152 = arith.index_cast %151 : i32 to index
    %c0_69 = arith.constant 0 : index
    %153 = vector.load %arg10[%152, %c0_69] : memref<64x512xf32, #tpu.memory_space<vmem>>, vector<8x512xf32>
    %154 = arith.truncf %141 : vector<8x128xf32> to vector<8x128xbf16>
    %c0_70 = arith.constant 0 : index
    %c0_71 = arith.constant 0 : index
    %155 = vector.load %arg2[%c0_70, %c0_71] : memref<128x512xbf16, #tpu.memory_space<vmem>>, vector<128x512xbf16>
    %cst_72 = arith.constant dense<0.000000e+00> : vector<8x512xf32>
    %156 = tpu.matmul %154, %155, %cst_72 {dimension_numbers = #tpu.dot_dimension_numbers<[1], [0], [0], [1], [0, 0, 1, 1], [], []>} : vector<8x128xbf16>, vector<128x512xbf16>, vector<8x512xf32> -> vector<8x512xf32>
    %157 = arith.addf %153, %156 : vector<8x512xf32>
    %158 = vector.extract_strided_slice %157 {offsets = [0, 0], sizes = [8, 128], strides = [1, 1]} : vector<8x512xf32> to vector<8x128xf32>
    %cst_73 = arith.constant 5.000000e-01 : f32
    %159 = vector.broadcast %cst_73 : f32 to vector<8x128xf32>
    %160 = arith.mulf %159, %158 : vector<8x128xf32>
    %161 = math.tanh %160 : vector<8x128xf32>
    %cst_74 = arith.constant 1.000000e+00 : f32
    %162 = vector.broadcast %cst_74 : f32 to vector<8x128xf32>
    %163 = arith.addf %161, %162 : vector<8x128xf32>
    %cst_75 = arith.constant 5.000000e-01 : f32
    %164 = vector.broadcast %cst_75 : f32 to vector<8x128xf32>
    %165 = arith.mulf %164, %163 : vector<8x128xf32>
    %166 = vector.extract_strided_slice %157 {offsets = [0, 128], sizes = [8, 128], strides = [1, 1]} : vector<8x512xf32> to vector<8x128xf32>
    %cst_76 = arith.constant 5.000000e-01 : f32
    %167 = vector.broadcast %cst_76 : f32 to vector<8x128xf32>
    %168 = arith.mulf %167, %166 : vector<8x128xf32>
    %169 = math.tanh %168 : vector<8x128xf32>
    %cst_77 = arith.constant 1.000000e+00 : f32
    %170 = vector.broadcast %cst_77 : f32 to vector<8x128xf32>
    %171 = arith.addf %169, %170 : vector<8x128xf32>
    %cst_78 = arith.constant 5.000000e-01 : f32
    %172 = vector.broadcast %cst_78 : f32 to vector<8x128xf32>
    %173 = arith.mulf %172, %171 : vector<8x128xf32>
    %174 = vector.extract_strided_slice %157 {offsets = [0, 256], sizes = [8, 128], strides = [1, 1]} : vector<8x512xf32> to vector<8x128xf32>
    %175 = math.tanh %174 : vector<8x128xf32>
    %176 = vector.extract_strided_slice %157 {offsets = [0, 384], sizes = [8, 128], strides = [1, 1]} : vector<8x512xf32> to vector<8x128xf32>
    %cst_79 = arith.constant 5.000000e-01 : f32
    %177 = vector.broadcast %cst_79 : f32 to vector<8x128xf32>
    %178 = arith.mulf %177, %176 : vector<8x128xf32>
    %179 = math.tanh %178 : vector<8x128xf32>
    %cst_80 = arith.constant 1.000000e+00 : f32
    %180 = vector.broadcast %cst_80 : f32 to vector<8x128xf32>
    %181 = arith.addf %179, %180 : vector<8x128xf32>
    %cst_81 = arith.constant 5.000000e-01 : f32
    %182 = vector.broadcast %cst_81 : f32 to vector<8x128xf32>
    %183 = arith.mulf %182, %181 : vector<8x128xf32>
    %184 = arith.mulf %173, %139 : vector<8x128xf32>
    %185 = arith.mulf %165, %175 : vector<8x128xf32>
    %186 = arith.addf %184, %185 : vector<8x128xf32>
    %187 = math.tanh %186 : vector<8x128xf32>
    %188 = arith.mulf %183, %187 : vector<8x128xf32>
    %189 = arith.truncf %188 : vector<8x128xf32> to vector<8x128xbf16>
    %c0_82 = arith.constant 0 : index
    %c0_83 = arith.constant 0 : index
    %190 = vector.load %arg4[%c0_82, %c0_83] : memref<128x512xbf16, #tpu.memory_space<vmem>>, vector<128x512xbf16>
    %cst_84 = arith.constant dense<0.000000e+00> : vector<8x512xf32>
    %191 = tpu.matmul %189, %190, %cst_84 {dimension_numbers = #tpu.dot_dimension_numbers<[1], [0], [0], [1], [0, 0, 1, 1], [], []>} : vector<8x128xbf16>, vector<128x512xbf16>, vector<8x512xf32> -> vector<8x512xf32>
    %c0_85 = arith.constant 0 : index
    %c0_86 = arith.constant 0 : index
    %192 = vector.load %arg6[%c0_85, %c0_86] : memref<1x512xf32, #tpu.memory_space<vmem>>, vector<1x512xf32>
    %193 = vector.broadcast %192 : vector<1x512xf32> to vector<8x512xf32>
    %194 = arith.addf %191, %193 : vector<8x512xf32>
    %195 = arith.index_cast %151 : i32 to index
    %c0_87 = arith.constant 0 : index
    %196 = vector.load %arg11[%195, %c0_87] : memref<64x512xf32, #tpu.memory_space<vmem>>, vector<8x512xf32>
    tpu.vector_store %arg11[%195, %c0_87], %194 {strides = array<i32>} : memref<64x512xf32, #tpu.memory_space<vmem>>, vector<8x512xf32>,
    %c4_i32 = arith.constant 4 : i32
    %c8_i32_88 = arith.constant 8 : i32
    %197 = arith.muli %c4_i32, %c8_i32_88 : i32
    %198 = tpu.assume_multiple %197, 8 : i32
    %199 = arith.index_cast %198 : i32 to index
    %c0_89 = arith.constant 0 : index
    %200 = vector.load %arg10[%199, %c0_89] : memref<64x512xf32, #tpu.memory_space<vmem>>, vector<8x512xf32>
    %201 = arith.truncf %188 : vector<8x128xf32> to vector<8x128xbf16>
    %c0_90 = arith.constant 0 : index
    %c0_91 = arith.constant 0 : index
    %202 = vector.load %arg2[%c0_90, %c0_91] : memref<128x512xbf16, #tpu.memory_space<vmem>>, vector<128x512xbf16>
    %cst_92 = arith.constant dense<0.000000e+00> : vector<8x512xf32>
    %203 = tpu.matmul %201, %202, %cst_92 {dimension_numbers = #tpu.dot_dimension_numbers<[1], [0], [0], [1], [0, 0, 1, 1], [], []>} : vector<8x128xbf16>, vector<128x512xbf16>, vector<8x512xf32> -> vector<8x512xf32>
    %204 = arith.addf %200, %203 : vector<8x512xf32>
    %205 = vector.extract_strided_slice %204 {offsets = [0, 0], sizes = [8, 128], strides = [1, 1]} : vector<8x512xf32> to vector<8x128xf32>
    %cst_93 = arith.constant 5.000000e-01 : f32
    %206 = vector.broadcast %cst_93 : f32 to vector<8x128xf32>
    %207 = arith.mulf %206, %205 : vector<8x128xf32>
    %208 = math.tanh %207 : vector<8x128xf32>
    %cst_94 = arith.constant 1.000000e+00 : f32
    %209 = vector.broadcast %cst_94 : f32 to vector<8x128xf32>
    %210 = arith.addf %208, %209 : vector<8x128xf32>
    %cst_95 = arith.constant 5.000000e-01 : f32
    %211 = vector.broadcast %cst_95 : f32 to vector<8x128xf32>
    %212 = arith.mulf %211, %210 : vector<8x128xf32>
    %213 = vector.extract_strided_slice %204 {offsets = [0, 128], sizes = [8, 128], strides = [1, 1]} : vector<8x512xf32> to vector<8x128xf32>
    %cst_96 = arith.constant 5.000000e-01 : f32
    %214 = vector.broadcast %cst_96 : f32 to vector<8x128xf32>
    %215 = arith.mulf %214, %213 : vector<8x128xf32>
    %216 = math.tanh %215 : vector<8x128xf32>
    %cst_97 = arith.constant 1.000000e+00 : f32
    %217 = vector.broadcast %cst_97 : f32 to vector<8x128xf32>
    %218 = arith.addf %216, %217 : vector<8x128xf32>
    %cst_98 = arith.constant 5.000000e-01 : f32
    %219 = vector.broadcast %cst_98 : f32 to vector<8x128xf32>
    %220 = arith.mulf %219, %218 : vector<8x128xf32>
    %221 = vector.extract_strided_slice %204 {offsets = [0, 256], sizes = [8, 128], strides = [1, 1]} : vector<8x512xf32> to vector<8x128xf32>
    %222 = math.tanh %221 : vector<8x128xf32>
    %223 = vector.extract_strided_slice %204 {offsets = [0, 384], sizes = [8, 128], strides = [1, 1]} : vector<8x512xf32> to vector<8x128xf32>
    %cst_99 = arith.constant 5.000000e-01 : f32
    %224 = vector.broadcast %cst_99 : f32 to vector<8x128xf32>
    %225 = arith.mulf %224, %223 : vector<8x128xf32>
    %226 = math.tanh %225 : vector<8x128xf32>
    %cst_100 = arith.constant 1.000000e+00 : f32
    %227 = vector.broadcast %cst_100 : f32 to vector<8x128xf32>
    %228 = arith.addf %226, %227 : vector<8x128xf32>
    %cst_101 = arith.constant 5.000000e-01 : f32
    %229 = vector.broadcast %cst_101 : f32 to vector<8x128xf32>
    %230 = arith.mulf %229, %228 : vector<8x128xf32>
    %231 = arith.mulf %220, %186 : vector<8x128xf32>
    %232 = arith.mulf %212, %222 : vector<8x128xf32>
    %233 = arith.addf %231, %232 : vector<8x128xf32>
    %234 = math.tanh %233 : vector<8x128xf32>
    %235 = arith.mulf %230, %234 : vector<8x128xf32>
    %236 = arith.truncf %235 : vector<8x128xf32> to vector<8x128xbf16>
    %c0_102 = arith.constant 0 : index
    %c0_103 = arith.constant 0 : index
    %237 = vector.load %arg4[%c0_102, %c0_103] : memref<128x512xbf16, #tpu.memory_space<vmem>>, vector<128x512xbf16>
    %cst_104 = arith.constant dense<0.000000e+00> : vector<8x512xf32>
    %238 = tpu.matmul %236, %237, %cst_104 {dimension_numbers = #tpu.dot_dimension_numbers<[1], [0], [0], [1], [0, 0, 1, 1], [], []>} : vector<8x128xbf16>, vector<128x512xbf16>, vector<8x512xf32> -> vector<8x512xf32>
    %c0_105 = arith.constant 0 : index
    %c0_106 = arith.constant 0 : index
    %239 = vector.load %arg6[%c0_105, %c0_106] : memref<1x512xf32, #tpu.memory_space<vmem>>, vector<1x512xf32>
    %240 = vector.broadcast %239 : vector<1x512xf32> to vector<8x512xf32>
    %241 = arith.addf %238, %240 : vector<8x512xf32>
    %242 = arith.index_cast %198 : i32 to index
    %c0_107 = arith.constant 0 : index
    %243 = vector.load %arg11[%242, %c0_107] : memref<64x512xf32, #tpu.memory_space<vmem>>, vector<8x512xf32>
    tpu.vector_store %arg11[%242, %c0_107], %241 {strides = array<i32>} : memref<64x512xf32, #tpu.memory_space<vmem>>, vector<8x512xf32>,
    %c5_i32 = arith.constant 5 : i32
    %c8_i32_108 = arith.constant 8 : i32
    %244 = arith.muli %c5_i32, %c8_i32_108 : i32
    %245 = tpu.assume_multiple %244, 8 : i32
    %246 = arith.index_cast %245 : i32 to index
    %c0_109 = arith.constant 0 : index
    %247 = vector.load %arg10[%246, %c0_109] : memref<64x512xf32, #tpu.memory_space<vmem>>, vector<8x512xf32>
    %248 = arith.truncf %235 : vector<8x128xf32> to vector<8x128xbf16>
    %c0_110 = arith.constant 0 : index
    %c0_111 = arith.constant 0 : index
    %249 = vector.load %arg2[%c0_110, %c0_111] : memref<128x512xbf16, #tpu.memory_space<vmem>>, vector<128x512xbf16>
    %cst_112 = arith.constant dense<0.000000e+00> : vector<8x512xf32>
    %250 = tpu.matmul %248, %249, %cst_112 {dimension_numbers = #tpu.dot_dimension_numbers<[1], [0], [0], [1], [0, 0, 1, 1], [], []>} : vector<8x128xbf16>, vector<128x512xbf16>, vector<8x512xf32> -> vector<8x512xf32>
    %251 = arith.addf %247, %250 : vector<8x512xf32>
    %252 = vector.extract_strided_slice %251 {offsets = [0, 0], sizes = [8, 128], strides = [1, 1]} : vector<8x512xf32> to vector<8x128xf32>
    %cst_113 = arith.constant 5.000000e-01 : f32
    %253 = vector.broadcast %cst_113 : f32 to vector<8x128xf32>
    %254 = arith.mulf %253, %252 : vector<8x128xf32>
    %255 = math.tanh %254 : vector<8x128xf32>
    %cst_114 = arith.constant 1.000000e+00 : f32
    %256 = vector.broadcast %cst_114 : f32 to vector<8x128xf32>
    %257 = arith.addf %255, %256 : vector<8x128xf32>
    %cst_115 = arith.constant 5.000000e-01 : f32
    %258 = vector.broadcast %cst_115 : f32 to vector<8x128xf32>
    %259 = arith.mulf %258, %257 : vector<8x128xf32>
    %260 = vector.extract_strided_slice %251 {offsets = [0, 128], sizes = [8, 128], strides = [1, 1]} : vector<8x512xf32> to vector<8x128xf32>
    %cst_116 = arith.constant 5.000000e-01 : f32
    %261 = vector.broadcast %cst_116 : f32 to vector<8x128xf32>
    %262 = arith.mulf %261, %260 : vector<8x128xf32>
    %263 = math.tanh %262 : vector<8x128xf32>
    %cst_117 = arith.constant 1.000000e+00 : f32
    %264 = vector.broadcast %cst_117 : f32 to vector<8x128xf32>
    %265 = arith.addf %263, %264 : vector<8x128xf32>
    %cst_118 = arith.constant 5.000000e-01 : f32
    %266 = vector.broadcast %cst_118 : f32 to vector<8x128xf32>
    %267 = arith.mulf %266, %265 : vector<8x128xf32>
    %268 = vector.extract_strided_slice %251 {offsets = [0, 256], sizes = [8, 128], strides = [1, 1]} : vector<8x512xf32> to vector<8x128xf32>
    %269 = math.tanh %268 : vector<8x128xf32>
    %270 = vector.extract_strided_slice %251 {offsets = [0, 384], sizes = [8, 128], strides = [1, 1]} : vector<8x512xf32> to vector<8x128xf32>
    %cst_119 = arith.constant 5.000000e-01 : f32
    %271 = vector.broadcast %cst_119 : f32 to vector<8x128xf32>
    %272 = arith.mulf %271, %270 : vector<8x128xf32>
    %273 = math.tanh %272 : vector<8x128xf32>
    %cst_120 = arith.constant 1.000000e+00 : f32
    %274 = vector.broadcast %cst_120 : f32 to vector<8x128xf32>
    %275 = arith.addf %273, %274 : vector<8x128xf32>
    %cst_121 = arith.constant 5.000000e-01 : f32
    %276 = vector.broadcast %cst_121 : f32 to vector<8x128xf32>
    %277 = arith.mulf %276, %275 : vector<8x128xf32>
    %278 = arith.mulf %267, %233 : vector<8x128xf32>
    %279 = arith.mulf %259, %269 : vector<8x128xf32>
    %280 = arith.addf %278, %279 : vector<8x128xf32>
    %281 = math.tanh %280 : vector<8x128xf32>
    %282 = arith.mulf %277, %281 : vector<8x128xf32>
    %283 = arith.truncf %282 : vector<8x128xf32> to vector<8x128xbf16>
    %c0_122 = arith.constant 0 : index
    %c0_123 = arith.constant 0 : index
    %284 = vector.load %arg4[%c0_122, %c0_123] : memref<128x512xbf16, #tpu.memory_space<vmem>>, vector<128x512xbf16>
    %cst_124 = arith.constant dense<0.000000e+00> : vector<8x512xf32>
    %285 = tpu.matmul %283, %284, %cst_124 {dimension_numbers = #tpu.dot_dimension_numbers<[1], [0], [0], [1], [0, 0, 1, 1], [], []>} : vector<8x128xbf16>, vector<128x512xbf16>, vector<8x512xf32> -> vector<8x512xf32>
    %c0_125 = arith.constant 0 : index
    %c0_126 = arith.constant 0 : index
    %286 = vector.load %arg6[%c0_125, %c0_126] : memref<1x512xf32, #tpu.memory_space<vmem>>, vector<1x512xf32>
    %287 = vector.broadcast %286 : vector<1x512xf32> to vector<8x512xf32>
    %288 = arith.addf %285, %287 : vector<8x512xf32>
    %289 = arith.index_cast %245 : i32 to index
    %c0_127 = arith.constant 0 : index
    %290 = vector.load %arg11[%289, %c0_127] : memref<64x512xf32, #tpu.memory_space<vmem>>, vector<8x512xf32>
    tpu.vector_store %arg11[%289, %c0_127], %288 {strides = array<i32>} : memref<64x512xf32, #tpu.memory_space<vmem>>, vector<8x512xf32>,
    %c6_i32 = arith.constant 6 : i32
    %c8_i32_128 = arith.constant 8 : i32
    %291 = arith.muli %c6_i32, %c8_i32_128 : i32
    %292 = tpu.assume_multiple %291, 8 : i32
    %293 = arith.index_cast %292 : i32 to index
    %c0_129 = arith.constant 0 : index
    %294 = vector.load %arg10[%293, %c0_129] : memref<64x512xf32, #tpu.memory_space<vmem>>, vector<8x512xf32>
    %295 = arith.truncf %282 : vector<8x128xf32> to vector<8x128xbf16>
    %c0_130 = arith.constant 0 : index
    %c0_131 = arith.constant 0 : index
    %296 = vector.load %arg2[%c0_130, %c0_131] : memref<128x512xbf16, #tpu.memory_space<vmem>>, vector<128x512xbf16>
    %cst_132 = arith.constant dense<0.000000e+00> : vector<8x512xf32>
    %297 = tpu.matmul %295, %296, %cst_132 {dimension_numbers = #tpu.dot_dimension_numbers<[1], [0], [0], [1], [0, 0, 1, 1], [], []>} : vector<8x128xbf16>, vector<128x512xbf16>, vector<8x512xf32> -> vector<8x512xf32>
    %298 = arith.addf %294, %297 : vector<8x512xf32>
    %299 = vector.extract_strided_slice %298 {offsets = [0, 0], sizes = [8, 128], strides = [1, 1]} : vector<8x512xf32> to vector<8x128xf32>
    %cst_133 = arith.constant 5.000000e-01 : f32
    %300 = vector.broadcast %cst_133 : f32 to vector<8x128xf32>
    %301 = arith.mulf %300, %299 : vector<8x128xf32>
    %302 = math.tanh %301 : vector<8x128xf32>
    %cst_134 = arith.constant 1.000000e+00 : f32
    %303 = vector.broadcast %cst_134 : f32 to vector<8x128xf32>
    %304 = arith.addf %302, %303 : vector<8x128xf32>
    %cst_135 = arith.constant 5.000000e-01 : f32
    %305 = vector.broadcast %cst_135 : f32 to vector<8x128xf32>
    %306 = arith.mulf %305, %304 : vector<8x128xf32>
    %307 = vector.extract_strided_slice %298 {offsets = [0, 128], sizes = [8, 128], strides = [1, 1]} : vector<8x512xf32> to vector<8x128xf32>
    %cst_136 = arith.constant 5.000000e-01 : f32
    %308 = vector.broadcast %cst_136 : f32 to vector<8x128xf32>
    %309 = arith.mulf %308, %307 : vector<8x128xf32>
    %310 = math.tanh %309 : vector<8x128xf32>
    %cst_137 = arith.constant 1.000000e+00 : f32
    %311 = vector.broadcast %cst_137 : f32 to vector<8x128xf32>
    %312 = arith.addf %310, %311 : vector<8x128xf32>
    %cst_138 = arith.constant 5.000000e-01 : f32
    %313 = vector.broadcast %cst_138 : f32 to vector<8x128xf32>
    %314 = arith.mulf %313, %312 : vector<8x128xf32>
    %315 = vector.extract_strided_slice %298 {offsets = [0, 256], sizes = [8, 128], strides = [1, 1]} : vector<8x512xf32> to vector<8x128xf32>
    %316 = math.tanh %315 : vector<8x128xf32>
    %317 = vector.extract_strided_slice %298 {offsets = [0, 384], sizes = [8, 128], strides = [1, 1]} : vector<8x512xf32> to vector<8x128xf32>
    %cst_139 = arith.constant 5.000000e-01 : f32
    %318 = vector.broadcast %cst_139 : f32 to vector<8x128xf32>
    %319 = arith.mulf %318, %317 : vector<8x128xf32>
    %320 = math.tanh %319 : vector<8x128xf32>
    %cst_140 = arith.constant 1.000000e+00 : f32
    %321 = vector.broadcast %cst_140 : f32 to vector<8x128xf32>
    %322 = arith.addf %320, %321 : vector<8x128xf32>
    %cst_141 = arith.constant 5.000000e-01 : f32
    %323 = vector.broadcast %cst_141 : f32 to vector<8x128xf32>
    %324 = arith.mulf %323, %322 : vector<8x128xf32>
    %325 = arith.mulf %314, %280 : vector<8x128xf32>
    %326 = arith.mulf %306, %316 : vector<8x128xf32>
    %327 = arith.addf %325, %326 : vector<8x128xf32>
    %328 = math.tanh %327 : vector<8x128xf32>
    %329 = arith.mulf %324, %328 : vector<8x128xf32>
    %330 = arith.truncf %329 : vector<8x128xf32> to vector<8x128xbf16>
    %c0_142 = arith.constant 0 : index
    %c0_143 = arith.constant 0 : index
    %331 = vector.load %arg4[%c0_142, %c0_143] : memref<128x512xbf16, #tpu.memory_space<vmem>>, vector<128x512xbf16>
    %cst_144 = arith.constant dense<0.000000e+00> : vector<8x512xf32>
    %332 = tpu.matmul %330, %331, %cst_144 {dimension_numbers = #tpu.dot_dimension_numbers<[1], [0], [0], [1], [0, 0, 1, 1], [], []>} : vector<8x128xbf16>, vector<128x512xbf16>, vector<8x512xf32> -> vector<8x512xf32>
    %c0_145 = arith.constant 0 : index
    %c0_146 = arith.constant 0 : index
    %333 = vector.load %arg6[%c0_145, %c0_146] : memref<1x512xf32, #tpu.memory_space<vmem>>, vector<1x512xf32>
    %334 = vector.broadcast %333 : vector<1x512xf32> to vector<8x512xf32>
    %335 = arith.addf %332, %334 : vector<8x512xf32>
    %336 = arith.index_cast %292 : i32 to index
    %c0_147 = arith.constant 0 : index
    %337 = vector.load %arg11[%336, %c0_147] : memref<64x512xf32, #tpu.memory_space<vmem>>, vector<8x512xf32>
    tpu.vector_store %arg11[%336, %c0_147], %335 {strides = array<i32>} : memref<64x512xf32, #tpu.memory_space<vmem>>, vector<8x512xf32>,
    %c7_i32 = arith.constant 7 : i32
    %c8_i32_148 = arith.constant 8 : i32
    %338 = arith.muli %c7_i32, %c8_i32_148 : i32
    %339 = tpu.assume_multiple %338, 8 : i32
    %340 = arith.index_cast %339 : i32 to index
    %c0_149 = arith.constant 0 : index
    %341 = vector.load %arg10[%340, %c0_149] : memref<64x512xf32, #tpu.memory_space<vmem>>, vector<8x512xf32>
    %342 = arith.truncf %329 : vector<8x128xf32> to vector<8x128xbf16>
    %c0_150 = arith.constant 0 : index
    %c0_151 = arith.constant 0 : index
    %343 = vector.load %arg2[%c0_150, %c0_151] : memref<128x512xbf16, #tpu.memory_space<vmem>>, vector<128x512xbf16>
    %cst_152 = arith.constant dense<0.000000e+00> : vector<8x512xf32>
    %344 = tpu.matmul %342, %343, %cst_152 {dimension_numbers = #tpu.dot_dimension_numbers<[1], [0], [0], [1], [0, 0, 1, 1], [], []>} : vector<8x128xbf16>, vector<128x512xbf16>, vector<8x512xf32> -> vector<8x512xf32>
    %345 = arith.addf %341, %344 : vector<8x512xf32>
    %346 = vector.extract_strided_slice %345 {offsets = [0, 0], sizes = [8, 128], strides = [1, 1]} : vector<8x512xf32> to vector<8x128xf32>
    %cst_153 = arith.constant 5.000000e-01 : f32
    %347 = vector.broadcast %cst_153 : f32 to vector<8x128xf32>
    %348 = arith.mulf %347, %346 : vector<8x128xf32>
    %349 = math.tanh %348 : vector<8x128xf32>
    %cst_154 = arith.constant 1.000000e+00 : f32
    %350 = vector.broadcast %cst_154 : f32 to vector<8x128xf32>
    %351 = arith.addf %349, %350 : vector<8x128xf32>
    %cst_155 = arith.constant 5.000000e-01 : f32
    %352 = vector.broadcast %cst_155 : f32 to vector<8x128xf32>
    %353 = arith.mulf %352, %351 : vector<8x128xf32>
    %354 = vector.extract_strided_slice %345 {offsets = [0, 128], sizes = [8, 128], strides = [1, 1]} : vector<8x512xf32> to vector<8x128xf32>
    %cst_156 = arith.constant 5.000000e-01 : f32
    %355 = vector.broadcast %cst_156 : f32 to vector<8x128xf32>
    %356 = arith.mulf %355, %354 : vector<8x128xf32>
    %357 = math.tanh %356 : vector<8x128xf32>
    %cst_157 = arith.constant 1.000000e+00 : f32
    %358 = vector.broadcast %cst_157 : f32 to vector<8x128xf32>
    %359 = arith.addf %357, %358 : vector<8x128xf32>
    %cst_158 = arith.constant 5.000000e-01 : f32
    %360 = vector.broadcast %cst_158 : f32 to vector<8x128xf32>
    %361 = arith.mulf %360, %359 : vector<8x128xf32>
    %362 = vector.extract_strided_slice %345 {offsets = [0, 256], sizes = [8, 128], strides = [1, 1]} : vector<8x512xf32> to vector<8x128xf32>
    %363 = math.tanh %362 : vector<8x128xf32>
    %364 = vector.extract_strided_slice %345 {offsets = [0, 384], sizes = [8, 128], strides = [1, 1]} : vector<8x512xf32> to vector<8x128xf32>
    %cst_159 = arith.constant 5.000000e-01 : f32
    %365 = vector.broadcast %cst_159 : f32 to vector<8x128xf32>
    %366 = arith.mulf %365, %364 : vector<8x128xf32>
    %367 = math.tanh %366 : vector<8x128xf32>
    %cst_160 = arith.constant 1.000000e+00 : f32
    %368 = vector.broadcast %cst_160 : f32 to vector<8x128xf32>
    %369 = arith.addf %367, %368 : vector<8x128xf32>
    %cst_161 = arith.constant 5.000000e-01 : f32
    %370 = vector.broadcast %cst_161 : f32 to vector<8x128xf32>
    %371 = arith.mulf %370, %369 : vector<8x128xf32>
    %372 = arith.mulf %361, %327 : vector<8x128xf32>
    %373 = arith.mulf %353, %363 : vector<8x128xf32>
    %374 = arith.addf %372, %373 : vector<8x128xf32>
    %375 = math.tanh %374 : vector<8x128xf32>
    %376 = arith.mulf %371, %375 : vector<8x128xf32>
    %377 = arith.truncf %376 : vector<8x128xf32> to vector<8x128xbf16>
    %c0_162 = arith.constant 0 : index
    %c0_163 = arith.constant 0 : index
    %378 = vector.load %arg4[%c0_162, %c0_163] : memref<128x512xbf16, #tpu.memory_space<vmem>>, vector<128x512xbf16>
    %cst_164 = arith.constant dense<0.000000e+00> : vector<8x512xf32>
    %379 = tpu.matmul %377, %378, %cst_164 {dimension_numbers = #tpu.dot_dimension_numbers<[1], [0], [0], [1], [0, 0, 1, 1], [], []>} : vector<8x128xbf16>, vector<128x512xbf16>, vector<8x512xf32> -> vector<8x512xf32>
    %c0_165 = arith.constant 0 : index
    %c0_166 = arith.constant 0 : index
    %380 = vector.load %arg6[%c0_165, %c0_166] : memref<1x512xf32, #tpu.memory_space<vmem>>, vector<1x512xf32>
    %381 = vector.broadcast %380 : vector<1x512xf32> to vector<8x512xf32>
    %382 = arith.addf %379, %381 : vector<8x512xf32>
    %383 = arith.index_cast %339 : i32 to index
    %c0_167 = arith.constant 0 : index
    %384 = vector.load %arg11[%383, %c0_167] : memref<64x512xf32, #tpu.memory_space<vmem>>, vector<8x512xf32>
    tpu.vector_store %arg11[%383, %c0_167], %382 {strides = array<i32>} : memref<64x512xf32, #tpu.memory_space<vmem>>, vector<8x512xf32>,
    %c8_i32_168 = arith.constant 8 : i32
    %cst_169 = arith.constant 0.000000e+00 : f32
    %385 = vector.broadcast %cst_169 : f32 to vector<8x128xf32>
    %cst_170 = arith.constant 0.000000e+00 : f32
    %386 = vector.broadcast %cst_170 : f32 to vector<8x128xf32>
    %c0_i32_171 = arith.constant 0 : i32
    %c8_i32_172 = arith.constant 8 : i32
    %387 = arith.muli %c0_i32_171, %c8_i32_172 : i32
    %388 = tpu.assume_multiple %387, 8 : i32
    %389 = arith.index_cast %388 : i32 to index
    %c0_173 = arith.constant 0 : index
    %390 = vector.load %arg11[%389, %c0_173] : memref<64x512xf32, #tpu.memory_space<vmem>>, vector<8x512xf32>
    %391 = arith.truncf %385 : vector<8x128xf32> to vector<8x128xbf16>
    %c0_174 = arith.constant 0 : index
    %c0_175 = arith.constant 0 : index
    %392 = vector.load %arg5[%c0_174, %c0_175] : memref<128x512xbf16, #tpu.memory_space<vmem>>, vector<128x512xbf16>
    %cst_176 = arith.constant dense<0.000000e+00> : vector<8x512xf32>
    %393 = tpu.matmul %391, %392, %cst_176 {dimension_numbers = #tpu.dot_dimension_numbers<[1], [0], [0], [1], [0, 0, 1, 1], [], []>} : vector<8x128xbf16>, vector<128x512xbf16>, vector<8x512xf32> -> vector<8x512xf32>
    %394 = arith.addf %390, %393 : vector<8x512xf32>
    %395 = vector.extract_strided_slice %394 {offsets = [0, 0], sizes = [8, 128], strides = [1, 1]} : vector<8x512xf32> to vector<8x128xf32>
    %cst_177 = arith.constant 5.000000e-01 : f32
    %396 = vector.broadcast %cst_177 : f32 to vector<8x128xf32>
    %397 = arith.mulf %396, %395 : vector<8x128xf32>
    %398 = math.tanh %397 : vector<8x128xf32>
    %cst_178 = arith.constant 1.000000e+00 : f32
    %399 = vector.broadcast %cst_178 : f32 to vector<8x128xf32>
    %400 = arith.addf %398, %399 : vector<8x128xf32>
    %cst_179 = arith.constant 5.000000e-01 : f32
    %401 = vector.broadcast %cst_179 : f32 to vector<8x128xf32>
    %402 = arith.mulf %401, %400 : vector<8x128xf32>
    %403 = vector.extract_strided_slice %394 {offsets = [0, 128], sizes = [8, 128], strides = [1, 1]} : vector<8x512xf32> to vector<8x128xf32>
    %cst_180 = arith.constant 5.000000e-01 : f32
    %404 = vector.broadcast %cst_180 : f32 to vector<8x128xf32>
    %405 = arith.mulf %404, %403 : vector<8x128xf32>
    %406 = math.tanh %405 : vector<8x128xf32>
    %cst_181 = arith.constant 1.000000e+00 : f32
    %407 = vector.broadcast %cst_181 : f32 to vector<8x128xf32>
    %408 = arith.addf %406, %407 : vector<8x128xf32>
    %cst_182 = arith.constant 5.000000e-01 : f32
    %409 = vector.broadcast %cst_182 : f32 to vector<8x128xf32>
    %410 = arith.mulf %409, %408 : vector<8x128xf32>
    %411 = vector.extract_strided_slice %394 {offsets = [0, 256], sizes = [8, 128], strides = [1, 1]} : vector<8x512xf32> to vector<8x128xf32>
    %412 = math.tanh %411 : vector<8x128xf32>
    %413 = vector.extract_strided_slice %394 {offsets = [0, 384], sizes = [8, 128], strides = [1, 1]} : vector<8x512xf32> to vector<8x128xf32>
    %cst_183 = arith.constant 5.000000e-01 : f32
    %414 = vector.broadcast %cst_183 : f32 to vector<8x128xf32>
    %415 = arith.mulf %414, %413 : vector<8x128xf32>
    %416 = math.tanh %415 : vector<8x128xf32>
    %cst_184 = arith.constant 1.000000e+00 : f32
    %417 = vector.broadcast %cst_184 : f32 to vector<8x128xf32>
    %418 = arith.addf %416, %417 : vector<8x128xf32>
    %cst_185 = arith.constant 5.000000e-01 : f32
    %419 = vector.broadcast %cst_185 : f32 to vector<8x128xf32>
    %420 = arith.mulf %419, %418 : vector<8x128xf32>
    %421 = arith.mulf %410, %386 : vector<8x128xf32>
    %422 = arith.mulf %402, %412 : vector<8x128xf32>
    %423 = arith.addf %421, %422 : vector<8x128xf32>
    %424 = math.tanh %423 : vector<8x128xf32>
    %425 = arith.mulf %420, %424 : vector<8x128xf32>
    %c1_i32_186 = arith.constant 1 : i32
    %c8_i32_187 = arith.constant 8 : i32
    %426 = arith.muli %c1_i32_186, %c8_i32_187 : i32
    %427 = tpu.assume_multiple %426, 8 : i32
    %428 = arith.index_cast %427 : i32 to index
    %c0_188 = arith.constant 0 : index
    %429 = vector.load %arg11[%428, %c0_188] : memref<64x512xf32, #tpu.memory_space<vmem>>, vector<8x512xf32>
    %430 = arith.truncf %425 : vector<8x128xf32> to vector<8x128xbf16>
    %c0_189 = arith.constant 0 : index
    %c0_190 = arith.constant 0 : index
    %431 = vector.load %arg5[%c0_189, %c0_190] : memref<128x512xbf16, #tpu.memory_space<vmem>>, vector<128x512xbf16>
    %cst_191 = arith.constant dense<0.000000e+00> : vector<8x512xf32>
    %432 = tpu.matmul %430, %431, %cst_191 {dimension_numbers = #tpu.dot_dimension_numbers<[1], [0], [0], [1], [0, 0, 1, 1], [], []>} : vector<8x128xbf16>, vector<128x512xbf16>, vector<8x512xf32> -> vector<8x512xf32>
    %433 = arith.addf %429, %432 : vector<8x512xf32>
    %434 = vector.extract_strided_slice %433 {offsets = [0, 0], sizes = [8, 128], strides = [1, 1]} : vector<8x512xf32> to vector<8x128xf32>
    %cst_192 = arith.constant 5.000000e-01 : f32
    %435 = vector.broadcast %cst_192 : f32 to vector<8x128xf32>
    %436 = arith.mulf %435, %434 : vector<8x128xf32>
    %437 = math.tanh %436 : vector<8x128xf32>
    %cst_193 = arith.constant 1.000000e+00 : f32
    %438 = vector.broadcast %cst_193 : f32 to vector<8x128xf32>
    %439 = arith.addf %437, %438 : vector<8x128xf32>
    %cst_194 = arith.constant 5.000000e-01 : f32
    %440 = vector.broadcast %cst_194 : f32 to vector<8x128xf32>
    %441 = arith.mulf %440, %439 : vector<8x128xf32>
    %442 = vector.extract_strided_slice %433 {offsets = [0, 128], sizes = [8, 128], strides = [1, 1]} : vector<8x512xf32> to vector<8x128xf32>
    %cst_195 = arith.constant 5.000000e-01 : f32
    %443 = vector.broadcast %cst_195 : f32 to vector<8x128xf32>
    %444 = arith.mulf %443, %442 : vector<8x128xf32>
    %445 = math.tanh %444 : vector<8x128xf32>
    %cst_196 = arith.constant 1.000000e+00 : f32
    %446 = vector.broadcast %cst_196 : f32 to vector<8x128xf32>
    %447 = arith.addf %445, %446 : vector<8x128xf32>
    %cst_197 = arith.constant 5.000000e-01 : f32
    %448 = vector.broadcast %cst_197 : f32 to vector<8x128xf32>
    %449 = arith.mulf %448, %447 : vector<8x128xf32>
    %450 = vector.extract_strided_slice %433 {offsets = [0, 256], sizes = [8, 128], strides = [1, 1]} : vector<8x512xf32> to vector<8x128xf32>
    %451 = math.tanh %450 : vector<8x128xf32>
    %452 = vector.extract_strided_slice %433 {offsets = [0, 384], sizes = [8, 128], strides = [1, 1]} : vector<8x512xf32> to vector<8x128xf32>
    %cst_198 = arith.constant 5.000000e-01 : f32
    %453 = vector.broadcast %cst_198 : f32 to vector<8x128xf32>
    %454 = arith.mulf %453, %452 : vector<8x128xf32>
    %455 = math.tanh %454 : vector<8x128xf32>
    %cst_199 = arith.constant 1.000000e+00 : f32
    %456 = vector.broadcast %cst_199 : f32 to vector<8x128xf32>
    %457 = arith.addf %455, %456 : vector<8x128xf32>
    %cst_200 = arith.constant 5.000000e-01 : f32
    %458 = vector.broadcast %cst_200 : f32 to vector<8x128xf32>
    %459 = arith.mulf %458, %457 : vector<8x128xf32>
    %460 = arith.mulf %449, %423 : vector<8x128xf32>
    %461 = arith.mulf %441, %451 : vector<8x128xf32>
    %462 = arith.addf %460, %461 : vector<8x128xf32>
    %463 = math.tanh %462 : vector<8x128xf32>
    %464 = arith.mulf %459, %463 : vector<8x128xf32>
    %c2_i32_201 = arith.constant 2 : i32
    %c8_i32_202 = arith.constant 8 : i32
    %465 = arith.muli %c2_i32_201, %c8_i32_202 : i32
    %466 = tpu.assume_multiple %465, 8 : i32
    %467 = arith.index_cast %466 : i32 to index
    %c0_203 = arith.constant 0 : index
    %468 = vector.load %arg11[%467, %c0_203] : memref<64x512xf32, #tpu.memory_space<vmem>>, vector<8x512xf32>
    %469 = arith.truncf %464 : vector<8x128xf32> to vector<8x128xbf16>
    %c0_204 = arith.constant 0 : index
    %c0_205 = arith.constant 0 : index
    %470 = vector.load %arg5[%c0_204, %c0_205] : memref<128x512xbf16, #tpu.memory_space<vmem>>, vector<128x512xbf16>
    %cst_206 = arith.constant dense<0.000000e+00> : vector<8x512xf32>
    %471 = tpu.matmul %469, %470, %cst_206 {dimension_numbers = #tpu.dot_dimension_numbers<[1], [0], [0], [1], [0, 0, 1, 1], [], []>} : vector<8x128xbf16>, vector<128x512xbf16>, vector<8x512xf32> -> vector<8x512xf32>
    %472 = arith.addf %468, %471 : vector<8x512xf32>
    %473 = vector.extract_strided_slice %472 {offsets = [0, 0], sizes = [8, 128], strides = [1, 1]} : vector<8x512xf32> to vector<8x128xf32>
    %cst_207 = arith.constant 5.000000e-01 : f32
    %474 = vector.broadcast %cst_207 : f32 to vector<8x128xf32>
    %475 = arith.mulf %474, %473 : vector<8x128xf32>
    %476 = math.tanh %475 : vector<8x128xf32>
    %cst_208 = arith.constant 1.000000e+00 : f32
    %477 = vector.broadcast %cst_208 : f32 to vector<8x128xf32>
    %478 = arith.addf %476, %477 : vector<8x128xf32>
    %cst_209 = arith.constant 5.000000e-01 : f32
    %479 = vector.broadcast %cst_209 : f32 to vector<8x128xf32>
    %480 = arith.mulf %479, %478 : vector<8x128xf32>
    %481 = vector.extract_strided_slice %472 {offsets = [0, 128], sizes = [8, 128], strides = [1, 1]} : vector<8x512xf32> to vector<8x128xf32>
    %cst_210 = arith.constant 5.000000e-01 : f32
    %482 = vector.broadcast %cst_210 : f32 to vector<8x128xf32>
    %483 = arith.mulf %482, %481 : vector<8x128xf32>
    %484 = math.tanh %483 : vector<8x128xf32>
    %cst_211 = arith.constant 1.000000e+00 : f32
    %485 = vector.broadcast %cst_211 : f32 to vector<8x128xf32>
    %486 = arith.addf %484, %485 : vector<8x128xf32>
    %cst_212 = arith.constant 5.000000e-01 : f32
    %487 = vector.broadcast %cst_212 : f32 to vector<8x128xf32>
    %488 = arith.mulf %487, %486 : vector<8x128xf32>
    %489 = vector.extract_strided_slice %472 {offsets = [0, 256], sizes = [8, 128], strides = [1, 1]} : vector<8x512xf32> to vector<8x128xf32>
    %490 = math.tanh %489 : vector<8x128xf32>
    %491 = vector.extract_strided_slice %472 {offsets = [0, 384], sizes = [8, 128], strides = [1, 1]} : vector<8x512xf32> to vector<8x128xf32>
    %cst_213 = arith.constant 5.000000e-01 : f32
    %492 = vector.broadcast %cst_213 : f32 to vector<8x128xf32>
    %493 = arith.mulf %492, %491 : vector<8x128xf32>
    %494 = math.tanh %493 : vector<8x128xf32>
    %cst_214 = arith.constant 1.000000e+00 : f32
    %495 = vector.broadcast %cst_214 : f32 to vector<8x128xf32>
    %496 = arith.addf %494, %495 : vector<8x128xf32>
    %cst_215 = arith.constant 5.000000e-01 : f32
    %497 = vector.broadcast %cst_215 : f32 to vector<8x128xf32>
    %498 = arith.mulf %497, %496 : vector<8x128xf32>
    %499 = arith.mulf %488, %462 : vector<8x128xf32>
    %500 = arith.mulf %480, %490 : vector<8x128xf32>
    %501 = arith.addf %499, %500 : vector<8x128xf32>
    %502 = math.tanh %501 : vector<8x128xf32>
    %503 = arith.mulf %498, %502 : vector<8x128xf32>
    %c3_i32_216 = arith.constant 3 : i32
    %c8_i32_217 = arith.constant 8 : i32
    %504 = arith.muli %c3_i32_216, %c8_i32_217 : i32
    %505 = tpu.assume_multiple %504, 8 : i32
    %506 = arith.index_cast %505 : i32 to index
    %c0_218 = arith.constant 0 : index
    %507 = vector.load %arg11[%506, %c0_218] : memref<64x512xf32, #tpu.memory_space<vmem>>, vector<8x512xf32>
    %508 = arith.truncf %503 : vector<8x128xf32> to vector<8x128xbf16>
    %c0_219 = arith.constant 0 : index
    %c0_220 = arith.constant 0 : index
    %509 = vector.load %arg5[%c0_219, %c0_220] : memref<128x512xbf16, #tpu.memory_space<vmem>>, vector<128x512xbf16>
    %cst_221 = arith.constant dense<0.000000e+00> : vector<8x512xf32>
    %510 = tpu.matmul %508, %509, %cst_221 {dimension_numbers = #tpu.dot_dimension_numbers<[1], [0], [0], [1], [0, 0, 1, 1], [], []>} : vector<8x128xbf16>, vector<128x512xbf16>, vector<8x512xf32> -> vector<8x512xf32>
    %511 = arith.addf %507, %510 : vector<8x512xf32>
    %512 = vector.extract_strided_slice %511 {offsets = [0, 0], sizes = [8, 128], strides = [1, 1]} : vector<8x512xf32> to vector<8x128xf32>
    %cst_222 = arith.constant 5.000000e-01 : f32
    %513 = vector.broadcast %cst_222 : f32 to vector<8x128xf32>
    %514 = arith.mulf %513, %512 : vector<8x128xf32>
    %515 = math.tanh %514 : vector<8x128xf32>
    %cst_223 = arith.constant 1.000000e+00 : f32
    %516 = vector.broadcast %cst_223 : f32 to vector<8x128xf32>
    %517 = arith.addf %515, %516 : vector<8x128xf32>
    %cst_224 = arith.constant 5.000000e-01 : f32
    %518 = vector.broadcast %cst_224 : f32 to vector<8x128xf32>
    %519 = arith.mulf %518, %517 : vector<8x128xf32>
    %520 = vector.extract_strided_slice %511 {offsets = [0, 128], sizes = [8, 128], strides = [1, 1]} : vector<8x512xf32> to vector<8x128xf32>
    %cst_225 = arith.constant 5.000000e-01 : f32
    %521 = vector.broadcast %cst_225 : f32 to vector<8x128xf32>
    %522 = arith.mulf %521, %520 : vector<8x128xf32>
    %523 = math.tanh %522 : vector<8x128xf32>
    %cst_226 = arith.constant 1.000000e+00 : f32
    %524 = vector.broadcast %cst_226 : f32 to vector<8x128xf32>
    %525 = arith.addf %523, %524 : vector<8x128xf32>
    %cst_227 = arith.constant 5.000000e-01 : f32
    %526 = vector.broadcast %cst_227 : f32 to vector<8x128xf32>
    %527 = arith.mulf %526, %525 : vector<8x128xf32>
    %528 = vector.extract_strided_slice %511 {offsets = [0, 256], sizes = [8, 128], strides = [1, 1]} : vector<8x512xf32> to vector<8x128xf32>
    %529 = math.tanh %528 : vector<8x128xf32>
    %530 = vector.extract_strided_slice %511 {offsets = [0, 384], sizes = [8, 128], strides = [1, 1]} : vector<8x512xf32> to vector<8x128xf32>
    %cst_228 = arith.constant 5.000000e-01 : f32
    %531 = vector.broadcast %cst_228 : f32 to vector<8x128xf32>
    %532 = arith.mulf %531, %530 : vector<8x128xf32>
    %533 = math.tanh %532 : vector<8x128xf32>
    %cst_229 = arith.constant 1.000000e+00 : f32
    %534 = vector.broadcast %cst_229 : f32 to vector<8x128xf32>
    %535 = arith.addf %533, %534 : vector<8x128xf32>
    %cst_230 = arith.constant 5.000000e-01 : f32
    %536 = vector.broadcast %cst_230 : f32 to vector<8x128xf32>
    %537 = arith.mulf %536, %535 : vector<8x128xf32>
    %538 = arith.mulf %527, %501 : vector<8x128xf32>
    %539 = arith.mulf %519, %529 : vector<8x128xf32>
    %540 = arith.addf %538, %539 : vector<8x128xf32>
    %541 = math.tanh %540 : vector<8x128xf32>
    %542 = arith.mulf %537, %541 : vector<8x128xf32>
    %c4_i32_231 = arith.constant 4 : i32
    %c8_i32_232 = arith.constant 8 : i32
    %543 = arith.muli %c4_i32_231, %c8_i32_232 : i32
    %544 = tpu.assume_multiple %543, 8 : i32
    %545 = arith.index_cast %544 : i32 to index
    %c0_233 = arith.constant 0 : index
    %546 = vector.load %arg11[%545, %c0_233] : memref<64x512xf32, #tpu.memory_space<vmem>>, vector<8x512xf32>
    %547 = arith.truncf %542 : vector<8x128xf32> to vector<8x128xbf16>
    %c0_234 = arith.constant 0 : index
    %c0_235 = arith.constant 0 : index
    %548 = vector.load %arg5[%c0_234, %c0_235] : memref<128x512xbf16, #tpu.memory_space<vmem>>, vector<128x512xbf16>
    %cst_236 = arith.constant dense<0.000000e+00> : vector<8x512xf32>
    %549 = tpu.matmul %547, %548, %cst_236 {dimension_numbers = #tpu.dot_dimension_numbers<[1], [0], [0], [1], [0, 0, 1, 1], [], []>} : vector<8x128xbf16>, vector<128x512xbf16>, vector<8x512xf32> -> vector<8x512xf32>
    %550 = arith.addf %546, %549 : vector<8x512xf32>
    %551 = vector.extract_strided_slice %550 {offsets = [0, 0], sizes = [8, 128], strides = [1, 1]} : vector<8x512xf32> to vector<8x128xf32>
    %cst_237 = arith.constant 5.000000e-01 : f32
    %552 = vector.broadcast %cst_237 : f32 to vector<8x128xf32>
    %553 = arith.mulf %552, %551 : vector<8x128xf32>
    %554 = math.tanh %553 : vector<8x128xf32>
    %cst_238 = arith.constant 1.000000e+00 : f32
    %555 = vector.broadcast %cst_238 : f32 to vector<8x128xf32>
    %556 = arith.addf %554, %555 : vector<8x128xf32>
    %cst_239 = arith.constant 5.000000e-01 : f32
    %557 = vector.broadcast %cst_239 : f32 to vector<8x128xf32>
    %558 = arith.mulf %557, %556 : vector<8x128xf32>
    %559 = vector.extract_strided_slice %550 {offsets = [0, 128], sizes = [8, 128], strides = [1, 1]} : vector<8x512xf32> to vector<8x128xf32>
    %cst_240 = arith.constant 5.000000e-01 : f32
    %560 = vector.broadcast %cst_240 : f32 to vector<8x128xf32>
    %561 = arith.mulf %560, %559 : vector<8x128xf32>
    %562 = math.tanh %561 : vector<8x128xf32>
    %cst_241 = arith.constant 1.000000e+00 : f32
    %563 = vector.broadcast %cst_241 : f32 to vector<8x128xf32>
    %564 = arith.addf %562, %563 : vector<8x128xf32>
    %cst_242 = arith.constant 5.000000e-01 : f32
    %565 = vector.broadcast %cst_242 : f32 to vector<8x128xf32>
    %566 = arith.mulf %565, %564 : vector<8x128xf32>
    %567 = vector.extract_strided_slice %550 {offsets = [0, 256], sizes = [8, 128], strides = [1, 1]} : vector<8x512xf32> to vector<8x128xf32>
    %568 = math.tanh %567 : vector<8x128xf32>
    %569 = vector.extract_strided_slice %550 {offsets = [0, 384], sizes = [8, 128], strides = [1, 1]} : vector<8x512xf32> to vector<8x128xf32>
    %cst_243 = arith.constant 5.000000e-01 : f32
    %570 = vector.broadcast %cst_243 : f32 to vector<8x128xf32>
    %571 = arith.mulf %570, %569 : vector<8x128xf32>
    %572 = math.tanh %571 : vector<8x128xf32>
    %cst_244 = arith.constant 1.000000e+00 : f32
    %573 = vector.broadcast %cst_244 : f32 to vector<8x128xf32>
    %574 = arith.addf %572, %573 : vector<8x128xf32>
    %cst_245 = arith.constant 5.000000e-01 : f32
    %575 = vector.broadcast %cst_245 : f32 to vector<8x128xf32>
    %576 = arith.mulf %575, %574 : vector<8x128xf32>
    %577 = arith.mulf %566, %540 : vector<8x128xf32>
    %578 = arith.mulf %558, %568 : vector<8x128xf32>
    %579 = arith.addf %577, %578 : vector<8x128xf32>
    %580 = math.tanh %579 : vector<8x128xf32>
    %581 = arith.mulf %576, %580 : vector<8x128xf32>
    %c5_i32_246 = arith.constant 5 : i32
    %c8_i32_247 = arith.constant 8 : i32
    %582 = arith.muli %c5_i32_246, %c8_i32_247 : i32
    %583 = tpu.assume_multiple %582, 8 : i32
    %584 = arith.index_cast %583 : i32 to index
    %c0_248 = arith.constant 0 : index
    %585 = vector.load %arg11[%584, %c0_248] : memref<64x512xf32, #tpu.memory_space<vmem>>, vector<8x512xf32>
    %586 = arith.truncf %581 : vector<8x128xf32> to vector<8x128xbf16>
    %c0_249 = arith.constant 0 : index
    %c0_250 = arith.constant 0 : index
    %587 = vector.load %arg5[%c0_249, %c0_250] : memref<128x512xbf16, #tpu.memory_space<vmem>>, vector<128x512xbf16>
    %cst_251 = arith.constant dense<0.000000e+00> : vector<8x512xf32>
    %588 = tpu.matmul %586, %587, %cst_251 {dimension_numbers = #tpu.dot_dimension_numbers<[1], [0], [0], [1], [0, 0, 1, 1], [], []>} : vector<8x128xbf16>, vector<128x512xbf16>, vector<8x512xf32> -> vector<8x512xf32>
    %589 = arith.addf %585, %588 : vector<8x512xf32>
    %590 = vector.extract_strided_slice %589 {offsets = [0, 0], sizes = [8, 128], strides = [1, 1]} : vector<8x512xf32> to vector<8x128xf32>
    %cst_252 = arith.constant 5.000000e-01 : f32
    %591 = vector.broadcast %cst_252 : f32 to vector<8x128xf32>
    %592 = arith.mulf %591, %590 : vector<8x128xf32>
    %593 = math.tanh %592 : vector<8x128xf32>
    %cst_253 = arith.constant 1.000000e+00 : f32
    %594 = vector.broadcast %cst_253 : f32 to vector<8x128xf32>
    %595 = arith.addf %593, %594 : vector<8x128xf32>
    %cst_254 = arith.constant 5.000000e-01 : f32
    %596 = vector.broadcast %cst_254 : f32 to vector<8x128xf32>
    %597 = arith.mulf %596, %595 : vector<8x128xf32>
    %598 = vector.extract_strided_slice %589 {offsets = [0, 128], sizes = [8, 128], strides = [1, 1]} : vector<8x512xf32> to vector<8x128xf32>
    %cst_255 = arith.constant 5.000000e-01 : f32
    %599 = vector.broadcast %cst_255 : f32 to vector<8x128xf32>
    %600 = arith.mulf %599, %598 : vector<8x128xf32>
    %601 = math.tanh %600 : vector<8x128xf32>
    %cst_256 = arith.constant 1.000000e+00 : f32
    %602 = vector.broadcast %cst_256 : f32 to vector<8x128xf32>
    %603 = arith.addf %601, %602 : vector<8x128xf32>
    %cst_257 = arith.constant 5.000000e-01 : f32
    %604 = vector.broadcast %cst_257 : f32 to vector<8x128xf32>
    %605 = arith.mulf %604, %603 : vector<8x128xf32>
    %606 = vector.extract_strided_slice %589 {offsets = [0, 256], sizes = [8, 128], strides = [1, 1]} : vector<8x512xf32> to vector<8x128xf32>
    %607 = math.tanh %606 : vector<8x128xf32>
    %608 = vector.extract_strided_slice %589 {offsets = [0, 384], sizes = [8, 128], strides = [1, 1]} : vector<8x512xf32> to vector<8x128xf32>
    %cst_258 = arith.constant 5.000000e-01 : f32
    %609 = vector.broadcast %cst_258 : f32 to vector<8x128xf32>
    %610 = arith.mulf %609, %608 : vector<8x128xf32>
    %611 = math.tanh %610 : vector<8x128xf32>
    %cst_259 = arith.constant 1.000000e+00 : f32
    %612 = vector.broadcast %cst_259 : f32 to vector<8x128xf32>
    %613 = arith.addf %611, %612 : vector<8x128xf32>
    %cst_260 = arith.constant 5.000000e-01 : f32
    %614 = vector.broadcast %cst_260 : f32 to vector<8x128xf32>
    %615 = arith.mulf %614, %613 : vector<8x128xf32>
    %616 = arith.mulf %605, %579 : vector<8x128xf32>
    %617 = arith.mulf %597, %607 : vector<8x128xf32>
    %618 = arith.addf %616, %617 : vector<8x128xf32>
    %619 = math.tanh %618 : vector<8x128xf32>
    %620 = arith.mulf %615, %619 : vector<8x128xf32>
    %c6_i32_261 = arith.constant 6 : i32
    %c8_i32_262 = arith.constant 8 : i32
    %621 = arith.muli %c6_i32_261, %c8_i32_262 : i32
    %622 = tpu.assume_multiple %621, 8 : i32
    %623 = arith.index_cast %622 : i32 to index
    %c0_263 = arith.constant 0 : index
    %624 = vector.load %arg11[%623, %c0_263] : memref<64x512xf32, #tpu.memory_space<vmem>>, vector<8x512xf32>
    %625 = arith.truncf %620 : vector<8x128xf32> to vector<8x128xbf16>
    %c0_264 = arith.constant 0 : index
    %c0_265 = arith.constant 0 : index
    %626 = vector.load %arg5[%c0_264, %c0_265] : memref<128x512xbf16, #tpu.memory_space<vmem>>, vector<128x512xbf16>
    %cst_266 = arith.constant dense<0.000000e+00> : vector<8x512xf32>
    %627 = tpu.matmul %625, %626, %cst_266 {dimension_numbers = #tpu.dot_dimension_numbers<[1], [0], [0], [1], [0, 0, 1, 1], [], []>} : vector<8x128xbf16>, vector<128x512xbf16>, vector<8x512xf32> -> vector<8x512xf32>
    %628 = arith.addf %624, %627 : vector<8x512xf32>
    %629 = vector.extract_strided_slice %628 {offsets = [0, 0], sizes = [8, 128], strides = [1, 1]} : vector<8x512xf32> to vector<8x128xf32>
    %cst_267 = arith.constant 5.000000e-01 : f32
    %630 = vector.broadcast %cst_267 : f32 to vector<8x128xf32>
    %631 = arith.mulf %630, %629 : vector<8x128xf32>
    %632 = math.tanh %631 : vector<8x128xf32>
    %cst_268 = arith.constant 1.000000e+00 : f32
    %633 = vector.broadcast %cst_268 : f32 to vector<8x128xf32>
    %634 = arith.addf %632, %633 : vector<8x128xf32>
    %cst_269 = arith.constant 5.000000e-01 : f32
    %635 = vector.broadcast %cst_269 : f32 to vector<8x128xf32>
    %636 = arith.mulf %635, %634 : vector<8x128xf32>
    %637 = vector.extract_strided_slice %628 {offsets = [0, 128], sizes = [8, 128], strides = [1, 1]} : vector<8x512xf32> to vector<8x128xf32>
    %cst_270 = arith.constant 5.000000e-01 : f32
    %638 = vector.broadcast %cst_270 : f32 to vector<8x128xf32>
    %639 = arith.mulf %638, %637 : vector<8x128xf32>
    %640 = math.tanh %639 : vector<8x128xf32>
    %cst_271 = arith.constant 1.000000e+00 : f32
    %641 = vector.broadcast %cst_271 : f32 to vector<8x128xf32>
    %642 = arith.addf %640, %641 : vector<8x128xf32>
    %cst_272 = arith.constant 5.000000e-01 : f32
    %643 = vector.broadcast %cst_272 : f32 to vector<8x128xf32>
    %644 = arith.mulf %643, %642 : vector<8x128xf32>
    %645 = vector.extract_strided_slice %628 {offsets = [0, 256], sizes = [8, 128], strides = [1, 1]} : vector<8x512xf32> to vector<8x128xf32>
    %646 = math.tanh %645 : vector<8x128xf32>
    %647 = vector.extract_strided_slice %628 {offsets = [0, 384], sizes = [8, 128], strides = [1, 1]} : vector<8x512xf32> to vector<8x128xf32>
    %cst_273 = arith.constant 5.000000e-01 : f32
    %648 = vector.broadcast %cst_273 : f32 to vector<8x128xf32>
    %649 = arith.mulf %648, %647 : vector<8x128xf32>
    %650 = math.tanh %649 : vector<8x128xf32>
    %cst_274 = arith.constant 1.000000e+00 : f32
    %651 = vector.broadcast %cst_274 : f32 to vector<8x128xf32>
    %652 = arith.addf %650, %651 : vector<8x128xf32>
    %cst_275 = arith.constant 5.000000e-01 : f32
    %653 = vector.broadcast %cst_275 : f32 to vector<8x128xf32>
    %654 = arith.mulf %653, %652 : vector<8x128xf32>
    %655 = arith.mulf %644, %618 : vector<8x128xf32>
    %656 = arith.mulf %636, %646 : vector<8x128xf32>
    %657 = arith.addf %655, %656 : vector<8x128xf32>
    %658 = math.tanh %657 : vector<8x128xf32>
    %659 = arith.mulf %654, %658 : vector<8x128xf32>
    %c7_i32_276 = arith.constant 7 : i32
    %c8_i32_277 = arith.constant 8 : i32
    %660 = arith.muli %c7_i32_276, %c8_i32_277 : i32
    %661 = tpu.assume_multiple %660, 8 : i32
    %662 = arith.index_cast %661 : i32 to index
    %c0_278 = arith.constant 0 : index
    %663 = vector.load %arg11[%662, %c0_278] : memref<64x512xf32, #tpu.memory_space<vmem>>, vector<8x512xf32>
    %664 = arith.truncf %659 : vector<8x128xf32> to vector<8x128xbf16>
    %c0_279 = arith.constant 0 : index
    %c0_280 = arith.constant 0 : index
    %665 = vector.load %arg5[%c0_279, %c0_280] : memref<128x512xbf16, #tpu.memory_space<vmem>>, vector<128x512xbf16>
    %cst_281 = arith.constant dense<0.000000e+00> : vector<8x512xf32>
    %666 = tpu.matmul %664, %665, %cst_281 {dimension_numbers = #tpu.dot_dimension_numbers<[1], [0], [0], [1], [0, 0, 1, 1], [], []>} : vector<8x128xbf16>, vector<128x512xbf16>, vector<8x512xf32> -> vector<8x512xf32>
    %667 = arith.addf %663, %666 : vector<8x512xf32>
    %668 = vector.extract_strided_slice %667 {offsets = [0, 0], sizes = [8, 128], strides = [1, 1]} : vector<8x512xf32> to vector<8x128xf32>
    %cst_282 = arith.constant 5.000000e-01 : f32
    %669 = vector.broadcast %cst_282 : f32 to vector<8x128xf32>
    %670 = arith.mulf %669, %668 : vector<8x128xf32>
    %671 = math.tanh %670 : vector<8x128xf32>
    %cst_283 = arith.constant 1.000000e+00 : f32
    %672 = vector.broadcast %cst_283 : f32 to vector<8x128xf32>
    %673 = arith.addf %671, %672 : vector<8x128xf32>
    %cst_284 = arith.constant 5.000000e-01 : f32
    %674 = vector.broadcast %cst_284 : f32 to vector<8x128xf32>
    %675 = arith.mulf %674, %673 : vector<8x128xf32>
    %676 = vector.extract_strided_slice %667 {offsets = [0, 128], sizes = [8, 128], strides = [1, 1]} : vector<8x512xf32> to vector<8x128xf32>
    %cst_285 = arith.constant 5.000000e-01 : f32
    %677 = vector.broadcast %cst_285 : f32 to vector<8x128xf32>
    %678 = arith.mulf %677, %676 : vector<8x128xf32>
    %679 = math.tanh %678 : vector<8x128xf32>
    %cst_286 = arith.constant 1.000000e+00 : f32
    %680 = vector.broadcast %cst_286 : f32 to vector<8x128xf32>
    %681 = arith.addf %679, %680 : vector<8x128xf32>
    %cst_287 = arith.constant 5.000000e-01 : f32
    %682 = vector.broadcast %cst_287 : f32 to vector<8x128xf32>
    %683 = arith.mulf %682, %681 : vector<8x128xf32>
    %684 = vector.extract_strided_slice %667 {offsets = [0, 256], sizes = [8, 128], strides = [1, 1]} : vector<8x512xf32> to vector<8x128xf32>
    %685 = math.tanh %684 : vector<8x128xf32>
    %686 = vector.extract_strided_slice %667 {offsets = [0, 384], sizes = [8, 128], strides = [1, 1]} : vector<8x512xf32> to vector<8x128xf32>
    %cst_288 = arith.constant 5.000000e-01 : f32
    %687 = vector.broadcast %cst_288 : f32 to vector<8x128xf32>
    %688 = arith.mulf %687, %686 : vector<8x128xf32>
    %689 = math.tanh %688 : vector<8x128xf32>
    %cst_289 = arith.constant 1.000000e+00 : f32
    %690 = vector.broadcast %cst_289 : f32 to vector<8x128xf32>
    %691 = arith.addf %689, %690 : vector<8x128xf32>
    %cst_290 = arith.constant 5.000000e-01 : f32
    %692 = vector.broadcast %cst_290 : f32 to vector<8x128xf32>
    %693 = arith.mulf %692, %691 : vector<8x128xf32>
    %694 = arith.mulf %683, %657 : vector<8x128xf32>
    %695 = arith.mulf %675, %685 : vector<8x128xf32>
    %696 = arith.addf %694, %695 : vector<8x128xf32>
    %697 = math.tanh %696 : vector<8x128xf32>
    %698 = arith.mulf %693, %697 : vector<8x128xf32>
    %c8_i32_291 = arith.constant 8 : i32
    %c0_292 = arith.constant 0 : index
    %c0_293 = arith.constant 0 : index
    %699 = vector.load %arg7[%c0_292, %c0_293] : memref<1x128xf32, #tpu.memory_space<vmem>>, vector<1x128xf32>
    %700 = vector.broadcast %699 : vector<1x128xf32> to vector<8x128xf32>
    %701 = arith.mulf %698, %700 : vector<8x128xf32>
    %cst_294 = arith.constant dense<0.000000e+00> : vector<8xf32>
    %702 = vector.multi_reduction <add>, %701, %cst_294 [1] : vector<8x128xf32> to vector<8xf32>
    %703 = vector.shape_cast %702 : vector<8xf32> to vector<8x1xf32>
    %c0_295 = arith.constant 0 : index
    %c0_296 = arith.constant 0 : index
    %704 = vector.load %arg8[%c0_295, %c0_296] : memref<1x1xf32, #tpu.memory_space<vmem>>, vector<1x1xf32>
    %705 = vector.broadcast %704 : vector<1x1xf32> to vector<8x1xf32>
    %706 = arith.addf %703, %705 : vector<8x1xf32>
    %707 = arith.negf %706 : vector<8x1xf32>
    %708 = math.exp %707 : vector<8x1xf32>
    %cst_297 = arith.constant 1.000000e+00 : f32
    %709 = vector.broadcast %cst_297 : f32 to vector<8x1xf32>
    %710 = arith.addf %709, %708 : vector<8x1xf32>
    %711 = arith.divf %709, %710 : vector<8x1xf32>
    %c0_298 = arith.constant 0 : index
    %c0_299 = arith.constant 0 : index
    %712 = vector.load %arg9[%c0_298, %c0_299] : memref<8x1xf32, #tpu.memory_space<vmem>>, vector<8x1xf32>
    tpu.vector_store %arg9[%c0_298, %c0_299], %711 {strides = array<i32>} : memref<8x1xf32, #tpu.memory_space<vmem>>, vector<8x1xf32>,
    return
  }
}

</mosaic_0001>

<bundles_post_ra>
// kernel: tpu_custom_call.1
= control target key start
LH: loop header
LB: loop body
LE: loop exit
PB: predicated region body
PF: predicated region fallthrough
CT: control target
= control target key end

     0   :  { %s9213_s0 = inlined_call_operand.vmem [shape: bf16[64,16], index: 0, kind: input, shape index: {}]   ;;  %s9214_s1 = inlined_call_operand.vmem [shape: bf16[16,512], index: 1, kind: input, shape index: {}]   ;;  %s9215_s2 = inlined_call_operand.hbm [shape: bf16[128,512], index: 2, kind: input, shape index: {}]   ;;  %s9216_s3 = inlined_call_operand.vmem [shape: f32[1,512], index: 3, kind: input, shape index: {}]   ;;  %s9217_s4 = inlined_call_operand.hbm [shape: bf16[128,512], index: 4, kind: input, shape index: {}]   ;;  %s9218_s5 = inlined_call_operand.hbm [shape: bf16[128,512], index: 5, kind: input, shape index: {}]   ;;  %s9219_s6 = inlined_call_operand.vmem [shape: f32[1,512], index: 6, kind: input, shape index: {}]   ;;  %s9220_s7 = inlined_call_operand.vmem [shape: f32[1,128], index: 7, kind: input, shape index: {}]   ;;  %s9221_s8 = inlined_call_operand.<no memory space> [shape: f32[1,1], index: 8, kind: input, shape index: {}]   ;;  %s9222_s9 = inlined_call_operand.vmem [shape: f32[8,1], index: 9, kind: output, shape index: {}]  }
   0x1   :  { %v14_v0 = vstv %s9221_s8 }
   0x2   :  { %15 = vst [vmem:[#allocation4] sm:$0x1] %v14_v0 }
   0x3   :  { %16 = vsyncpa [#allocation6], 0 }
   0x4   :  { %17 = vsyncpa [#allocation8], 0  ;;  %s7565_s11 = smov [#allocation7]   ;;  %s7566_s13 = smov [#allocation5]  }
   0x5   :  { %s41_s12 = sshll.u32 %s7565_s11, 4  ;;  %s27_s14 = sshll.u32 %s7566_s13, 4  ;;  %s42_s12 = int_to_ptr.vmem [resolvable:$true] %s41_s12  ;;  %s7624_s14 = int_to_ptr.vmem [resolvable:$true] %s27_s14 }
   0x6   :  { %s7495_s17 = scalar_lea.hbm %s9217_s4, 4096 }
   0x7   :  { %p7496_p0 = scmp.ne.s32.totalorder %s9217_s4, %s7495_s17  ;;  %p7499_p1 = scmp.lt.u32.totalorder %s7495_s17, %s9217_s4 }
   0x9   :  { %p7501_p2 = pnand %p7499_p1, %p7496_p0 }
   0xb   :  { %7504 = shalt.err (!%p7501_p2)
}
   0xc   :  { %s7505_s21 = scalar_lea.vmem %s42_s12, 4096  ;;  %p7510_p4 = scmp.lt.s32.totalorder %s42_s12, %s42_s12 }
   0xd   :  { %p7506_p3 = scmp.ne.s32.totalorder %s42_s12, %s7505_s21  ;;  %p7511_p5 = scmp.lt.s32.totalorder %s7505_s21, %s7505_s21 }
   0xf   :  { %p7512_p6 = por %p7511_p5, %p7510_p4 }
  0x11   :  { %p7513_p7 = pnand %p7512_p6, %p7506_p3 }
  0x13   :  { %7516 = shalt.err (!%p7513_p7)
}
  0x14   :  { %s7567_s22 = smov 256   ;;  %s7568_s23 = smov 16  }
  0x15   :  { %47 = dma.hbm_to_vmem [thread:$0]  %s9217_s4, 4096, %s42_s12, [#allocation8], %s7567_s22, %s7567_s22, %s7568_s23  }
  0x16   :  { %s7517_s28 = scalar_lea.hbm %s9215_s2, 4096 }
  0x17   :  { %p7518_p8 = scmp.ne.s32.totalorder %s9215_s2, %s7517_s28  ;;  %p7521_p9 = scmp.lt.u32.totalorder %s7517_s28, %s9215_s2 }
  0x19   :  { %p7523_p10 = pnand %p7521_p9, %p7518_p8 }
  0x1b   :  { %7526 = shalt.err (!%p7523_p10)
}
  0x1c   :  { %s7527_s13 = scalar_lea.vmem %s7624_s14, 4096  ;;  %p7532_p12 = scmp.lt.s32.totalorder %s7624_s14, %s7624_s14 }
  0x1d   :  { %p7528_p11 = scmp.ne.s32.totalorder %s7624_s14, %s7527_s13  ;;  %p7533_p13 = scmp.lt.s32.totalorder %s7527_s13, %s7527_s13 }
  0x1f   :  { %p7534_p0 = por %p7533_p13, %p7532_p12 }
  0x21   :  { %p7535_p1 = pnand %p7534_p0, %p7528_p11 }
  0x23   :  { %7538 = shalt.err (!%p7535_p1)
}
  0x24   :  { %33 = dma.hbm_to_vmem [thread:$0]  %s9215_s2, 4096, %s7624_s14, [#allocation6], %s7567_s22, %s7567_s22, %s7568_s23  }
  0x25   :  { %s7569_s15 = smov [#allocation9]   ;;  %s7539_s19 = scalar_lea.hbm %s9218_s5, 4096 }
  0x26   :  { %s53_s16 = sshll.u32 %s7569_s15, 4  ;;  %p7540_p2 = scmp.ne.s32.totalorder %s9218_s5, %s7539_s19  ;;  %s54_s16 = int_to_ptr.vmem [resolvable:$true] %s53_s16 }
  0x27   :  { %p7543_p3 = scmp.lt.u32.totalorder %s7539_s19, %s9218_s5 }
  0x29   :  { %p7545_p4 = pnand %p7543_p3, %p7540_p2 }
  0x2b   :  { %7548 = shalt.err (!%p7545_p4)
}
  0x2c   :  { %s7549_s25 = scalar_lea.vmem %s54_s16, 4096  ;;  %p7554_p6 = scmp.lt.s32.totalorder %s54_s16, %s54_s16 }
  0x2d   :  { %p7550_p5 = scmp.ne.s32.totalorder %s54_s16, %s7549_s25  ;;  %p7555_p7 = scmp.lt.s32.totalorder %s7549_s25, %s7549_s25 }
  0x2f   :  { %p7556_p8 = por %p7555_p7, %p7554_p6 }
  0x31   :  { %p7557_p9 = pnand %p7556_p8, %p7550_p5 }
  0x33   :  { %7560 = shalt.err (!%p7557_p9)
}
  0x34   :  { %59 = dma.hbm_to_vmem [thread:$0]  %s9218_s5, 4096, %s54_s16, [#allocation8], %s7567_s22, %s7567_s22, %s7568_s23  }
  0x35   :  { %7561 = dma.done.wait [#allocation6], 4096  }
  0x36   :  { %7562 = vsyncadd [#allocation6], 4294963200 }
  0x37   :  { %7563 = dma.done.wait [#allocation8], 8192  }
  0x38   :  { %7564 = vsyncadd [#allocation8], 4294959104  ;;  %v9223_v1 = vmov 0   ;;  %v6963_v2 = vld [vmem:[%s9214_s1 + $0x4] ss:$16 sps:$4 sm:$0xff]   ;;  %vm150_vm0 = vcmask 130048  }
  0x39   :  { %195 = vmatprep.mubr.bf16.mxu0 %v9223_v1  ;;  %268 = vmatprep.mubr.bf16.mxu1 %v9223_v1  ;;  %v6965_v3 = vld [vmem:[%s9214_s1 + $0xc] ss:$16 sps:$4 sm:$0xff]   ;;  %v6967_v4 = vld [vmem:[%s9214_s1] ss:$16 sps:$4 sm:$0xff]   ;;  %v6968_v5 = vld [vmem:[%s9214_s1 + $0x8] ss:$16 sps:$4 sm:$0xff]  }
  0x3a   :  { %163 = vmatprep.subr.bf16.mxu0 %v6963_v2  ;;  %236 = vmatprep.subr.bf16.mxu1 %v6965_v3  ;;  %v6969_v6 = vld [vmem:[%s9213_s0] sm:$0xff]   ;;  %v7697_v9 = vld [vmem:[#allocation5 + $0x8] ss:$16 sps:$4 sm:$0xff]   ;;  %v6995_v26 = vld [vmem:[%s9213_s0 + $0x10] sm:$0xff]   ;;  %vm6276_vm1 = vcmask 7168  }
  0x3b   :  { %164 = vmatpush1.bf16.msra.mxu0 %v6967_v4  ;;  %237 = vmatpush1.bf16.msra.mxu1 %v6968_v5  ;;  %v7693_v7 = vld [vmem:[#allocation5] ss:$16 sps:$4 sm:$0xff]   ;;  %v7695_v8 = vld [vmem:[#allocation5 + $0x4] ss:$16 sps:$4 sm:$0xff]   ;;  %v7700_v10 = vld [vmem:[#allocation5 + $0xc] ss:$16 sps:$4 sm:$0xff]  }
  0x3c   :  { %540 = vmatprep.subr.bf16.mxu0 %v7695_v8  ;;  %v7704_v11 = vld [vmem:[#allocation5 + $0x24] ss:$16 sps:$4 sm:$0xff]   ;;  %581 = vmatprep.subr.bf16.mxu1 %v7700_v10  ;;  %v7708_v12 = vld [vmem:[#allocation5 + $0x20] ss:$16 sps:$4 sm:$0xff]   ;;  %v7710_v13 = vld [vmem:[#allocation5 + $0x2c] ss:$16 sps:$4 sm:$0xff]  }
  0x3d   :  { %v7714_v14 = vld [vmem:[#allocation5 + $0x28] ss:$16 sps:$4 sm:$0xff]   ;;  %v7722_v16 = vld [vmem:[#allocation5 + $0x44] ss:$16 sps:$4 sm:$0xff]   ;;  %v7725_v17 = vld [vmem:[#allocation5 + $0x40] ss:$16 sps:$4 sm:$0xff]  }
  0x3e   :  { %6306 = vmatmul.mubr.msk.bf16.vlgmr.msra.gmra.mrb[0].mxu0 %vm150_vm0, %v6969_v6  ;;  %6310 = vmatmul.mubr.msk.bf16.vlgmr.msra.gmra.mrb[0].mxu1 %vm150_vm0, %v6969_v6  ;;  %v6982_v15 = vld [vmem:[%s9213_s0 + $0x8] sm:$0xff]   ;;  %v7741_v22 = vld [vmem:[#allocation5 + $0x60] ss:$16 sps:$4 sm:$0xff]   ;;  %v7008_v33 = vld [vmem:[%s9213_s0 + $0x18] sm:$0xff]  }
  0x3f   :  { %541 = vmatpush1.bf16.msra.mxu0 %v7693_v7  ;;  %582 = vmatpush1.bf16.msra.mxu1 %v7697_v9  ;;  %v7727_v18 = vld [vmem:[#allocation5 + $0x4c] ss:$16 sps:$4 sm:$0xff]   ;;  %v7731_v19 = vld [vmem:[#allocation5 + $0x48] ss:$16 sps:$4 sm:$0xff]   ;;  %v7733_v20 = vld [vmem:[#allocation5 + $0x64] ss:$16 sps:$4 sm:$0xff]  }
  0x40   :  { %542 = vmatprep.subr.bf16.mxu0 %v7704_v11  ;;  %583 = vmatprep.subr.bf16.mxu1 %v7710_v13  ;;  %v7738_v21 = vld [vmem:[#allocation5 + $0x6c] ss:$16 sps:$4 sm:$0xff]   ;;  %v7746_v23 = vld [vmem:[#allocation5 + $0x68] ss:$16 sps:$4 sm:$0xff]   ;;  %v7748_v24 = vld [vmem:[#allocation5 + $0x84] ss:$16 sps:$4 sm:$0xff]  }
  0x41   :  { %205 = vmatprep.mubr.bf16.mxu0 %v9223_v1  ;;  %278 = vmatprep.mubr.bf16.mxu1 %v9223_v1  ;;  %v7752_v25 = vld [vmem:[#allocation5 + $0x8c] ss:$16 sps:$4 sm:$0xff]   ;;  %v7758_v27 = vld [vmem:[#allocation5 + $0x80] ss:$16 sps:$4 sm:$0xff]   ;;  %v7762_v28 = vld [vmem:[#allocation5 + $0x88] ss:$16 sps:$4 sm:$0xff]  }
  0x42   :  { %v7764_v29 = vld [vmem:[#allocation5 + $0xa4] ss:$16 sps:$4 sm:$0xff]   ;;  %v7767_v30 = vld [vmem:[#allocation5 + $0xac] ss:$16 sps:$4 sm:$0xff]   ;;  %v7771_v31 = vld [vmem:[#allocation5 + $0xa0] ss:$16 sps:$4 sm:$0xff]  }
  0x43   :  { %543 = vmatpush1.bf16.msra.mxu0 %v7708_v12  ;;  %584 = vmatpush1.bf16.msra.mxu1 %v7714_v14  ;;  %v7774_v32 = vld [vmem:[#allocation5 + $0xa8] ss:$16 sps:$4 sm:$0xff]   ;;  %v7782_v34 = vld [vmem:[#allocation5 + $0xc4] ss:$16 sps:$4 sm:$0xff]   ;;  %v7786_v35 = vld [vmem:[#allocation5 + $0xc0] ss:$16 sps:$4 sm:$0xff]  }
  0x44   :  { %544 = vmatprep.subr.bf16.mxu0 %v7722_v16  ;;  %585 = vmatprep.subr.bf16.mxu1 %v7727_v18  ;;  %v7788_v36 = vld [vmem:[#allocation5 + $0xcc] ss:$16 sps:$4 sm:$0xff]   ;;  %v7790_v37 = vld [vmem:[#allocation5 + $0xc8] ss:$16 sps:$4 sm:$0xff]   ;;  %v7792_v38 = vld [vmem:[#allocation5 + $0xe4] ss:$16 sps:$4 sm:$0xff]  }
  0x45   :  { %v7795_v39 = vld [vmem:[#allocation5 + $0xec] ss:$16 sps:$4 sm:$0xff]   ;;  %v7800_v40 = vld [vmem:[#allocation5 + $0xe0] ss:$16 sps:$4 sm:$0xff]   ;;  %v7804_v41 = vld [vmem:[#allocation5 + $0xe8] ss:$16 sps:$4 sm:$0xff]  }
  0x46   :  { %6307 = vmatmul.mubr.msk.bf16.gmra.mrb[4].mxu0 %vm150_vm0, %v6982_v15  ;;  %6311 = vmatmul.mubr.msk.bf16.gmra.mrb[4].mxu1 %vm150_vm0, %v6982_v15  ;;  %v7818_v42 = vld [vmem:[#allocation7 + $0x4] ss:$16 sps:$4 sm:$0xff]   ;;  %v7820_v43 = vld [vmem:[#allocation7 + $0xc] ss:$16 sps:$4 sm:$0xff]   ;;  %v7822_v44 = vld [vmem:[#allocation7] ss:$16 sps:$4 sm:$0xff]  }
  0x47   :  { %545 = vmatpush1.bf16.msra.mxu0 %v7725_v17  ;;  %215 = vmatprep.mubr.bf16.mxu0 %v9223_v1  ;;  %v7824_v45 = vld [vmem:[#allocation7 + $0x8] ss:$16 sps:$4 sm:$0xff]   ;;  %v7830_v46 = vld [vmem:[#allocation7 + $0x24] ss:$16 sps:$4 sm:$0xff]   ;;  %v7832_v47 = vld [vmem:[#allocation7 + $0x2c] ss:$16 sps:$4 sm:$0xff]  }
  0x48   :  { %586 = vmatpush1.bf16.msra.mxu1 %v7731_v19  ;;  %546 = vmatprep.subr.bf16.mxu0 %v7733_v20  ;;  %v7834_v48 = vld [vmem:[#allocation7 + $0x20] ss:$16 sps:$4 sm:$0xff]   ;;  %v7836_v49 = vld [vmem:[#allocation7 + $0x28] ss:$16 sps:$4 sm:$0xff]   ;;  %v7842_v50 = vld [vmem:[#allocation7 + $0x44] ss:$16 sps:$4 sm:$0xff]  }
  0x49   :  { %587 = vmatprep.subr.bf16.mxu1 %v7738_v21  ;;  %288 = vmatprep.mubr.bf16.mxu1 %v9223_v1  ;;  %v7844_v51 = vld [vmem:[#allocation7 + $0x4c] ss:$16 sps:$4 sm:$0xff]   ;;  %v7846_v52 = vld [vmem:[#allocation7 + $0x40] ss:$16 sps:$4 sm:$0xff]   ;;  %v7848_v53 = vld [vmem:[#allocation7 + $0x48] ss:$16 sps:$4 sm:$0xff]  }
  0x4a   :  { %9354 = vst [vmem:[#allocation12_spill] sm:$0xff] %v7844_v51  ;;  %9355 = vst [vmem:[#allocation13_spill] sm:$0xff] %v7846_v52  ;;  %v7854_v54 = vld [vmem:[#allocation7 + $0x64] ss:$16 sps:$4 sm:$0xff]   ;;  %v7856_v55 = vld [vmem:[#allocation7 + $0x6c] ss:$16 sps:$4 sm:$0xff]  }
  0x4b   :  { %547 = vmatpush1.bf16.msra.mxu0 %v7741_v22  ;;  %9356 = vst [vmem:[#allocation14_spill] sm:$0xff] %v7848_v53  ;;  %9357 = vst [vmem:[#allocation15_spill] sm:$0xff] %v7854_v54  ;;  %v7858_v56 = vld [vmem:[#allocation7 + $0x60] ss:$16 sps:$4 sm:$0xff]   ;;  %v7860_v57 = vld [vmem:[#allocation7 + $0x68] ss:$16 sps:$4 sm:$0xff]  }
  0x4c   :  { %588 = vmatpush1.bf16.msra.mxu1 %v7746_v23  ;;  %548 = vmatprep.subr.bf16.mxu0 %v7748_v24  ;;  %9358 = vst [vmem:[#allocation16_spill] sm:$0xff] %v7856_v55  ;;  %9359 = vst [vmem:[#allocation17_spill] sm:$0xff] %v7858_v56  ;;  %v7866_v58 = vld [vmem:[#allocation7 + $0x84] ss:$16 sps:$4 sm:$0xff]   ;;  %v7868_v59 = vld [vmem:[#allocation7 + $0x8c] ss:$16 sps:$4 sm:$0xff]  }
  0x4d   :  { %589 = vmatprep.subr.bf16.mxu1 %v7752_v25  ;;  %9360 = vst [vmem:[#allocation18_spill] sm:$0xff] %v7860_v57  ;;  %9361 = vst [vmem:[#allocation19_spill] sm:$0xff] %v7866_v58  ;;  %v7870_v60 = vld [vmem:[#allocation7 + $0x80] ss:$16 sps:$4 sm:$0xff]   ;;  %v7872_v61 = vld [vmem:[#allocation7 + $0x88] ss:$16 sps:$4 sm:$0xff]  }
  0x4e   :  { %6308 = vmatmul.mubr.msk.bf16.gmra.mrb[8].mxu0 %vm150_vm0, %v6995_v26  ;;  %6312 = vmatmul.mubr.msk.bf16.gmra.mrb[8].mxu1 %vm150_vm0, %v6995_v26  ;;  %9362 = vst [vmem:[#allocation20_spill] sm:$0xff] %v7868_v59  ;;  %9363 = vst [vmem:[#allocation21_spill] sm:$0xff] %v7870_v60  ;;  %v7878_v62 = vld [vmem:[#allocation7 + $0xa4] ss:$16 sps:$4 sm:$0xff]   ;;  %v7880_v63 = vld [vmem:[#allocation7 + $0xac] ss:$16 sps:$4 sm:$0xff]  }
  0x4f   :  { %549 = vmatpush1.bf16.msra.mxu0 %v7758_v27  ;;  %225 = vmatprep.mubr.bf16.mxu0 %v9223_v1  ;;  %9364 = vst [vmem:[#allocation22_spill] sm:$0xff] %v7872_v61  ;;  %9365 = vst [vmem:[#allocation23_spill] sm:$0xff] %v7878_v62  ;;  %v7882_v0 = vld [vmem:[#allocation7 + $0xa0] ss:$16 sps:$4 sm:$0xff]   ;;  %v7884_v2 = vld [vmem:[#allocation7 + $0xa8] ss:$16 sps:$4 sm:$0xff]  }
  0x50   :  { %590 = vmatpush1.bf16.msra.mxu1 %v7762_v28  ;;  %550 = vmatprep.subr.bf16.mxu0 %v7764_v29  ;;  %9366 = vst [vmem:[#allocation24_spill] sm:$0xff] %v7880_v63  ;;  %9367 = vst [vmem:[#allocation25_spill] sm:$0xff] %v7882_v0  ;;  %v7890_v3 = vld [vmem:[#allocation7 + $0xc4] ss:$16 sps:$4 sm:$0xff]   ;;  %v7892_v4 = vld [vmem:[#allocation7 + $0xcc] ss:$16 sps:$4 sm:$0xff]  }
  0x51   :  { %591 = vmatprep.subr.bf16.mxu1 %v7767_v30  ;;  %298 = vmatprep.mubr.bf16.mxu1 %v9223_v1  ;;  %9368 = vst [vmem:[#allocation26_spill] sm:$0xff] %v7884_v2  ;;  %9369 = vst [vmem:[#allocation27_spill] sm:$0xff] %v7890_v3  ;;  %v7894_v5 = vld [vmem:[#allocation7 + $0xc0] ss:$16 sps:$4 sm:$0xff]   ;;  %v7896_v6 = vld [vmem:[#allocation7 + $0xc8] ss:$16 sps:$4 sm:$0xff]  }
  0x52   :  { %9370 = vst [vmem:[#allocation28_spill] sm:$0xff] %v7892_v4  ;;  %9371 = vst [vmem:[#allocation29_spill] sm:$0xff] %v7894_v5  ;;  %v7902_v15 = vld [vmem:[#allocation7 + $0xe4] ss:$16 sps:$4 sm:$0xff]   ;;  %v7904_v26 = vld [vmem:[#allocation7 + $0xec] ss:$16 sps:$4 sm:$0xff]  }
  0x53   :  { %551 = vmatpush1.bf16.msra.mxu0 %v7771_v31  ;;  %9372 = vst [vmem:[#allocation30_spill] sm:$0xff] %v7896_v6  ;;  %9373 = vst [vmem:[#allocation31_spill] sm:$0xff] %v7902_v15 }
  0x54   :  { %592 = vmatpush1.bf16.msra.mxu1 %v7774_v32  ;;  %552 = vmatprep.subr.bf16.mxu0 %v7782_v34  ;;  %9374 = vst [vmem:[#allocation32_spill] sm:$0xff] %v7904_v26 }
  0x55   :  { %593 = vmatprep.subr.bf16.mxu1 %v7788_v36 }
  0x56   :  { %6309 = vmatmul.mubr.msk.bf16.gmra.mrb[12].mxu0 %vm150_vm0, %v7008_v33  ;;  %6313 = vmatmul.mubr.msk.bf16.gmra.mrb[12].mxu1 %vm150_vm0, %v7008_v33  ;;  %v7906_v33 = vld [vmem:[#allocation7 + $0xe0] ss:$16 sps:$4 sm:$0xff]  }
  0x57   :  { %553 = vmatpush1.bf16.msra.mxu0 %v7786_v35  ;;  %572 = vmatprep.mubr.bf16.mxu0 %v9223_v1  ;;  %9375 = vst [vmem:[#allocation33_spill] sm:$0xff] %v7906_v33 }
  0x58   :  { %594 = vmatpush1.bf16.msra.mxu1 %v7790_v37  ;;  %554 = vmatprep.subr.bf16.mxu0 %v7792_v38 }
  0x59   :  { %595 = vmatprep.subr.bf16.mxu1 %v7795_v39  ;;  %613 = vmatprep.mubr.bf16.mxu1 %v9223_v1 }
  0x5b   :  { %555 = vmatpush1.bf16.msra.mxu0 %v7800_v40 }
  0x5c   :  { %596 = vmatpush1.bf16.msra.mxu1 %v7804_v41  ;;  %859 = vmatprep.subr.bf16.mxu0 %v7818_v42 }
  0x5d   :  { %900 = vmatprep.subr.bf16.mxu1 %v7820_v43 }
  0x5e   :  { %573 = vmatmul.mubr.bf16.vlgmr.msra.gmra.mrb[16].mxu0 %v9223_v1 }
  0x5f   :  { %614 = vmatmul.mubr.bf16.vlgmr.msra.gmra.mrb[16].mxu1 %v9223_v1  ;;  %891 = vmatprep.mubr.bf16.mxu0 %v9223_v1 }
  0x60   :  { %932 = vmatprep.mubr.bf16.mxu1 %v9223_v1  ;;  %860 = vmatpush1.bf16.msra.mxu0 %v7822_v44  ;;  %v7908_v1 = vld [vmem:[#allocation7 + $0xe8] ss:$16 sps:$4 sm:$0xff]  }
  0x61   :  { %901 = vmatpush1.bf16.msra.mxu1 %v7824_v45  ;;  %861 = vmatprep.subr.bf16.mxu0 %v7830_v46  ;;  %9376 = vst [vmem:[#allocation34_spill] sm:$0xff] %v7908_v1 }
  0x62   :  { %902 = vmatprep.subr.bf16.mxu1 %v7832_v47 }
  0x64   :  { %862 = vmatpush1.bf16.msra.mxu0 %v7834_v48 }
  0x65   :  { %903 = vmatpush1.bf16.msra.mxu1 %v7836_v49  ;;  %863 = vmatprep.subr.bf16.mxu0 %v7842_v50 }
  0x66   :  { %904 = vmatprep.subr.bf16.mxu1 %v7844_v51 }
  0x68   :  { %864 = vmatpush1.bf16.msra.mxu0 %v7846_v52 }
  0x69   :  { %905 = vmatpush1.bf16.msra.mxu1 %v7848_v53  ;;  %865 = vmatprep.subr.bf16.mxu0 %v7854_v54 }
  0x6a   :  { %906 = vmatprep.subr.bf16.mxu1 %v7856_v55 }
  0x6c   :  { %866 = vmatpush1.bf16.msra.mxu0 %v7858_v56 }
  0x6d   :  { %907 = vmatpush1.bf16.msra.mxu1 %v7860_v57  ;;  %867 = vmatprep.subr.bf16.mxu0 %v7866_v58 }
  0x6e   :  { %908 = vmatprep.subr.bf16.mxu1 %v7868_v59 }
  0x70   :  { %868 = vmatpush1.bf16.msra.mxu0 %v7870_v60 }
  0x71   :  { %909 = vmatpush1.bf16.msra.mxu1 %v7872_v61  ;;  %869 = vmatprep.subr.bf16.mxu0 %v7878_v62 }
  0x72   :  { %910 = vmatprep.subr.bf16.mxu1 %v7880_v63 }
  0x74   :  { %870 = vmatpush1.bf16.msra.mxu0 %v7882_v0 }
  0x75   :  { %911 = vmatpush1.bf16.msra.mxu1 %v7884_v2  ;;  %871 = vmatprep.subr.bf16.mxu0 %v7890_v3 }
  0x76   :  { %912 = vmatprep.subr.bf16.mxu1 %v7892_v4 }
  0x78   :  { %872 = vmatpush1.bf16.msra.mxu0 %v7894_v5 }
  0x79   :  { %913 = vmatpush1.bf16.msra.mxu1 %v7896_v6  ;;  %873 = vmatprep.subr.bf16.mxu0 %v7902_v15  ;;  %v90_v6 = vlaneseq }
  0x7a   :  { %914 = vmatprep.subr.bf16.mxu1 %v7904_v26  ;;  %v88_v26 = vld [vmem:[%s9216_s3] sm:$0xf] }
  0x7b   :  { %v91_v5 = vshrl.u32 %v90_v6, 7 }
  0x7c   :  { %874 = vmatpush1.bf16.msra.mxu0 %v7906_v33 }
  0x7d   :  { %915 = vmatpush1.bf16.msra.mxu1 %v7908_v1  ;;  %1146 = vmatprep.subr.bf16.mxu0 %v7695_v8  ;;  %v7916_v4 = vsub.s32 2, %v91_v5  ;;  %v7918_v3 = vsub.s32 3, %v91_v5  ;;  %v7920_v2 = vsub.s32 0, %v91_v5  ;;  %v7925_v15 = vsub.s32 1, %v91_v5 }
  0x7e   :  { %1187 = vmatprep.subr.bf16.mxu1 %v7700_v10 }
  0x7f   :  { %9377 = vst [vmem:[#allocation35_spill] sm:$0xff] %v7916_v4  ;;  %9378 = vst [vmem:[#allocation36_spill] sm:$0xff] %v7918_v3  ;;  %v7928_v1 = vrot.slane %v88_v26, %v7916_v4  ;;  %v7935_v6 = vrot.slane %v88_v26, %v7918_v3  ;;  %v93_v33 = vrot.slane %v88_v26, %v7920_v2 }
  0x80   :  { %9379 = vst [vmem:[#allocation37_spill] sm:$0xff] %v7920_v2  ;;  %9380 = vst [vmem:[#allocation38_spill] sm:$0xff] %v7925_v15  ;;  %v97_v62 = vrot.slane %v88_v26, %v7925_v15 }
 0x111   :  { %v7930_v8 = vpop.f32.mrb[0].mxu0  ;;  %v7932_v10 = vpop.f32.mrb[0].mxu1 }
 0x112   :  { %v199_v0 = vpop.f32.mrb[1].mxu0  ;;  %v272_v63 = vpop.f32.mrb[1].mxu1 }
 0x113   :  { %v201_v61 = vpop.f32.mrb[2].mxu0  ;;  %v274_v60 = vpop.f32.mrb[2].mxu1 }
 0x114   :  { %v7939_v5 = vadd.f32 %v201_v61, %v93_v33  ;;  %v203_v59 = vpop.f32.mrb[3].mxu0  ;;  %v7942_v4 = vadd.f32 %v274_v60, %v7928_v1  ;;  %v276_v58 = vpop.f32.mrb[3].mxu1 }
 0x115   :  { %v7944_v57 = vadd.f32 %v203_v59, %v97_v62  ;;  %v7947_v3 = vadd.f32 %v276_v58, %v7935_v6 }
 0x116   :  { %9381 = vst [vmem:[#allocation39_spill] sm:$0xff] %v7939_v5  ;;  %9382 = vst [vmem:[#allocation40_spill] sm:$0xff] %v7942_v4 }
 0x117   :  { %9383 = vst [vmem:[#allocation41_spill] sm:$0xff] %v7944_v57  ;;  %9384 = vst [vmem:[#allocation42_spill] sm:$0xff] %v7947_v3 }
 0x119   :  { %v207_v56 = vpop.f32.mrb[4].mxu0  ;;  %v280_v2 = vpop.f32.mrb[4].mxu1 }
 0x11a   :  { %v7949_v55 = vadd.f32 %v207_v56, %v93_v33  ;;  %v209_v54 = vpop.f32.mrb[5].mxu0  ;;  %v7952_v26 = vadd.f32 %v280_v2, %v7928_v1  ;;  %v282_v61 = vpop.f32.mrb[5].mxu1 }
 0x11b   :  { %v7954_v15 = vadd.f32 %v209_v54, %v97_v62  ;;  %v211_v5 = vpop.f32.mrb[6].mxu0  ;;  %v7957_v60 = vadd.f32 %v282_v61, %v7935_v6  ;;  %v284_v59 = vpop.f32.mrb[6].mxu1 }
 0x11c   :  { %9385 = vst [vmem:[#allocation43_spill] sm:$0xff] %v7949_v55  ;;  %9386 = vst [vmem:[#allocation44_spill] sm:$0xff] %v7952_v26  ;;  %v7959_v57 = vadd.f32 %v211_v5, %v93_v33  ;;  %v213_v58 = vpop.f32.mrb[7].mxu0  ;;  %v7962_v3 = vadd.f32 %v284_v59, %v7928_v1  ;;  %v286_v56 = vpop.f32.mrb[7].mxu1 }
 0x11d   :  { %9387 = vst [vmem:[#allocation45_spill] sm:$0xff] %v7954_v15  ;;  %9388 = vst [vmem:[#allocation46_spill] sm:$0xff] %v7957_v60  ;;  %v7964_v55 = vadd.f32 %v213_v58, %v97_v62  ;;  %v7967_v2 = vadd.f32 %v286_v56, %v7935_v6 }
 0x11e   :  { %9389 = vst [vmem:[#allocation47_spill] sm:$0xff] %v7959_v57  ;;  %9390 = vst [vmem:[#allocation48_spill] sm:$0xff] %v7962_v3 }
 0x11f   :  { %9391 = vst [vmem:[#allocation49_spill] sm:$0xff] %v7964_v55  ;;  %9392 = vst [vmem:[#allocation50_spill] sm:$0xff] %v7967_v2 }
 0x121   :  { %v217_v26 = vpop.f32.mrb[8].mxu0  ;;  %v290_v54 = vpop.f32.mrb[8].mxu1 }
 0x122   :  { %v7969_v15 = vadd.f32 %v217_v26, %v93_v33  ;;  %v219_v4 = vpop.f32.mrb[9].mxu0  ;;  %v7972_v61 = vadd.f32 %v290_v54, %v7928_v1  ;;  %v292_v5 = vpop.f32.mrb[9].mxu1 }
 0x123   :  { %v7974_v57 = vadd.f32 %v219_v4, %v97_v62  ;;  %v221_v60 = vpop.f32.mrb[10].mxu0  ;;  %v7977_v59 = vadd.f32 %v292_v5, %v7935_v6  ;;  %v294_v58 = vpop.f32.mrb[10].mxu1 }
 0x124   :  { %9393 = vst [vmem:[#allocation51_spill] sm:$0xff] %v7969_v15  ;;  %9394 = vst [vmem:[#allocation52_spill] sm:$0xff] %v7972_v61  ;;  %v7979_v55 = vadd.f32 %v221_v60, %v93_v33  ;;  %v223_v56 = vpop.f32.mrb[11].mxu0  ;;  %v7982_v2 = vadd.f32 %v294_v58, %v7928_v1  ;;  %v296_v26 = vpop.f32.mrb[11].mxu1 }
 0x125   :  { %9395 = vst [vmem:[#allocation53_spill] sm:$0xff] %v7974_v57  ;;  %9396 = vst [vmem:[#allocation54_spill] sm:$0xff] %v7977_v59  ;;  %v7984_v15 = vadd.f32 %v223_v56, %v97_v62  ;;  %v7987_v54 = vadd.f32 %v296_v26, %v7935_v6 }
 0x126   :  { %9397 = vst [vmem:[#allocation55_spill] sm:$0xff] %v7979_v55  ;;  %9398 = vst [vmem:[#allocation56_spill] sm:$0xff] %v7982_v2 }
 0x127   :  { %9399 = vst [vmem:[#allocation57_spill] sm:$0xff] %v7984_v15  ;;  %9400 = vst [vmem:[#allocation58_spill] sm:$0xff] %v7987_v54 }
 0x129   :  { %v227_v61 = vpop.f32.mrb[12].mxu0  ;;  %v300_v4 = vpop.f32.mrb[12].mxu1 }
 0x12a   :  { %v7989_v57 = vadd.f32 %v227_v61, %v93_v33  ;;  %v229_v3 = vpop.f32.mrb[13].mxu0  ;;  %v7992_v5 = vadd.f32 %v300_v4, %v7928_v1  ;;  %v302_v60 = vpop.f32.mrb[13].mxu1 }
 0x12b   :  { %v7994_v55 = vadd.f32 %v229_v3, %v97_v62  ;;  %v231_v59 = vpop.f32.mrb[14].mxu0  ;;  %v7997_v58 = vadd.f32 %v302_v60, %v7935_v6  ;;  %v304_v56 = vpop.f32.mrb[14].mxu1  ;;  %v198_v3 = vadd.f32 %v7930_v8, %v93_v33  ;;  %v271_v60 = vadd.f32 %v7932_v10, %v7928_v1 }
 0x12c   :  { %9401 = vst [vmem:[#allocation59_spill] sm:$0xff] %v7989_v57  ;;  %9402 = vst [vmem:[#allocation60_spill] sm:$0xff] %v7992_v5  ;;  %v7999_v15 = vadd.f32 %v231_v59, %v93_v33  ;;  %v233_v26 = vpop.f32.mrb[15].mxu0  ;;  %v8002_v54 = vadd.f32 %v304_v56, %v7928_v1  ;;  %v306_v61 = vpop.f32.mrb[15].mxu1  ;;  %v273_v59 = vadd.f32 %v272_v63, %v7935_v6 }
 0x12d   :  { %9403 = vst [vmem:[#allocation61_spill] sm:$0xff] %v7994_v55  ;;  %9404 = vst [vmem:[#allocation62_spill] sm:$0xff] %v7997_v58  ;;  %v8004_v57 = vadd.f32 %v233_v26, %v97_v62  ;;  %v8007_v4 = vadd.f32 %v306_v61, %v7935_v6  ;;  %v200_v55 = vadd.f32 %v199_v0, %v97_v62 }
 0x12e   :  { %9405 = vst [vmem:[#allocation63_spill] sm:$0xff] %v7999_v15  ;;  %9406 = vst [vmem:[#allocation64_spill] sm:$0xff] %v8002_v54 }
 0x12f   :  { %9407 = vst [vmem:[#allocation65_spill] sm:$0xff] %v8004_v57  ;;  %9408 = vst [vmem:[#allocation66_spill] sm:$0xff] %v8007_v4 }
 0x131   :  { %v574_v58 = vpop.f32.mrb[16].mxu0 }
 0x132   :  { %v622_v15 = vadd.f32 %v574_v58, %v198_v3  ;;  %v615_v5 = vpop.f32.mrb[16].mxu1  ;;  %v576_v2 = vpop.f32.mrb[17].mxu0 }
 0x133   :  { %v624_v56 = vadd.f32 %v615_v5, %v271_v60  ;;  %v623_v54 = vadd.f32 %v576_v2, %v200_v55  ;;  %v617_v53 = vpop.f32.mrb[17].mxu1  ;;  %v578_v26 = vpop.f32.mrb[18].mxu0 }
 0x134   :  { %v626_v57 = vmul.f32 0.5, %v622_v15  ;;  %v625_v52 = vadd.f32 %v617_v53, %v273_v59  ;;  %v579_v61 = vpop.f32.mrb[19].mxu0  ;;  %v619_v4 = vpop.f32.mrb[18].mxu1 }
 0x135   :  { %v630_v51 = vmul.f32 0.5, %v623_v54  ;;  %v620_v33 = vpop.f32.mrb[19].mxu1  ;;  %v9409_v4 = vmov 0   ;;  %v9436_v61 = vld [vmem:[#allocation42_spill] sm:$0xff] }
 0x136   :  { %7309 = vtanh.f32 %v626_v57  ;;  %v635_v1 = vmul.f32 0.5, %v625_v52 }
 0x137   :  { %7311 = vtanh.f32 %v630_v51 }
 0x138   :  { %7313 = vtanh.f32 %v624_v56  ;;  %v9435_v56 = vld [vmem:[#allocation41_spill] sm:$0xff] }
 0x139   :  { %7315 = vtanh.f32 %v635_v1 }
 0x140   :  { %v7310_v62 = vpop.eup %7309 }
 0x141   :  { %v7312_v0 = vpop.eup %7311  ;;  %v628_v63 = vadd.f32 1.0, %v7310_v62 }
 0x142   :  { %v632_v8 = vadd.f32 1.0, %v7312_v0  ;;  %v7314_v6 = vpop.eup %7313 }
 0x143   :  { %v629_v10 = vmul.f32 0.5, %v628_v63  ;;  %v7316_v53 = vpop.eup %7315 }
 0x144   :  { %v633_v55 = vmul.f32 0.5, %v632_v8  ;;  %v637_v54 = vadd.f32 1.0, %v7316_v53 }
 0x145   :  { %v640_v2 = vmul.f32 %v7314_v6, %v629_v10 }
 0x146   :  { %v639_v5 = vmul.f32 0.0, %v633_v55  ;;  %v638_v57 = vmul.f32 0.5, %v637_v54 }
 0x148   :  { %v8013_v15 = vadd.f32 %v640_v2, %v639_v5 }
 0x14a   :  { %7317 = vtanh.f32 %v8013_v15 }
 0x154   :  { %v7318_v51 = vpop.eup %7317 }
 0x155   :  { %v643_v58 = vmul.f32 %v7318_v51, %v638_v57 }
 0x157   :  { %v644_v52 = vpack.c.bf16 %v643_v58, %v643_v58 }
 0x159   :  { %892 = vmatmul.mubr.bf16.vlgmr.msra.gmra.mrb[20].mxu0 %v644_v52  ;;  %933 = vmatmul.mubr.bf16.vlgmr.msra.gmra.mrb[20].mxu1 %v644_v52 }
 0x15a   :  { %1147 = vmatpush1.bf16.msra.mxu0 %v7693_v7  ;;  %1188 = vmatpush1.bf16.msra.mxu1 %v7697_v9  ;;  %v9410_v7 = vld [vmem:[#allocation12_spill] sm:$0xff]  ;;  %v9411_v9 = vld [vmem:[#allocation13_spill] sm:$0xff] }
 0x15b   :  { %1148 = vmatprep.subr.bf16.mxu0 %v7704_v11  ;;  %1189 = vmatprep.subr.bf16.mxu1 %v7710_v13  ;;  %v9412_v11 = vld [vmem:[#allocation14_spill] sm:$0xff]  ;;  %v9414_v13 = vld [vmem:[#allocation16_spill] sm:$0xff] }
 0x15c   :  { %1178 = vmatprep.mubr.bf16.mxu0 %v9409_v4  ;;  %1219 = vmatprep.mubr.bf16.mxu1 %v9409_v4 }
 0x15e   :  { %1149 = vmatpush1.bf16.msra.mxu0 %v7708_v12  ;;  %1190 = vmatpush1.bf16.msra.mxu1 %v7714_v14  ;;  %v9413_v12 = vld [vmem:[#allocation15_spill] sm:$0xff]  ;;  %v9415_v14 = vld [vmem:[#allocation17_spill] sm:$0xff] }
 0x15f   :  { %1150 = vmatprep.subr.bf16.mxu0 %v7722_v16  ;;  %1191 = vmatprep.subr.bf16.mxu1 %v7727_v18  ;;  %v9416_v16 = vld [vmem:[#allocation18_spill] sm:$0xff]  ;;  %v9418_v18 = vld [vmem:[#allocation20_spill] sm:$0xff] }
 0x162   :  { %1151 = vmatpush1.bf16.msra.mxu0 %v7725_v17  ;;  %1192 = vmatpush1.bf16.msra.mxu1 %v7731_v19  ;;  %v9417_v17 = vld [vmem:[#allocation19_spill] sm:$0xff]  ;;  %v9419_v19 = vld [vmem:[#allocation21_spill] sm:$0xff] }
 0x163   :  { %1152 = vmatprep.subr.bf16.mxu0 %v7733_v20  ;;  %1193 = vmatprep.subr.bf16.mxu1 %v7738_v21  ;;  %v9420_v20 = vld [vmem:[#allocation22_spill] sm:$0xff]  ;;  %v9421_v21 = vld [vmem:[#allocation23_spill] sm:$0xff] }
 0x166   :  { %1153 = vmatpush1.bf16.msra.mxu0 %v7741_v22  ;;  %1194 = vmatpush1.bf16.msra.mxu1 %v7746_v23  ;;  %v9422_v22 = vld [vmem:[#allocation24_spill] sm:$0xff]  ;;  %v9423_v23 = vld [vmem:[#allocation25_spill] sm:$0xff] }
 0x167   :  { %1154 = vmatprep.subr.bf16.mxu0 %v7748_v24  ;;  %1195 = vmatprep.subr.bf16.mxu1 %v7752_v25  ;;  %v9424_v24 = vld [vmem:[#allocation26_spill] sm:$0xff]  ;;  %v9425_v25 = vld [vmem:[#allocation27_spill] sm:$0xff] }
 0x16a   :  { %1155 = vmatpush1.bf16.msra.mxu0 %v7758_v27  ;;  %1196 = vmatpush1.bf16.msra.mxu1 %v7762_v28  ;;  %v9426_v27 = vld [vmem:[#allocation28_spill] sm:$0xff]  ;;  %v9427_v28 = vld [vmem:[#allocation29_spill] sm:$0xff] }
 0x16b   :  { %1156 = vmatprep.subr.bf16.mxu0 %v7764_v29  ;;  %1197 = vmatprep.subr.bf16.mxu1 %v7767_v30  ;;  %v9428_v29 = vld [vmem:[#allocation30_spill] sm:$0xff]  ;;  %v9429_v30 = vld [vmem:[#allocation31_spill] sm:$0xff] }
 0x16e   :  { %1157 = vmatpush1.bf16.msra.mxu0 %v7771_v31  ;;  %1198 = vmatpush1.bf16.msra.mxu1 %v7774_v32  ;;  %v9430_v31 = vld [vmem:[#allocation32_spill] sm:$0xff]  ;;  %v9431_v32 = vld [vmem:[#allocation33_spill] sm:$0xff] }
 0x16f   :  { %1158 = vmatprep.subr.bf16.mxu0 %v7782_v34  ;;  %1199 = vmatprep.subr.bf16.mxu1 %v7788_v36  ;;  %v9432_v34 = vld [vmem:[#allocation34_spill] sm:$0xff]  ;;  %v8084_v36 = vld [vmem:[#allocation5 + $0xc] ss:$16 sps:$4 sm:$0xff]  }
 0x172   :  { %1159 = vmatpush1.bf16.msra.mxu0 %v7786_v35  ;;  %1200 = vmatpush1.bf16.msra.mxu1 %v7790_v37  ;;  %v8082_v35 = vld [vmem:[#allocation5 + $0x4] ss:$16 sps:$4 sm:$0xff]  }
 0x173   :  { %1160 = vmatprep.subr.bf16.mxu0 %v7792_v38  ;;  %1201 = vmatprep.subr.bf16.mxu1 %v7795_v39  ;;  %v9433_v39 = vld [vmem:[#allocation39_spill] sm:$0xff] }
 0x176   :  { %1161 = vmatpush1.bf16.msra.mxu0 %v7800_v40  ;;  %1202 = vmatpush1.bf16.msra.mxu1 %v7804_v41  ;;  %v9434_v41 = vld [vmem:[#allocation40_spill] sm:$0xff] }
 0x177   :  { %1465 = vmatprep.subr.bf16.mxu0 %v7818_v42  ;;  %1506 = vmatprep.subr.bf16.mxu1 %v7820_v43 }
 0x179   :  { %1179 = vmatmul.mubr.bf16.vlgmr.msra.gmra.mrb[24].mxu0 %v644_v52  ;;  %1220 = vmatmul.mubr.bf16.vlgmr.msra.gmra.mrb[24].mxu1 %v644_v52 }
 0x17a   :  { %1466 = vmatpush1.bf16.msra.mxu0 %v7822_v44  ;;  %1507 = vmatpush1.bf16.msra.mxu1 %v7824_v45 }
 0x17b   :  { %1467 = vmatprep.subr.bf16.mxu0 %v7830_v46  ;;  %1508 = vmatprep.subr.bf16.mxu1 %v7832_v47 }
 0x17c   :  { %1497 = vmatprep.mubr.bf16.mxu0 %v9409_v4  ;;  %1538 = vmatprep.mubr.bf16.mxu1 %v9409_v4 }
 0x17e   :  { %1468 = vmatpush1.bf16.msra.mxu0 %v7834_v48  ;;  %1509 = vmatpush1.bf16.msra.mxu1 %v7836_v49 }
 0x17f   :  { %1469 = vmatprep.subr.bf16.mxu0 %v7842_v50  ;;  %1510 = vmatprep.subr.bf16.mxu1 %v9410_v7 }
 0x182   :  { %1470 = vmatpush1.bf16.msra.mxu0 %v9411_v9  ;;  %1511 = vmatpush1.bf16.msra.mxu1 %v9412_v11 }
 0x183   :  { %1471 = vmatprep.subr.bf16.mxu0 %v9413_v12  ;;  %1512 = vmatprep.subr.bf16.mxu1 %v9414_v13 }
 0x186   :  { %1472 = vmatpush1.bf16.msra.mxu0 %v9415_v14  ;;  %1513 = vmatpush1.bf16.msra.mxu1 %v9416_v16 }
 0x187   :  { %1473 = vmatprep.subr.bf16.mxu0 %v9417_v17  ;;  %1514 = vmatprep.subr.bf16.mxu1 %v9418_v18 }
 0x18a   :  { %1474 = vmatpush1.bf16.msra.mxu0 %v9419_v19  ;;  %1515 = vmatpush1.bf16.msra.mxu1 %v9420_v20 }
 0x18b   :  { %1475 = vmatprep.subr.bf16.mxu0 %v9421_v21  ;;  %1516 = vmatprep.subr.bf16.mxu1 %v9422_v22 }
 0x18e   :  { %1476 = vmatpush1.bf16.msra.mxu0 %v9423_v23  ;;  %1517 = vmatpush1.bf16.msra.mxu1 %v9424_v24 }
 0x18f   :  { %1477 = vmatprep.subr.bf16.mxu0 %v9425_v25  ;;  %1518 = vmatprep.subr.bf16.mxu1 %v9426_v27 }
 0x192   :  { %1478 = vmatpush1.bf16.msra.mxu0 %v9427_v28  ;;  %1519 = vmatpush1.bf16.msra.mxu1 %v9428_v29 }
 0x193   :  { %1479 = vmatprep.subr.bf16.mxu0 %v9429_v30  ;;  %1520 = vmatprep.subr.bf16.mxu1 %v9430_v31 }
 0x196   :  { %1480 = vmatpush1.bf16.msra.mxu0 %v9431_v32  ;;  %1521 = vmatpush1.bf16.msra.mxu1 %v9432_v34 }
 0x197   :  { %1752 = vmatprep.subr.bf16.mxu0 %v8082_v35  ;;  %1793 = vmatprep.subr.bf16.mxu1 %v8084_v36 }
 0x24c   :  { %v1180_v37 = vpop.f32.mrb[24].mxu0  ;;  %v1221_v38 = vpop.f32.mrb[24].mxu1 }
 0x24d   :  { %v1228_v40 = vadd.f32 %v1180_v37, %v9433_v39  ;;  %v1230_v3 = vadd.f32 %v1221_v38, %v9434_v41  ;;  %v1182_v60 = vpop.f32.mrb[25].mxu0  ;;  %v1223_v59 = vpop.f32.mrb[25].mxu1 }
 0x24e   :  { %v1229_v26 = vadd.f32 %v1182_v60, %v9435_v56  ;;  %v1231_v33 = vadd.f32 %v1223_v59, %v9436_v61  ;;  %v1184_v1 = vpop.f32.mrb[26].mxu0  ;;  %v1225_v62 = vpop.f32.mrb[26].mxu1  ;;  %v8096_v60 = vld [vmem:[#allocation5] ss:$16 sps:$4 sm:$0xff]   ;;  %v8098_v59 = vld [vmem:[#allocation5 + $0x8] ss:$16 sps:$4 sm:$0xff]  }
 0x24f   :  { %v1232_v0 = vmul.f32 0.5, %v1228_v40  ;;  %v1185_v63 = vpop.f32.mrb[27].mxu0  ;;  %v1226_v8 = vpop.f32.mrb[27].mxu1  ;;  %v8104_v61 = vld [vmem:[#allocation5 + $0x2c] ss:$16 sps:$4 sm:$0xff]  }
 0x250   :  { %v1236_v10 = vmul.f32 0.5, %v1229_v26  ;;  %v1241_v6 = vmul.f32 0.5, %v1231_v33  ;;  %v8102_v26 = vld [vmem:[#allocation5 + $0x24] ss:$16 sps:$4 sm:$0xff]   ;;  %v8112_v33 = vld [vmem:[#allocation5 + $0x28] ss:$16 sps:$4 sm:$0xff]  }
 0x251   :  { %7319 = vtanh.f32 %v1232_v0  ;;  %v8116_v1 = vld [vmem:[#allocation5 + $0x44] ss:$16 sps:$4 sm:$0xff]   ;;  %v8118_v62 = vld [vmem:[#allocation5 + $0x4c] ss:$16 sps:$4 sm:$0xff]   ;;  %v8124_v0 = vld [vmem:[#allocation5 + $0x40] ss:$16 sps:$4 sm:$0xff]  }
 0x252   :  { %7321 = vtanh.f32 %v1236_v10  ;;  %v8126_v63 = vld [vmem:[#allocation5 + $0x48] ss:$16 sps:$4 sm:$0xff]   ;;  %v8130_v8 = vld [vmem:[#allocation5 + $0x64] ss:$16 sps:$4 sm:$0xff]   ;;  %v8132_v10 = vld [vmem:[#allocation5 + $0x6c] ss:$16 sps:$4 sm:$0xff]  }
 0x253   :  { %7323 = vtanh.f32 %v1230_v3 }
 0x254   :  { %7325 = vtanh.f32 %v1241_v6  ;;  %v8136_v6 = vld [vmem:[#allocation5 + $0x60] ss:$16 sps:$4 sm:$0xff]  }
 0x25b   :  { %v7320_v55 = vpop.eup %7319 }
 0x25c   :  { %v7322_v2 = vpop.eup %7321  ;;  %v1234_v5 = vadd.f32 1.0, %v7320_v55  ;;  %v8138_v55 = vld [vmem:[#allocation5 + $0x68] ss:$16 sps:$4 sm:$0xff]  }
 0x25d   :  { %v1238_v53 = vadd.f32 1.0, %v7322_v2  ;;  %v7324_v57 = vpop.eup %7323  ;;  %v8142_v2 = vld [vmem:[#allocation5 + $0x84] ss:$16 sps:$4 sm:$0xff]  }
 0x25e   :  { %v1235_v54 = vmul.f32 0.5, %v1234_v5  ;;  %v7326_v38 = vpop.eup %7325  ;;  %v8144_v5 = vld [vmem:[#allocation5 + $0x8c] ss:$16 sps:$4 sm:$0xff]  }
 0x25f   :  { %v1239_v51 = vmul.f32 0.5, %v1238_v53  ;;  %v1243_v39 = vadd.f32 1.0, %v7326_v38  ;;  %v8148_v53 = vld [vmem:[#allocation5 + $0x80] ss:$16 sps:$4 sm:$0xff]   ;;  %v8166_v38 = vld [vmem:[#allocation5 + $0xc4] ss:$16 sps:$4 sm:$0xff]  }
 0x260   :  { %v1246_v58 = vmul.f32 %v7324_v57, %v1235_v54  ;;  %v8150_v54 = vld [vmem:[#allocation5 + $0x88] ss:$16 sps:$4 sm:$0xff]   ;;  %v8154_v57 = vld [vmem:[#allocation5 + $0xa4] ss:$16 sps:$4 sm:$0xff]  }
 0x261   :  { %v1245_v52 = vmul.f32 %v1239_v51, %v8013_v15  ;;  %v1244_v40 = vmul.f32 0.5, %v1243_v39  ;;  %v8110_v15 = vld [vmem:[#allocation5 + $0x20] ss:$16 sps:$4 sm:$0xff]   ;;  %9437 = vst [vmem:[#allocation12_spill] sm:$0xff] %v8154_v57  ;;  %v8156_v51 = vld [vmem:[#allocation5 + $0xac] ss:$16 sps:$4 sm:$0xff]  }
 0x262   :  { %9438 = vst [vmem:[#allocation13_spill] sm:$0xff] %v8156_v51  ;;  %v8168_v39 = vld [vmem:[#allocation5 + $0xcc] ss:$16 sps:$4 sm:$0xff]  }
 0x263   :  { %v8093_v37 = vadd.f32 %v1246_v58, %v1245_v52  ;;  %v8160_v58 = vld [vmem:[#allocation5 + $0xa0] ss:$16 sps:$4 sm:$0xff]   ;;  %v8162_v52 = vld [vmem:[#allocation5 + $0xa8] ss:$16 sps:$4 sm:$0xff]  }
 0x264   :  { %9439 = vst [vmem:[#allocation14_spill] sm:$0xff] %v8160_v58 }
 0x265   :  { %7327 = vtanh.f32 %v8093_v37 }
 0x26f   :  { %v7328_v41 = vpop.eup %7327 }
 0x270   :  { %v1249_v3 = vmul.f32 %v7328_v41, %v1244_v40  ;;  %v8172_v40 = vld [vmem:[#allocation5 + $0xc0] ss:$16 sps:$4 sm:$0xff]   ;;  %v8174_v41 = vld [vmem:[#allocation5 + $0xc8] ss:$16 sps:$4 sm:$0xff]  }
 0x272   :  { %v8100_v56 = vpack.c.bf16 %v1249_v3, %v1249_v3  ;;  %v8178_v3 = vld [vmem:[#allocation5 + $0xe4] ss:$16 sps:$4 sm:$0xff]  }
 0x274   :  { %1498 = vmatmul.mubr.bf16.vlgmr.msra.gmra.mrb[28].mxu0 %v8100_v56  ;;  %1539 = vmatmul.mubr.bf16.vlgmr.msra.gmra.mrb[28].mxu1 %v8100_v56 }
 0x275   :  { %1753 = vmatpush1.bf16.msra.mxu0 %v8096_v60  ;;  %1794 = vmatpush1.bf16.msra.mxu1 %v8098_v59 }
 0x276   :  { %1754 = vmatprep.subr.bf16.mxu0 %v8102_v26  ;;  %1795 = vmatprep.subr.bf16.mxu1 %v8104_v61 }
 0x277   :  { %1784 = vmatprep.mubr.bf16.mxu0 %v9409_v4  ;;  %1825 = vmatprep.mubr.bf16.mxu1 %v9409_v4 }
 0x279   :  { %1755 = vmatpush1.bf16.msra.mxu0 %v8110_v15  ;;  %1796 = vmatpush1.bf16.msra.mxu1 %v8112_v33 }
 0x27a   :  { %1756 = vmatprep.subr.bf16.mxu0 %v8116_v1  ;;  %1797 = vmatprep.subr.bf16.mxu1 %v8118_v62 }
 0x27d   :  { %1757 = vmatpush1.bf16.msra.mxu0 %v8124_v0  ;;  %1798 = vmatpush1.bf16.msra.mxu1 %v8126_v63 }
 0x27e   :  { %1758 = vmatprep.subr.bf16.mxu0 %v8130_v8  ;;  %1799 = vmatprep.subr.bf16.mxu1 %v8132_v10 }
 0x281   :  { %1759 = vmatpush1.bf16.msra.mxu0 %v8136_v6  ;;  %1800 = vmatpush1.bf16.msra.mxu1 %v8138_v55 }
 0x282   :  { %1760 = vmatprep.subr.bf16.mxu0 %v8142_v2  ;;  %1801 = vmatprep.subr.bf16.mxu1 %v8144_v5 }
 0x285   :  { %1761 = vmatpush1.bf16.msra.mxu0 %v8148_v53  ;;  %1802 = vmatpush1.bf16.msra.mxu1 %v8150_v54 }
 0x286   :  { %1762 = vmatprep.subr.bf16.mxu0 %v8154_v57  ;;  %1803 = vmatprep.subr.bf16.mxu1 %v8156_v51  ;;  %v8180_v57 = vld [vmem:[#allocation5 + $0xec] ss:$16 sps:$4 sm:$0xff]   ;;  %v8184_v51 = vld [vmem:[#allocation5 + $0xe0] ss:$16 sps:$4 sm:$0xff]  }
 0x289   :  { %1763 = vmatpush1.bf16.msra.mxu0 %v8160_v58  ;;  %1804 = vmatpush1.bf16.msra.mxu1 %v8162_v52  ;;  %v8186_v58 = vld [vmem:[#allocation5 + $0xe8] ss:$16 sps:$4 sm:$0xff]  }
 0x28a   :  { %1764 = vmatprep.subr.bf16.mxu0 %v8166_v38  ;;  %1805 = vmatprep.subr.bf16.mxu1 %v8168_v39 }
 0x28d   :  { %1765 = vmatpush1.bf16.msra.mxu0 %v8172_v40  ;;  %1806 = vmatpush1.bf16.msra.mxu1 %v8174_v41 }
 0x28e   :  { %1766 = vmatprep.subr.bf16.mxu0 %v8178_v3  ;;  %1807 = vmatprep.subr.bf16.mxu1 %v8180_v57 }
 0x291   :  { %1767 = vmatpush1.bf16.msra.mxu0 %v8184_v51  ;;  %1808 = vmatpush1.bf16.msra.mxu1 %v8186_v58 }
 0x292   :  { %2071 = vmatprep.subr.bf16.mxu0 %v7818_v42  ;;  %2112 = vmatprep.subr.bf16.mxu1 %v7820_v43 }
 0x294   :  { %1785 = vmatmul.mubr.bf16.vlgmr.msra.gmra.mrb[32].mxu0 %v8100_v56  ;;  %1826 = vmatmul.mubr.bf16.vlgmr.msra.gmra.mrb[32].mxu1 %v8100_v56 }
 0x295   :  { %2072 = vmatpush1.bf16.msra.mxu0 %v7822_v44  ;;  %2113 = vmatpush1.bf16.msra.mxu1 %v7824_v45  ;;  %v9440_v44 = vld [vmem:[#allocation43_spill] sm:$0xff] }
 0x296   :  { %2073 = vmatprep.subr.bf16.mxu0 %v7830_v46  ;;  %2114 = vmatprep.subr.bf16.mxu1 %v7832_v47  ;;  %v9441_v46 = vld [vmem:[#allocation44_spill] sm:$0xff] }
 0x297   :  { %2103 = vmatprep.mubr.bf16.mxu0 %v9409_v4  ;;  %2144 = vmatprep.mubr.bf16.mxu1 %v9409_v4 }
 0x299   :  { %2074 = vmatpush1.bf16.msra.mxu0 %v7834_v48  ;;  %2115 = vmatpush1.bf16.msra.mxu1 %v7836_v49 }
 0x29a   :  { %2075 = vmatprep.subr.bf16.mxu0 %v7842_v50  ;;  %2116 = vmatprep.subr.bf16.mxu1 %v9410_v7  ;;  %v9442_v50 = vld [vmem:[#allocation45_spill] sm:$0xff] }
 0x29d   :  { %2076 = vmatpush1.bf16.msra.mxu0 %v9411_v9  ;;  %2117 = vmatpush1.bf16.msra.mxu1 %v9412_v11  ;;  %v9443_v9 = vld [vmem:[#allocation46_spill] sm:$0xff] }
 0x29e   :  { %2077 = vmatprep.subr.bf16.mxu0 %v9413_v12  ;;  %2118 = vmatprep.subr.bf16.mxu1 %v9414_v13 }
 0x2a1   :  { %2078 = vmatpush1.bf16.msra.mxu0 %v9415_v14  ;;  %2119 = vmatpush1.bf16.msra.mxu1 %v9416_v16 }
 0x2a2   :  { %2079 = vmatprep.subr.bf16.mxu0 %v9417_v17  ;;  %2120 = vmatprep.subr.bf16.mxu1 %v9418_v18 }
 0x2a5   :  { %2080 = vmatpush1.bf16.msra.mxu0 %v9419_v19  ;;  %2121 = vmatpush1.bf16.msra.mxu1 %v9420_v20 }
 0x2a6   :  { %2081 = vmatprep.subr.bf16.mxu0 %v9421_v21  ;;  %2122 = vmatprep.subr.bf16.mxu1 %v9422_v22 }
 0x2a9   :  { %2082 = vmatpush1.bf16.msra.mxu0 %v9423_v23  ;;  %2123 = vmatpush1.bf16.msra.mxu1 %v9424_v24 }
 0x2aa   :  { %2083 = vmatprep.subr.bf16.mxu0 %v9425_v25  ;;  %2124 = vmatprep.subr.bf16.mxu1 %v9426_v27 }
 0x2ad   :  { %2084 = vmatpush1.bf16.msra.mxu0 %v9427_v28  ;;  %2125 = vmatpush1.bf16.msra.mxu1 %v9428_v29 }
 0x2ae   :  { %2085 = vmatprep.subr.bf16.mxu0 %v9429_v30  ;;  %2126 = vmatprep.subr.bf16.mxu1 %v9430_v31 }
 0x2b1   :  { %2086 = vmatpush1.bf16.msra.mxu0 %v9431_v32  ;;  %2127 = vmatpush1.bf16.msra.mxu1 %v9432_v34 }
 0x2b2   :  { %2358 = vmatprep.subr.bf16.mxu0 %v8082_v35  ;;  %2399 = vmatprep.subr.bf16.mxu1 %v8084_v36 }
 0x367   :  { %v1786_v42 = vpop.f32.mrb[32].mxu0  ;;  %v1827_v43 = vpop.f32.mrb[32].mxu1 }
 0x368   :  { %v1834_v45 = vadd.f32 %v1786_v42, %v9440_v44  ;;  %v1836_v47 = vadd.f32 %v1827_v43, %v9441_v46  ;;  %v1788_v48 = vpop.f32.mrb[33].mxu0  ;;  %v1829_v49 = vpop.f32.mrb[33].mxu1  ;;  %v9445_v44 = vld [vmem:[#allocation13_spill] sm:$0xff]  ;;  %v8272_v46 = vld [vmem:[#allocation7 + $0x4] ss:$16 sps:$4 sm:$0xff]  }
 0x369   :  { %v1835_v7 = vadd.f32 %v1788_v48, %v9442_v50  ;;  %v1837_v11 = vadd.f32 %v1829_v49, %v9443_v9  ;;  %v1790_v12 = vpop.f32.mrb[34].mxu0  ;;  %v1831_v13 = vpop.f32.mrb[34].mxu1  ;;  %v8276_v48 = vld [vmem:[#allocation7] ss:$16 sps:$4 sm:$0xff]   ;;  %v8278_v49 = vld [vmem:[#allocation7 + $0x8] ss:$16 sps:$4 sm:$0xff]  }
 0x36a   :  { %v1838_v14 = vmul.f32 0.5, %v1834_v45  ;;  %v1791_v16 = vpop.f32.mrb[35].mxu0  ;;  %v1832_v17 = vpop.f32.mrb[35].mxu1  ;;  %v9446_v45 = vld [vmem:[#allocation14_spill] sm:$0xff]  ;;  %v8298_v13 = vld [vmem:[#allocation7 + $0x4c] ss:$16 sps:$4 sm:$0xff]  }
 0x36b   :  { %v1842_v18 = vmul.f32 0.5, %v1835_v7  ;;  %v1847_v19 = vmul.f32 0.5, %v1837_v11  ;;  %v8284_v50 = vld [vmem:[#allocation7 + $0x24] ss:$16 sps:$4 sm:$0xff]   ;;  %v8286_v7 = vld [vmem:[#allocation7 + $0x2c] ss:$16 sps:$4 sm:$0xff]  }
 0x36c   :  { %7329 = vtanh.f32 %v1838_v14  ;;  %v8288_v9 = vld [vmem:[#allocation7 + $0x20] ss:$16 sps:$4 sm:$0xff]   ;;  %v8290_v11 = vld [vmem:[#allocation7 + $0x28] ss:$16 sps:$4 sm:$0xff]   ;;  %v8296_v12 = vld [vmem:[#allocation7 + $0x44] ss:$16 sps:$4 sm:$0xff]  }
 0x36d   :  { %7331 = vtanh.f32 %v1842_v18  ;;  %v8300_v14 = vld [vmem:[#allocation7 + $0x40] ss:$16 sps:$4 sm:$0xff]   ;;  %v8302_v16 = vld [vmem:[#allocation7 + $0x48] ss:$16 sps:$4 sm:$0xff]   ;;  %v8308_v17 = vld [vmem:[#allocation7 + $0x64] ss:$16 sps:$4 sm:$0xff]  }
 0x36e   :  { %7333 = vtanh.f32 %v1836_v47  ;;  %v8274_v47 = vld [vmem:[#allocation7 + $0xc] ss:$16 sps:$4 sm:$0xff]   ;;  %9447 = vst [vmem:[#allocation15_spill] sm:$0xff] %v8302_v16  ;;  %9448 = vst [vmem:[#allocation16_spill] sm:$0xff] %v8308_v17 }
 0x36f   :  { %7335 = vtanh.f32 %v1847_v19  ;;  %v8310_v18 = vld [vmem:[#allocation7 + $0x6c] ss:$16 sps:$4 sm:$0xff]   ;;  %v8312_v19 = vld [vmem:[#allocation7 + $0x60] ss:$16 sps:$4 sm:$0xff]  }
 0x370   :  { %9449 = vst [vmem:[#allocation17_spill] sm:$0xff] %v8310_v18  ;;  %9450 = vst [vmem:[#allocation18_spill] sm:$0xff] %v8312_v19 }
 0x376   :  { %v7330_v20 = vpop.eup %7329 }
 0x377   :  { %v7332_v21 = vpop.eup %7331  ;;  %v1840_v22 = vadd.f32 1.0, %v7330_v20  ;;  %v8314_v20 = vld [vmem:[#allocation7 + $0x68] ss:$16 sps:$4 sm:$0xff]  }
 0x378   :  { %v1844_v23 = vadd.f32 1.0, %v7332_v21  ;;  %v7334_v25 = vpop.eup %7333  ;;  %9451 = vst [vmem:[#allocation19_spill] sm:$0xff] %v8314_v20  ;;  %v8320_v21 = vld [vmem:[#allocation7 + $0x84] ss:$16 sps:$4 sm:$0xff]  }
 0x379   :  { %v1841_v24 = vmul.f32 0.5, %v1840_v22  ;;  %v7336_v31 = vpop.eup %7335  ;;  %9452 = vst [vmem:[#allocation20_spill] sm:$0xff] %v8320_v21  ;;  %v8322_v22 = vld [vmem:[#allocation7 + $0x8c] ss:$16 sps:$4 sm:$0xff]  }
 0x37a   :  { %v1845_v27 = vmul.f32 0.5, %v1844_v23  ;;  %v1849_v32 = vadd.f32 1.0, %v7336_v31  ;;  %9453 = vst [vmem:[#allocation21_spill] sm:$0xff] %v8322_v22  ;;  %v8324_v23 = vld [vmem:[#allocation7 + $0x80] ss:$16 sps:$4 sm:$0xff]  }
 0x37b   :  { %v1852_v28 = vmul.f32 %v7334_v25, %v1841_v24  ;;  %9454 = vst [vmem:[#allocation22_spill] sm:$0xff] %v8324_v23  ;;  %v8326_v24 = vld [vmem:[#allocation7 + $0x88] ss:$16 sps:$4 sm:$0xff]   ;;  %v8332_v25 = vld [vmem:[#allocation7 + $0xa4] ss:$16 sps:$4 sm:$0xff]  }
 0x37c   :  { %v1851_v29 = vmul.f32 %v1845_v27, %v8093_v37  ;;  %v1850_v34 = vmul.f32 0.5, %v1849_v32  ;;  %v9444_v37 = vld [vmem:[#allocation12_spill] sm:$0xff]  ;;  %9455 = vst [vmem:[#allocation23_spill] sm:$0xff] %v8326_v24  ;;  %9456 = vst [vmem:[#allocation24_spill] sm:$0xff] %v8332_v25  ;;  %v8334_v27 = vld [vmem:[#allocation7 + $0xac] ss:$16 sps:$4 sm:$0xff]  }
 0x37d   :  { %9457 = vst [vmem:[#allocation25_spill] sm:$0xff] %v8334_v27  ;;  %v8344_v31 = vld [vmem:[#allocation7 + $0xc4] ss:$16 sps:$4 sm:$0xff]   ;;  %v8346_v32 = vld [vmem:[#allocation7 + $0xcc] ss:$16 sps:$4 sm:$0xff]  }
 0x37e   :  { %v8235_v30 = vadd.f32 %v1852_v28, %v1851_v29  ;;  %v8336_v28 = vld [vmem:[#allocation7 + $0xa0] ss:$16 sps:$4 sm:$0xff]   ;;  %v8338_v29 = vld [vmem:[#allocation7 + $0xa8] ss:$16 sps:$4 sm:$0xff]   ;;  %9460 = vst [vmem:[#allocation28_spill] sm:$0xff] %v8344_v31  ;;  %9461 = vst [vmem:[#allocation29_spill] sm:$0xff] %v8346_v32 }
 0x37f   :  { %9458 = vst [vmem:[#allocation26_spill] sm:$0xff] %v8336_v28  ;;  %9459 = vst [vmem:[#allocation27_spill] sm:$0xff] %v8338_v29 }
 0x380   :  { %7337 = vtanh.f32 %v8235_v30 }
 0x38a   :  { %v7338_v56 = vpop.eup %7337 }
 0x38b   :  { %v1855_v42 = vmul.f32 %v7338_v56, %v1850_v34  ;;  %v8348_v34 = vld [vmem:[#allocation7 + $0xc0] ss:$16 sps:$4 sm:$0xff]   ;;  %v8350_v56 = vld [vmem:[#allocation7 + $0xc8] ss:$16 sps:$4 sm:$0xff]  }
 0x38c   :  { %9462 = vst [vmem:[#allocation30_spill] sm:$0xff] %v8348_v34  ;;  %9463 = vst [vmem:[#allocation31_spill] sm:$0xff] %v8350_v56 }
 0x38d   :  { %v1856_v43 = vpack.c.bf16 %v1855_v42, %v1855_v42  ;;  %v8356_v42 = vld [vmem:[#allocation7 + $0xe4] ss:$16 sps:$4 sm:$0xff]  }
 0x38e   :  { %9464 = vst [vmem:[#allocation32_spill] sm:$0xff] %v8356_v42 }
 0x38f   :  { %2104 = vmatmul.mubr.bf16.vlgmr.msra.gmra.mrb[36].mxu0 %v1856_v43  ;;  %2145 = vmatmul.mubr.bf16.vlgmr.msra.gmra.mrb[36].mxu1 %v1856_v43 }
 0x390   :  { %2359 = vmatpush1.bf16.msra.mxu0 %v8096_v60  ;;  %2400 = vmatpush1.bf16.msra.mxu1 %v8098_v59 }
 0x391   :  { %2360 = vmatprep.subr.bf16.mxu0 %v8102_v26  ;;  %2401 = vmatprep.subr.bf16.mxu1 %v8104_v61 }
 0x392   :  { %2390 = vmatprep.mubr.bf16.mxu0 %v9409_v4  ;;  %2431 = vmatprep.mubr.bf16.mxu1 %v9409_v4 }
 0x394   :  { %2361 = vmatpush1.bf16.msra.mxu0 %v8110_v15  ;;  %2402 = vmatpush1.bf16.msra.mxu1 %v8112_v33 }
 0x395   :  { %2362 = vmatprep.subr.bf16.mxu0 %v8116_v1  ;;  %2403 = vmatprep.subr.bf16.mxu1 %v8118_v62 }
 0x398   :  { %2363 = vmatpush1.bf16.msra.mxu0 %v8124_v0  ;;  %2404 = vmatpush1.bf16.msra.mxu1 %v8126_v63 }
 0x399   :  { %2364 = vmatprep.subr.bf16.mxu0 %v8130_v8  ;;  %2405 = vmatprep.subr.bf16.mxu1 %v8132_v10 }
 0x39c   :  { %2365 = vmatpush1.bf16.msra.mxu0 %v8136_v6  ;;  %2406 = vmatpush1.bf16.msra.mxu1 %v8138_v55 }
 0x39d   :  { %2366 = vmatprep.subr.bf16.mxu0 %v8142_v2  ;;  %2407 = vmatprep.subr.bf16.mxu1 %v8144_v5 }
 0x3a0   :  { %2367 = vmatpush1.bf16.msra.mxu0 %v8148_v53  ;;  %2408 = vmatpush1.bf16.msra.mxu1 %v8150_v54 }
 0x3a1   :  { %2368 = vmatprep.subr.bf16.mxu0 %v9444_v37  ;;  %2409 = vmatprep.subr.bf16.mxu1 %v9445_v44 }
 0x3a4   :  { %2369 = vmatpush1.bf16.msra.mxu0 %v9446_v45  ;;  %2410 = vmatpush1.bf16.msra.mxu1 %v8162_v52 }
 0x3a5   :  { %2370 = vmatprep.subr.bf16.mxu0 %v8166_v38  ;;  %2411 = vmatprep.subr.bf16.mxu1 %v8168_v39 }
 0x3a8   :  { %2371 = vmatpush1.bf16.msra.mxu0 %v8172_v40  ;;  %2412 = vmatpush1.bf16.msra.mxu1 %v8174_v41 }
 0x3a9   :  { %2372 = vmatprep.subr.bf16.mxu0 %v8178_v3  ;;  %2413 = vmatprep.subr.bf16.mxu1 %v8180_v57 }
 0x3ac   :  { %2373 = vmatpush1.bf16.msra.mxu0 %v8184_v51  ;;  %2414 = vmatpush1.bf16.msra.mxu1 %v8186_v58 }
 0x3ad   :  { %2677 = vmatprep.subr.bf16.mxu0 %v8272_v46  ;;  %2718 = vmatprep.subr.bf16.mxu1 %v8274_v47 }
 0x3af   :  { %2391 = vmatmul.mubr.bf16.vlgmr.msra.gmra.mrb[40].mxu0 %v1856_v43  ;;  %2432 = vmatmul.mubr.bf16.vlgmr.msra.gmra.mrb[40].mxu1 %v1856_v43  ;;  %v8358_v43 = vld [vmem:[#allocation7 + $0xec] ss:$16 sps:$4 sm:$0xff]  }
 0x3b0   :  { %2709 = vmatprep.mubr.bf16.mxu0 %v9409_v4  ;;  %2750 = vmatprep.mubr.bf16.mxu1 %v9409_v4  ;;  %9465 = vst [vmem:[#allocation33_spill] sm:$0xff] %v8358_v43 }
 0x3b1   :  { %2678 = vmatpush1.bf16.msra.mxu0 %v8276_v48  ;;  %2719 = vmatpush1.bf16.msra.mxu1 %v8278_v49 }
 0x3b2   :  { %2679 = vmatprep.subr.bf16.mxu0 %v8284_v50  ;;  %2720 = vmatprep.subr.bf16.mxu1 %v8286_v7 }
 0x3b5   :  { %2680 = vmatpush1.bf16.msra.mxu0 %v8288_v9  ;;  %2721 = vmatpush1.bf16.msra.mxu1 %v8290_v11 }
 0x3b6   :  { %2681 = vmatprep.subr.bf16.mxu0 %v8296_v12  ;;  %2722 = vmatprep.subr.bf16.mxu1 %v8298_v13 }
 0x3b9   :  { %2682 = vmatpush1.bf16.msra.mxu0 %v8300_v14  ;;  %2723 = vmatpush1.bf16.msra.mxu1 %v8302_v16 }
 0x3ba   :  { %2683 = vmatprep.subr.bf16.mxu0 %v8308_v17  ;;  %2724 = vmatprep.subr.bf16.mxu1 %v8310_v18 }
 0x3bd   :  { %2684 = vmatpush1.bf16.msra.mxu0 %v8312_v19  ;;  %2725 = vmatpush1.bf16.msra.mxu1 %v8314_v20 }
 0x3be   :  { %2685 = vmatprep.subr.bf16.mxu0 %v8320_v21  ;;  %2726 = vmatprep.subr.bf16.mxu1 %v8322_v22  ;;  %v9470_v22 = vld [vmem:[#allocation49_spill] sm:$0xff]  ;;  %v9471_v21 = vld [vmem:[#allocation50_spill] sm:$0xff] }
 0x3c1   :  { %2686 = vmatpush1.bf16.msra.mxu0 %v8324_v23  ;;  %2727 = vmatpush1.bf16.msra.mxu1 %v8326_v24 }
 0x3c2   :  { %2687 = vmatprep.subr.bf16.mxu0 %v8332_v25  ;;  %2728 = vmatprep.subr.bf16.mxu1 %v8334_v27  ;;  %v9469_v27 = vld [vmem:[#allocation48_spill] sm:$0xff] }
 0x3c5   :  { %2688 = vmatpush1.bf16.msra.mxu0 %v8336_v28  ;;  %2729 = vmatpush1.bf16.msra.mxu1 %v8338_v29  ;;  %v8360_v29 = vld [vmem:[#allocation7 + $0xe0] ss:$16 sps:$4 sm:$0xff]   ;;  %v8362_v28 = vld [vmem:[#allocation7 + $0xe8] ss:$16 sps:$4 sm:$0xff]  }
 0x3c6   :  { %2689 = vmatprep.subr.bf16.mxu0 %v8344_v31  ;;  %2730 = vmatprep.subr.bf16.mxu1 %v8346_v32  ;;  %9466 = vst [vmem:[#allocation34_spill] sm:$0xff] %v8360_v29  ;;  %9467 = vst [vmem:[#allocation39_spill] sm:$0xff] %v8362_v28  ;;  %v9468_v32 = vld [vmem:[#allocation47_spill] sm:$0xff] }
 0x3c9   :  { %2690 = vmatpush1.bf16.msra.mxu0 %v8348_v34  ;;  %2731 = vmatpush1.bf16.msra.mxu1 %v8350_v56 }
 0x3ca   :  { %2691 = vmatprep.subr.bf16.mxu0 %v8356_v42  ;;  %2732 = vmatprep.subr.bf16.mxu1 %v8358_v43 }
 0x3cd   :  { %2692 = vmatpush1.bf16.msra.mxu0 %v8360_v29  ;;  %2733 = vmatpush1.bf16.msra.mxu1 %v8362_v28 }
 0x3ce   :  { %2964 = vmatprep.subr.bf16.mxu0 %v8082_v35  ;;  %3005 = vmatprep.subr.bf16.mxu1 %v8084_v36 }
 0x482   :  { %v2392_v56 = vpop.f32.mrb[40].mxu0  ;;  %v2433_v34 = vpop.f32.mrb[40].mxu1 }
 0x483   :  { %v2440_v31 = vadd.f32 %v2392_v56, %v9468_v32  ;;  %v2442_v25 = vadd.f32 %v2433_v34, %v9469_v27  ;;  %v2394_v24 = vpop.f32.mrb[41].mxu0  ;;  %v2435_v23 = vpop.f32.mrb[41].mxu1 }
 0x484   :  { %v2441_v42 = vadd.f32 %v2394_v24, %v9470_v22  ;;  %v2443_v43 = vadd.f32 %v2435_v23, %v9471_v21  ;;  %v2396_v20 = vpop.f32.mrb[42].mxu0  ;;  %v2437_v29 = vpop.f32.mrb[42].mxu1 }
 0x485   :  { %v2444_v19 = vmul.f32 0.5, %v2440_v31  ;;  %v2397_v28 = vpop.f32.mrb[43].mxu0  ;;  %v2438_v18 = vpop.f32.mrb[43].mxu1  ;;  %v9496_v31 = vld [vmem:[#allocation54_spill] sm:$0xff] }
 0x486   :  { %v2448_v35 = vmul.f32 0.5, %v2441_v42  ;;  %v2453_v36 = vmul.f32 0.5, %v2443_v43 }
 0x487   :  { %7339 = vtanh.f32 %v2444_v19 }
 0x488   :  { %7341 = vtanh.f32 %v2448_v35 }
 0x489   :  { %7343 = vtanh.f32 %v2442_v25 }
 0x48a   :  { %7345 = vtanh.f32 %v2453_v36 }
 0x491   :  { %v7340_v17 = vpop.eup %7339 }
 0x492   :  { %v7342_v32 = vpop.eup %7341  ;;  %v2446_v56 = vadd.f32 1.0, %v7340_v17 }
 0x493   :  { %v2450_v27 = vadd.f32 1.0, %v7342_v32  ;;  %v7344_v16 = vpop.eup %7343 }
 0x494   :  { %v2447_v34 = vmul.f32 0.5, %v2446_v56  ;;  %v7346_v18 = vpop.eup %7345 }
 0x495   :  { %v2451_v22 = vmul.f32 0.5, %v2450_v27  ;;  %v2455_v19 = vadd.f32 1.0, %v7346_v18 }
 0x496   :  { %v2458_v24 = vmul.f32 %v7344_v16, %v2447_v34  ;;  %v9495_v16 = vld [vmem:[#allocation53_spill] sm:$0xff] }
 0x497   :  { %v2457_v20 = vmul.f32 %v2451_v22, %v8235_v30  ;;  %v2456_v23 = vmul.f32 0.5, %v2455_v19  ;;  %v9494_v30 = vld [vmem:[#allocation52_spill] sm:$0xff] }
 0x499   :  { %v8375_v21 = vadd.f32 %v2458_v24, %v2457_v20 }
 0x49b   :  { %7347 = vtanh.f32 %v8375_v21 }
 0x4a5   :  { %v7348_v25 = vpop.eup %7347 }
 0x4a6   :  { %v2461_v28 = vmul.f32 %v7348_v25, %v2456_v23 }
 0x4a8   :  { %v2462_v29 = vpack.c.bf16 %v2461_v28, %v2461_v28 }
 0x4aa   :  { %2710 = vmatmul.mubr.bf16.vlgmr.msra.gmra.mrb[44].mxu0 %v2462_v29  ;;  %2751 = vmatmul.mubr.bf16.vlgmr.msra.gmra.mrb[44].mxu1 %v2462_v29 }
 0x4ab   :  { %2965 = vmatpush1.bf16.msra.mxu0 %v8096_v60  ;;  %3006 = vmatpush1.bf16.msra.mxu1 %v8098_v59  ;;  %v9472_v60 = vld [vmem:[#allocation15_spill] sm:$0xff]  ;;  %v9473_v59 = vld [vmem:[#allocation16_spill] sm:$0xff] }
 0x4ac   :  { %2966 = vmatprep.subr.bf16.mxu0 %v8102_v26  ;;  %3007 = vmatprep.subr.bf16.mxu1 %v8104_v61  ;;  %v9474_v26 = vld [vmem:[#allocation17_spill] sm:$0xff]  ;;  %v9475_v61 = vld [vmem:[#allocation18_spill] sm:$0xff] }
 0x4ad   :  { %2996 = vmatprep.mubr.bf16.mxu0 %v9409_v4  ;;  %3037 = vmatprep.mubr.bf16.mxu1 %v9409_v4 }
 0x4af   :  { %2967 = vmatpush1.bf16.msra.mxu0 %v8110_v15  ;;  %3008 = vmatpush1.bf16.msra.mxu1 %v8112_v33  ;;  %v9476_v15 = vld [vmem:[#allocation19_spill] sm:$0xff]  ;;  %v9477_v33 = vld [vmem:[#allocation20_spill] sm:$0xff] }
 0x4b0   :  { %2968 = vmatprep.subr.bf16.mxu0 %v8116_v1  ;;  %3009 = vmatprep.subr.bf16.mxu1 %v8118_v62  ;;  %v9478_v1 = vld [vmem:[#allocation21_spill] sm:$0xff]  ;;  %v9479_v62 = vld [vmem:[#allocation22_spill] sm:$0xff] }
 0x4b3   :  { %2969 = vmatpush1.bf16.msra.mxu0 %v8124_v0  ;;  %3010 = vmatpush1.bf16.msra.mxu1 %v8126_v63  ;;  %v9480_v0 = vld [vmem:[#allocation23_spill] sm:$0xff]  ;;  %v9481_v63 = vld [vmem:[#allocation24_spill] sm:$0xff] }
 0x4b4   :  { %2970 = vmatprep.subr.bf16.mxu0 %v8130_v8  ;;  %3011 = vmatprep.subr.bf16.mxu1 %v8132_v10  ;;  %v9482_v8 = vld [vmem:[#allocation25_spill] sm:$0xff]  ;;  %v9483_v10 = vld [vmem:[#allocation26_spill] sm:$0xff] }
 0x4b7   :  { %2971 = vmatpush1.bf16.msra.mxu0 %v8136_v6  ;;  %3012 = vmatpush1.bf16.msra.mxu1 %v8138_v55  ;;  %v9484_v6 = vld [vmem:[#allocation27_spill] sm:$0xff]  ;;  %v9485_v55 = vld [vmem:[#allocation28_spill] sm:$0xff] }
 0x4b8   :  { %2972 = vmatprep.subr.bf16.mxu0 %v8142_v2  ;;  %3013 = vmatprep.subr.bf16.mxu1 %v8144_v5  ;;  %v9486_v2 = vld [vmem:[#allocation29_spill] sm:$0xff]  ;;  %v9487_v5 = vld [vmem:[#allocation30_spill] sm:$0xff] }
 0x4bb   :  { %2973 = vmatpush1.bf16.msra.mxu0 %v8148_v53  ;;  %3014 = vmatpush1.bf16.msra.mxu1 %v8150_v54  ;;  %v9488_v53 = vld [vmem:[#allocation31_spill] sm:$0xff]  ;;  %v9489_v54 = vld [vmem:[#allocation32_spill] sm:$0xff] }
 0x4bc   :  { %2974 = vmatprep.subr.bf16.mxu0 %v9444_v37  ;;  %3015 = vmatprep.subr.bf16.mxu1 %v9445_v44 }
 0x4bf   :  { %2975 = vmatpush1.bf16.msra.mxu0 %v9446_v45  ;;  %3016 = vmatpush1.bf16.msra.mxu1 %v8162_v52  ;;  %v8444_v52 = vld [vmem:[#allocation5 + $0x4] ss:$16 sps:$4 sm:$0xff]  }
 0x4c0   :  { %2976 = vmatprep.subr.bf16.mxu0 %v8166_v38  ;;  %3017 = vmatprep.subr.bf16.mxu1 %v8168_v39  ;;  %v8446_v38 = vld [vmem:[#allocation5 + $0xc] ss:$16 sps:$4 sm:$0xff]  }
 0x4c3   :  { %2977 = vmatpush1.bf16.msra.mxu0 %v8172_v40  ;;  %3018 = vmatpush1.bf16.msra.mxu1 %v8174_v41  ;;  %v9493_v41 = vld [vmem:[#allocation51_spill] sm:$0xff] }
 0x4c4   :  { %2978 = vmatprep.subr.bf16.mxu0 %v8178_v3  ;;  %3019 = vmatprep.subr.bf16.mxu1 %v8180_v57  ;;  %v9490_v57 = vld [vmem:[#allocation33_spill] sm:$0xff] }
 0x4c7   :  { %2979 = vmatpush1.bf16.msra.mxu0 %v8184_v51  ;;  %3020 = vmatpush1.bf16.msra.mxu1 %v8186_v58  ;;  %v9491_v51 = vld [vmem:[#allocation34_spill] sm:$0xff]  ;;  %v9492_v58 = vld [vmem:[#allocation39_spill] sm:$0xff] }
 0x4c8   :  { %3283 = vmatprep.subr.bf16.mxu0 %v8272_v46  ;;  %3324 = vmatprep.subr.bf16.mxu1 %v8274_v47 }
 0x4ca   :  { %2997 = vmatmul.mubr.bf16.vlgmr.msra.gmra.mrb[48].mxu0 %v2462_v29  ;;  %3038 = vmatmul.mubr.bf16.vlgmr.msra.gmra.mrb[48].mxu1 %v2462_v29 }
 0x4cb   :  { %3284 = vmatpush1.bf16.msra.mxu0 %v8276_v48  ;;  %3325 = vmatpush1.bf16.msra.mxu1 %v8278_v49 }
 0x4cc   :  { %3285 = vmatprep.subr.bf16.mxu0 %v8284_v50  ;;  %3326 = vmatprep.subr.bf16.mxu1 %v8286_v7 }
 0x4cd   :  { %3315 = vmatprep.mubr.bf16.mxu0 %v9409_v4  ;;  %3356 = vmatprep.mubr.bf16.mxu1 %v9409_v4 }
 0x4cf   :  { %3286 = vmatpush1.bf16.msra.mxu0 %v8288_v9  ;;  %3327 = vmatpush1.bf16.msra.mxu1 %v8290_v11 }
 0x4d0   :  { %3287 = vmatprep.subr.bf16.mxu0 %v8296_v12  ;;  %3328 = vmatprep.subr.bf16.mxu1 %v8298_v13 }
 0x4d3   :  { %3288 = vmatpush1.bf16.msra.mxu0 %v8300_v14  ;;  %3329 = vmatpush1.bf16.msra.mxu1 %v9472_v60 }
 0x4d4   :  { %3289 = vmatprep.subr.bf16.mxu0 %v9473_v59  ;;  %3330 = vmatprep.subr.bf16.mxu1 %v9474_v26 }
 0x4d7   :  { %3290 = vmatpush1.bf16.msra.mxu0 %v9475_v61  ;;  %3331 = vmatpush1.bf16.msra.mxu1 %v9476_v15 }
 0x4d8   :  { %3291 = vmatprep.subr.bf16.mxu0 %v9477_v33  ;;  %3332 = vmatprep.subr.bf16.mxu1 %v9478_v1 }
 0x4db   :  { %3292 = vmatpush1.bf16.msra.mxu0 %v9479_v62  ;;  %3333 = vmatpush1.bf16.msra.mxu1 %v9480_v0 }
 0x4dc   :  { %3293 = vmatprep.subr.bf16.mxu0 %v9481_v63  ;;  %3334 = vmatprep.subr.bf16.mxu1 %v9482_v8 }
 0x4df   :  { %3294 = vmatpush1.bf16.msra.mxu0 %v9483_v10  ;;  %3335 = vmatpush1.bf16.msra.mxu1 %v9484_v6 }
 0x4e0   :  { %3295 = vmatprep.subr.bf16.mxu0 %v9485_v55  ;;  %3336 = vmatprep.subr.bf16.mxu1 %v9486_v2 }
 0x4e3   :  { %3296 = vmatpush1.bf16.msra.mxu0 %v9487_v5  ;;  %3337 = vmatpush1.bf16.msra.mxu1 %v9488_v53 }
 0x4e4   :  { %3297 = vmatprep.subr.bf16.mxu0 %v9489_v54  ;;  %3338 = vmatprep.subr.bf16.mxu1 %v9490_v57 }
 0x4e7   :  { %3298 = vmatpush1.bf16.msra.mxu0 %v9491_v51  ;;  %3339 = vmatpush1.bf16.msra.mxu1 %v9492_v58 }
 0x4e8   :  { %3570 = vmatprep.subr.bf16.mxu0 %v8444_v52  ;;  %3611 = vmatprep.subr.bf16.mxu1 %v8446_v38 }
 0x59d   :  { %v2998_v39 = vpop.f32.mrb[48].mxu0  ;;  %v3039_v40 = vpop.f32.mrb[48].mxu1 }
 0x59e   :  { %v3046_v3 = vadd.f32 %v2998_v39, %v9493_v41  ;;  %v3048_v37 = vadd.f32 %v3039_v40, %v9494_v30  ;;  %v3000_v44 = vpop.f32.mrb[49].mxu0  ;;  %v3041_v45 = vpop.f32.mrb[49].mxu1 }
 0x59f   :  { %v3047_v17 = vadd.f32 %v3000_v44, %v9495_v16  ;;  %v3049_v42 = vadd.f32 %v3041_v45, %v9496_v31  ;;  %v3002_v43 = vpop.f32.mrb[50].mxu0  ;;  %v3043_v35 = vpop.f32.mrb[50].mxu1  ;;  %v8458_v44 = vld [vmem:[#allocation5] ss:$16 sps:$4 sm:$0xff]   ;;  %v8460_v45 = vld [vmem:[#allocation5 + $0x8] ss:$16 sps:$4 sm:$0xff]  }
 0x5a0   :  { %v3050_v36 = vmul.f32 0.5, %v3046_v3  ;;  %v3003_v32 = vpop.f32.mrb[51].mxu0  ;;  %v3044_v56 = vpop.f32.mrb[51].mxu1  ;;  %v8466_v31 = vld [vmem:[#allocation5 + $0x2c] ss:$16 sps:$4 sm:$0xff]  }
 0x5a1   :  { %v3054_v27 = vmul.f32 0.5, %v3047_v17  ;;  %v3059_v34 = vmul.f32 0.5, %v3049_v42  ;;  %v8464_v17 = vld [vmem:[#allocation5 + $0x24] ss:$16 sps:$4 sm:$0xff]   ;;  %v8474_v42 = vld [vmem:[#allocation5 + $0x28] ss:$16 sps:$4 sm:$0xff]  }
 0x5a2   :  { %7349 = vtanh.f32 %v3050_v36  ;;  %v8478_v43 = vld [vmem:[#allocation5 + $0x44] ss:$16 sps:$4 sm:$0xff]   ;;  %v8480_v35 = vld [vmem:[#allocation5 + $0x4c] ss:$16 sps:$4 sm:$0xff]   ;;  %v8486_v36 = vld [vmem:[#allocation5 + $0x40] ss:$16 sps:$4 sm:$0xff]  }
 0x5a3   :  { %7351 = vtanh.f32 %v3054_v27  ;;  %v8488_v32 = vld [vmem:[#allocation5 + $0x48] ss:$16 sps:$4 sm:$0xff]   ;;  %v8492_v56 = vld [vmem:[#allocation5 + $0x64] ss:$16 sps:$4 sm:$0xff]   ;;  %v8494_v27 = vld [vmem:[#allocation5 + $0x6c] ss:$16 sps:$4 sm:$0xff]  }
 0x5a4   :  { %7353 = vtanh.f32 %v3048_v37 }
 0x5a5   :  { %7355 = vtanh.f32 %v3059_v34  ;;  %v8498_v34 = vld [vmem:[#allocation5 + $0x60] ss:$16 sps:$4 sm:$0xff]  }
 0x5ac   :  { %v7350_v22 = vpop.eup %7349 }
 0x5ad   :  { %v7352_v24 = vpop.eup %7351  ;;  %v3052_v20 = vadd.f32 1.0, %v7350_v22  ;;  %v8500_v22 = vld [vmem:[#allocation5 + $0x68] ss:$16 sps:$4 sm:$0xff]  }
 0x5ae   :  { %v3056_v18 = vadd.f32 1.0, %v7352_v24  ;;  %v7354_v23 = vpop.eup %7353  ;;  %v8504_v24 = vld [vmem:[#allocation5 + $0x84] ss:$16 sps:$4 sm:$0xff]  }
 0x5af   :  { %v3053_v19 = vmul.f32 0.5, %v3052_v20  ;;  %v7356_v40 = vpop.eup %7355  ;;  %v8506_v20 = vld [vmem:[#allocation5 + $0x8c] ss:$16 sps:$4 sm:$0xff]  }
 0x5b0   :  { %v3057_v25 = vmul.f32 0.5, %v3056_v18  ;;  %v3061_v41 = vadd.f32 1.0, %v7356_v40  ;;  %v8510_v18 = vld [vmem:[#allocation5 + $0x80] ss:$16 sps:$4 sm:$0xff]   ;;  %v8528_v40 = vld [vmem:[#allocation5 + $0xc4] ss:$16 sps:$4 sm:$0xff]  }
 0x5b1   :  { %v3064_v28 = vmul.f32 %v7354_v23, %v3053_v19  ;;  %v8512_v19 = vld [vmem:[#allocation5 + $0x88] ss:$16 sps:$4 sm:$0xff]   ;;  %v8516_v23 = vld [vmem:[#allocation5 + $0xa4] ss:$16 sps:$4 sm:$0xff]  }
 0x5b2   :  { %v3063_v29 = vmul.f32 %v3057_v25, %v8375_v21  ;;  %v3062_v3 = vmul.f32 0.5, %v3061_v41  ;;  %v8472_v21 = vld [vmem:[#allocation5 + $0x20] ss:$16 sps:$4 sm:$0xff]   ;;  %9497 = vst [vmem:[#allocation40_spill] sm:$0xff] %v8516_v23  ;;  %v8518_v25 = vld [vmem:[#allocation5 + $0xac] ss:$16 sps:$4 sm:$0xff]  }
 0x5b3   :  { %9498 = vst [vmem:[#allocation41_spill] sm:$0xff] %v8518_v25  ;;  %v8530_v41 = vld [vmem:[#allocation5 + $0xcc] ss:$16 sps:$4 sm:$0xff]  }
 0x5b4   :  { %v8455_v39 = vadd.f32 %v3064_v28, %v3063_v29  ;;  %v8522_v28 = vld [vmem:[#allocation5 + $0xa0] ss:$16 sps:$4 sm:$0xff]   ;;  %v8524_v29 = vld [vmem:[#allocation5 + $0xa8] ss:$16 sps:$4 sm:$0xff]  }
 0x5b5   :  { %9499 = vst [vmem:[#allocation42_spill] sm:$0xff] %v8522_v28 }
 0x5b6   :  { %7357 = vtanh.f32 %v8455_v39 }
 0x5c0   :  { %v7358_v30 = vpop.eup %7357 }
 0x5c1   :  { %v3067_v37 = vmul.f32 %v7358_v30, %v3062_v3  ;;  %v8534_v3 = vld [vmem:[#allocation5 + $0xc0] ss:$16 sps:$4 sm:$0xff]   ;;  %v8536_v30 = vld [vmem:[#allocation5 + $0xc8] ss:$16 sps:$4 sm:$0xff]  }
 0x5c3   :  { %v8462_v16 = vpack.c.bf16 %v3067_v37, %v3067_v37  ;;  %v8540_v37 = vld [vmem:[#allocation5 + $0xe4] ss:$16 sps:$4 sm:$0xff]  }
 0x5c5   :  { %3316 = vmatmul.mubr.bf16.vlgmr.msra.gmra.mrb[52].mxu0 %v8462_v16  ;;  %3357 = vmatmul.mubr.bf16.vlgmr.msra.gmra.mrb[52].mxu1 %v8462_v16 }
 0x5c6   :  { %3571 = vmatpush1.bf16.msra.mxu0 %v8458_v44  ;;  %3612 = vmatpush1.bf16.msra.mxu1 %v8460_v45 }
 0x5c7   :  { %3572 = vmatprep.subr.bf16.mxu0 %v8464_v17  ;;  %3613 = vmatprep.subr.bf16.mxu1 %v8466_v31 }
 0x5c8   :  { %3602 = vmatprep.mubr.bf16.mxu0 %v9409_v4  ;;  %3643 = vmatprep.mubr.bf16.mxu1 %v9409_v4 }
 0x5ca   :  { %3573 = vmatpush1.bf16.msra.mxu0 %v8472_v21  ;;  %3614 = vmatpush1.bf16.msra.mxu1 %v8474_v42 }
 0x5cb   :  { %3574 = vmatprep.subr.bf16.mxu0 %v8478_v43  ;;  %3615 = vmatprep.subr.bf16.mxu1 %v8480_v35 }
 0x5ce   :  { %3575 = vmatpush1.bf16.msra.mxu0 %v8486_v36  ;;  %3616 = vmatpush1.bf16.msra.mxu1 %v8488_v32 }
 0x5cf   :  { %3576 = vmatprep.subr.bf16.mxu0 %v8492_v56  ;;  %3617 = vmatprep.subr.bf16.mxu1 %v8494_v27 }
 0x5d2   :  { %3577 = vmatpush1.bf16.msra.mxu0 %v8498_v34  ;;  %3618 = vmatpush1.bf16.msra.mxu1 %v8500_v22 }
 0x5d3   :  { %3578 = vmatprep.subr.bf16.mxu0 %v8504_v24  ;;  %3619 = vmatprep.subr.bf16.mxu1 %v8506_v20 }
 0x5d6   :  { %3579 = vmatpush1.bf16.msra.mxu0 %v8510_v18  ;;  %3620 = vmatpush1.bf16.msra.mxu1 %v8512_v19 }
 0x5d7   :  { %3580 = vmatprep.subr.bf16.mxu0 %v8516_v23  ;;  %3621 = vmatprep.subr.bf16.mxu1 %v8518_v25  ;;  %v8542_v23 = vld [vmem:[#allocation5 + $0xec] ss:$16 sps:$4 sm:$0xff]   ;;  %v8546_v25 = vld [vmem:[#allocation5 + $0xe0] ss:$16 sps:$4 sm:$0xff]  }
 0x5da   :  { %3581 = vmatpush1.bf16.msra.mxu0 %v8522_v28  ;;  %3622 = vmatpush1.bf16.msra.mxu1 %v8524_v29  ;;  %v8548_v28 = vld [vmem:[#allocation5 + $0xe8] ss:$16 sps:$4 sm:$0xff]  }
 0x5db   :  { %3582 = vmatprep.subr.bf16.mxu0 %v8528_v40  ;;  %3623 = vmatprep.subr.bf16.mxu1 %v8530_v41 }
 0x5de   :  { %3583 = vmatpush1.bf16.msra.mxu0 %v8534_v3  ;;  %3624 = vmatpush1.bf16.msra.mxu1 %v8536_v30 }
 0x5df   :  { %3584 = vmatprep.subr.bf16.mxu0 %v8540_v37  ;;  %3625 = vmatprep.subr.bf16.mxu1 %v8542_v23 }
 0x5e2   :  { %3585 = vmatpush1.bf16.msra.mxu0 %v8546_v25  ;;  %3626 = vmatpush1.bf16.msra.mxu1 %v8548_v28 }
 0x5e3   :  { %3889 = vmatprep.subr.bf16.mxu0 %v8272_v46  ;;  %3930 = vmatprep.subr.bf16.mxu1 %v8274_v47 }
 0x5e5   :  { %3603 = vmatmul.mubr.bf16.vlgmr.msra.gmra.mrb[56].mxu0 %v8462_v16  ;;  %3644 = vmatmul.mubr.bf16.vlgmr.msra.gmra.mrb[56].mxu1 %v8462_v16 }
 0x5e6   :  { %3890 = vmatpush1.bf16.msra.mxu0 %v8276_v48  ;;  %3931 = vmatpush1.bf16.msra.mxu1 %v8278_v49  ;;  %v9500_v48 = vld [vmem:[#allocation55_spill] sm:$0xff] }
 0x5e7   :  { %3891 = vmatprep.subr.bf16.mxu0 %v8284_v50  ;;  %3932 = vmatprep.subr.bf16.mxu1 %v8286_v7  ;;  %v9501_v50 = vld [vmem:[#allocation56_spill] sm:$0xff] }
 0x5e8   :  { %3921 = vmatprep.mubr.bf16.mxu0 %v9409_v4  ;;  %3962 = vmatprep.mubr.bf16.mxu1 %v9409_v4 }
 0x5ea   :  { %3892 = vmatpush1.bf16.msra.mxu0 %v8288_v9  ;;  %3933 = vmatpush1.bf16.msra.mxu1 %v8290_v11 }
 0x5eb   :  { %3893 = vmatprep.subr.bf16.mxu0 %v8296_v12  ;;  %3934 = vmatprep.subr.bf16.mxu1 %v8298_v13  ;;  %v9502_v12 = vld [vmem:[#allocation57_spill] sm:$0xff] }
 0x5ee   :  { %3894 = vmatpush1.bf16.msra.mxu0 %v8300_v14  ;;  %3935 = vmatpush1.bf16.msra.mxu1 %v9472_v60  ;;  %v9503_v14 = vld [vmem:[#allocation58_spill] sm:$0xff] }
 0x5ef   :  { %3895 = vmatprep.subr.bf16.mxu0 %v9473_v59  ;;  %3936 = vmatprep.subr.bf16.mxu1 %v9474_v26 }
 0x5f2   :  { %3896 = vmatpush1.bf16.msra.mxu0 %v9475_v61  ;;  %3937 = vmatpush1.bf16.msra.mxu1 %v9476_v15 }
 0x5f3   :  { %3897 = vmatprep.subr.bf16.mxu0 %v9477_v33  ;;  %3938 = vmatprep.subr.bf16.mxu1 %v9478_v1 }
 0x5f6   :  { %3898 = vmatpush1.bf16.msra.mxu0 %v9479_v62  ;;  %3939 = vmatpush1.bf16.msra.mxu1 %v9480_v0 }
 0x5f7   :  { %3899 = vmatprep.subr.bf16.mxu0 %v9481_v63  ;;  %3940 = vmatprep.subr.bf16.mxu1 %v9482_v8 }
 0x5fa   :  { %3900 = vmatpush1.bf16.msra.mxu0 %v9483_v10  ;;  %3941 = vmatpush1.bf16.msra.mxu1 %v9484_v6 }
 0x5fb   :  { %3901 = vmatprep.subr.bf16.mxu0 %v9485_v55  ;;  %3942 = vmatprep.subr.bf16.mxu1 %v9486_v2 }
 0x5fe   :  { %3902 = vmatpush1.bf16.msra.mxu0 %v9487_v5  ;;  %3943 = vmatpush1.bf16.msra.mxu1 %v9488_v53 }
 0x5ff   :  { %3903 = vmatprep.subr.bf16.mxu0 %v9489_v54  ;;  %3944 = vmatprep.subr.bf16.mxu1 %v9490_v57 }
 0x602   :  { %3904 = vmatpush1.bf16.msra.mxu0 %v9491_v51  ;;  %3945 = vmatpush1.bf16.msra.mxu1 %v9492_v58 }
 0x603   :  { %4176 = vmatprep.subr.bf16.mxu0 %v8444_v52  ;;  %4217 = vmatprep.subr.bf16.mxu1 %v8446_v38 }
 0x6b8   :  { %v3604_v46 = vpop.f32.mrb[56].mxu0  ;;  %v3645_v47 = vpop.f32.mrb[56].mxu1 }
 0x6b9   :  { %v3652_v49 = vadd.f32 %v3604_v46, %v9500_v48  ;;  %v3654_v7 = vadd.f32 %v3645_v47, %v9501_v50  ;;  %v3606_v9 = vpop.f32.mrb[57].mxu0  ;;  %v3647_v11 = vpop.f32.mrb[57].mxu1  ;;  %v9505_v48 = vld [vmem:[#allocation41_spill] sm:$0xff]  ;;  %v8634_v50 = vld [vmem:[#allocation7 + $0x4] ss:$16 sps:$4 sm:$0xff]  }
 0x6ba   :  { %v3653_v13 = vadd.f32 %v3606_v9, %v9502_v12  ;;  %v3655_v60 = vadd.f32 %v3647_v11, %v9503_v14  ;;  %v3608_v59 = vpop.f32.mrb[58].mxu0  ;;  %v3649_v26 = vpop.f32.mrb[58].mxu1  ;;  %v8638_v9 = vld [vmem:[#allocation7] ss:$16 sps:$4 sm:$0xff]   ;;  %v8640_v11 = vld [vmem:[#allocation7 + $0x8] ss:$16 sps:$4 sm:$0xff]  }
 0x6bb   :  { %v3656_v61 = vmul.f32 0.5, %v3652_v49  ;;  %v3609_v15 = vpop.f32.mrb[59].mxu0  ;;  %v3650_v33 = vpop.f32.mrb[59].mxu1  ;;  %v9506_v49 = vld [vmem:[#allocation42_spill] sm:$0xff]  ;;  %v8660_v26 = vld [vmem:[#allocation7 + $0x4c] ss:$16 sps:$4 sm:$0xff]  }
 0x6bc   :  { %v3660_v1 = vmul.f32 0.5, %v3653_v13  ;;  %v3665_v62 = vmul.f32 0.5, %v3655_v60  ;;  %v8646_v12 = vld [vmem:[#allocation7 + $0x24] ss:$16 sps:$4 sm:$0xff]   ;;  %v8648_v13 = vld [vmem:[#allocation7 + $0x2c] ss:$16 sps:$4 sm:$0xff]  }
 0x6bd   :  { %7359 = vtanh.f32 %v3656_v61  ;;  %v8650_v14 = vld [vmem:[#allocation7 + $0x20] ss:$16 sps:$4 sm:$0xff]   ;;  %v8652_v60 = vld [vmem:[#allocation7 + $0x28] ss:$16 sps:$4 sm:$0xff]   ;;  %v8658_v59 = vld [vmem:[#allocation7 + $0x44] ss:$16 sps:$4 sm:$0xff]  }
 0x6be   :  { %7361 = vtanh.f32 %v3660_v1  ;;  %v8662_v61 = vld [vmem:[#allocation7 + $0x40] ss:$16 sps:$4 sm:$0xff]   ;;  %v8664_v15 = vld [vmem:[#allocation7 + $0x48] ss:$16 sps:$4 sm:$0xff]   ;;  %v8670_v33 = vld [vmem:[#allocation7 + $0x64] ss:$16 sps:$4 sm:$0xff]  }
 0x6bf   :  { %7363 = vtanh.f32 %v3654_v7  ;;  %v8636_v7 = vld [vmem:[#allocation7 + $0xc] ss:$16 sps:$4 sm:$0xff]   ;;  %9507 = vst [vmem:[#allocation43_spill] sm:$0xff] %v8664_v15  ;;  %9508 = vst [vmem:[#allocation44_spill] sm:$0xff] %v8670_v33 }
 0x6c0   :  { %7365 = vtanh.f32 %v3665_v62  ;;  %v8672_v1 = vld [vmem:[#allocation7 + $0x6c] ss:$16 sps:$4 sm:$0xff]   ;;  %v8674_v62 = vld [vmem:[#allocation7 + $0x60] ss:$16 sps:$4 sm:$0xff]  }
 0x6c1   :  { %9509 = vst [vmem:[#allocation45_spill] sm:$0xff] %v8672_v1  ;;  %9510 = vst [vmem:[#allocation46_spill] sm:$0xff] %v8674_v62 }
 0x6c7   :  { %v7360_v0 = vpop.eup %7359 }
 0x6c8   :  { %v7362_v63 = vpop.eup %7361  ;;  %v3658_v8 = vadd.f32 1.0, %v7360_v0  ;;  %v8676_v0 = vld [vmem:[#allocation7 + $0x68] ss:$16 sps:$4 sm:$0xff]  }
 0x6c9   :  { %v3662_v10 = vadd.f32 1.0, %v7362_v63  ;;  %v7364_v55 = vpop.eup %7363  ;;  %9511 = vst [vmem:[#allocation12_spill] sm:$0xff] %v8676_v0  ;;  %v8682_v63 = vld [vmem:[#allocation7 + $0x84] ss:$16 sps:$4 sm:$0xff]  }
 0x6ca   :  { %v3659_v6 = vmul.f32 0.5, %v3658_v8  ;;  %v7366_v57 = vpop.eup %7365  ;;  %9512 = vst [vmem:[#allocation13_spill] sm:$0xff] %v8682_v63  ;;  %v8684_v8 = vld [vmem:[#allocation7 + $0x8c] ss:$16 sps:$4 sm:$0xff]  }
 0x6cb   :  { %v3663_v2 = vmul.f32 0.5, %v3662_v10  ;;  %v3667_v51 = vadd.f32 1.0, %v7366_v57  ;;  %9513 = vst [vmem:[#allocation14_spill] sm:$0xff] %v8684_v8  ;;  %v8686_v10 = vld [vmem:[#allocation7 + $0x80] ss:$16 sps:$4 sm:$0xff]  }
 0x6cc   :  { %v3670_v5 = vmul.f32 %v7364_v55, %v3659_v6  ;;  %9514 = vst [vmem:[#allocation47_spill] sm:$0xff] %v8686_v10  ;;  %v8688_v6 = vld [vmem:[#allocation7 + $0x88] ss:$16 sps:$4 sm:$0xff]   ;;  %v8694_v55 = vld [vmem:[#allocation7 + $0xa4] ss:$16 sps:$4 sm:$0xff]  }
 0x6cd   :  { %v3669_v53 = vmul.f32 %v3663_v2, %v8455_v39  ;;  %v3668_v58 = vmul.f32 0.5, %v3667_v51  ;;  %v9504_v39 = vld [vmem:[#allocation40_spill] sm:$0xff]  ;;  %9515 = vst [vmem:[#allocation48_spill] sm:$0xff] %v8688_v6  ;;  %9516 = vst [vmem:[#allocation49_spill] sm:$0xff] %v8694_v55  ;;  %v8696_v2 = vld [vmem:[#allocation7 + $0xac] ss:$16 sps:$4 sm:$0xff]  }
 0x6ce   :  { %9517 = vst [vmem:[#allocation50_spill] sm:$0xff] %v8696_v2  ;;  %v8706_v57 = vld [vmem:[#allocation7 + $0xc4] ss:$16 sps:$4 sm:$0xff]   ;;  %v8708_v51 = vld [vmem:[#allocation7 + $0xcc] ss:$16 sps:$4 sm:$0xff]  }
 0x6cf   :  { %v8597_v54 = vadd.f32 %v3670_v5, %v3669_v53  ;;  %v8698_v5 = vld [vmem:[#allocation7 + $0xa0] ss:$16 sps:$4 sm:$0xff]   ;;  %v8700_v53 = vld [vmem:[#allocation7 + $0xa8] ss:$16 sps:$4 sm:$0xff]   ;;  %9520 = vst [vmem:[#allocation17_spill] sm:$0xff] %v8706_v57  ;;  %9521 = vst [vmem:[#allocation18_spill] sm:$0xff] %v8708_v51 }
 0x6d0   :  { %9518 = vst [vmem:[#allocation15_spill] sm:$0xff] %v8698_v5  ;;  %9519 = vst [vmem:[#allocation16_spill] sm:$0xff] %v8700_v53 }
 0x6d1   :  { %7367 = vtanh.f32 %v8597_v54 }
 0x6db   :  { %v7368_v16 = vpop.eup %7367 }
 0x6dc   :  { %v3673_v46 = vmul.f32 %v7368_v16, %v3668_v58  ;;  %v8710_v58 = vld [vmem:[#allocation7 + $0xc0] ss:$16 sps:$4 sm:$0xff]   ;;  %v8712_v16 = vld [vmem:[#allocation7 + $0xc8] ss:$16 sps:$4 sm:$0xff]  }
 0x6dd   :  { %9522 = vst [vmem:[#allocation19_spill] sm:$0xff] %v8710_v58  ;;  %9523 = vst [vmem:[#allocation20_spill] sm:$0xff] %v8712_v16 }
 0x6de   :  { %v3674_v47 = vpack.c.bf16 %v3673_v46, %v3673_v46  ;;  %v8718_v46 = vld [vmem:[#allocation7 + $0xe4] ss:$16 sps:$4 sm:$0xff]  }
 0x6df   :  { %9524 = vst [vmem:[#allocation21_spill] sm:$0xff] %v8718_v46 }
 0x6e0   :  { %3922 = vmatmul.mubr.bf16.vlgmr.msra.gmra.mrb[60].mxu0 %v3674_v47  ;;  %3963 = vmatmul.mubr.bf16.vlgmr.msra.gmra.mrb[60].mxu1 %v3674_v47 }
 0x6e1   :  { %4177 = vmatpush1.bf16.msra.mxu0 %v8458_v44  ;;  %4218 = vmatpush1.bf16.msra.mxu1 %v8460_v45 }
 0x6e2   :  { %4178 = vmatprep.subr.bf16.mxu0 %v8464_v17  ;;  %4219 = vmatprep.subr.bf16.mxu1 %v8466_v31 }
 0x6e3   :  { %4208 = vmatprep.mubr.bf16.mxu0 %v9409_v4  ;;  %4249 = vmatprep.mubr.bf16.mxu1 %v9409_v4 }
 0x6e5   :  { %4179 = vmatpush1.bf16.msra.mxu0 %v8472_v21  ;;  %4220 = vmatpush1.bf16.msra.mxu1 %v8474_v42 }
 0x6e6   :  { %4180 = vmatprep.subr.bf16.mxu0 %v8478_v43  ;;  %4221 = vmatprep.subr.bf16.mxu1 %v8480_v35 }
 0x6e9   :  { %4181 = vmatpush1.bf16.msra.mxu0 %v8486_v36  ;;  %4222 = vmatpush1.bf16.msra.mxu1 %v8488_v32 }
 0x6ea   :  { %4182 = vmatprep.subr.bf16.mxu0 %v8492_v56  ;;  %4223 = vmatprep.subr.bf16.mxu1 %v8494_v27 }
 0x6ed   :  { %4183 = vmatpush1.bf16.msra.mxu0 %v8498_v34  ;;  %4224 = vmatpush1.bf16.msra.mxu1 %v8500_v22 }
 0x6ee   :  { %4184 = vmatprep.subr.bf16.mxu0 %v8504_v24  ;;  %4225 = vmatprep.subr.bf16.mxu1 %v8506_v20 }
 0x6f1   :  { %4185 = vmatpush1.bf16.msra.mxu0 %v8510_v18  ;;  %4226 = vmatpush1.bf16.msra.mxu1 %v8512_v19 }
 0x6f2   :  { %4186 = vmatprep.subr.bf16.mxu0 %v9504_v39  ;;  %4227 = vmatprep.subr.bf16.mxu1 %v9505_v48 }
 0x6f5   :  { %4187 = vmatpush1.bf16.msra.mxu0 %v9506_v49  ;;  %4228 = vmatpush1.bf16.msra.mxu1 %v8524_v29 }
 0x6f6   :  { %4188 = vmatprep.subr.bf16.mxu0 %v8528_v40  ;;  %4229 = vmatprep.subr.bf16.mxu1 %v8530_v41 }
 0x6f9   :  { %4189 = vmatpush1.bf16.msra.mxu0 %v8534_v3  ;;  %4230 = vmatpush1.bf16.msra.mxu1 %v8536_v30 }
 0x6fa   :  { %4190 = vmatprep.subr.bf16.mxu0 %v8540_v37  ;;  %4231 = vmatprep.subr.bf16.mxu1 %v8542_v23 }
 0x6fd   :  { %4191 = vmatpush1.bf16.msra.mxu0 %v8546_v25  ;;  %4232 = vmatpush1.bf16.msra.mxu1 %v8548_v28 }
 0x6fe   :  { %4495 = vmatprep.subr.bf16.mxu0 %v8634_v50  ;;  %4536 = vmatprep.subr.bf16.mxu1 %v8636_v7 }
 0x700   :  { %4209 = vmatmul.mubr.bf16.vlgmr.msra.gmra.mrb[64].mxu0 %v3674_v47  ;;  %4250 = vmatmul.mubr.bf16.vlgmr.msra.gmra.mrb[64].mxu1 %v3674_v47  ;;  %v8720_v47 = vld [vmem:[#allocation7 + $0xec] ss:$16 sps:$4 sm:$0xff]  }
 0x701   :  { %4527 = vmatprep.mubr.bf16.mxu0 %v9409_v4  ;;  %4568 = vmatprep.mubr.bf16.mxu1 %v9409_v4  ;;  %9525 = vst [vmem:[#allocation22_spill] sm:$0xff] %v8720_v47 }
 0x702   :  { %4496 = vmatpush1.bf16.msra.mxu0 %v8638_v9  ;;  %4537 = vmatpush1.bf16.msra.mxu1 %v8640_v11 }
 0x703   :  { %4497 = vmatprep.subr.bf16.mxu0 %v8646_v12  ;;  %4538 = vmatprep.subr.bf16.mxu1 %v8648_v13 }
 0x706   :  { %4498 = vmatpush1.bf16.msra.mxu0 %v8650_v14  ;;  %4539 = vmatpush1.bf16.msra.mxu1 %v8652_v60 }
 0x707   :  { %4499 = vmatprep.subr.bf16.mxu0 %v8658_v59  ;;  %4540 = vmatprep.subr.bf16.mxu1 %v8660_v26 }
 0x70a   :  { %4500 = vmatpush1.bf16.msra.mxu0 %v8662_v61  ;;  %4541 = vmatpush1.bf16.msra.mxu1 %v8664_v15 }
 0x70b   :  { %4501 = vmatprep.subr.bf16.mxu0 %v8670_v33  ;;  %4542 = vmatprep.subr.bf16.mxu1 %v8672_v1 }
 0x70e   :  { %4502 = vmatpush1.bf16.msra.mxu0 %v8674_v62  ;;  %4543 = vmatpush1.bf16.msra.mxu1 %v8676_v0 }
 0x70f   :  { %4503 = vmatprep.subr.bf16.mxu0 %v8682_v63  ;;  %4544 = vmatprep.subr.bf16.mxu1 %v8684_v8  ;;  %v9530_v8 = vld [vmem:[#allocation61_spill] sm:$0xff]  ;;  %v9531_v63 = vld [vmem:[#allocation62_spill] sm:$0xff] }
 0x712   :  { %4504 = vmatpush1.bf16.msra.mxu0 %v8686_v10  ;;  %4545 = vmatpush1.bf16.msra.mxu1 %v8688_v6 }
 0x713   :  { %4505 = vmatprep.subr.bf16.mxu0 %v8694_v55  ;;  %4546 = vmatprep.subr.bf16.mxu1 %v8696_v2  ;;  %v9529_v2 = vld [vmem:[#allocation60_spill] sm:$0xff] }
 0x716   :  { %4506 = vmatpush1.bf16.msra.mxu0 %v8698_v5  ;;  %4547 = vmatpush1.bf16.msra.mxu1 %v8700_v53  ;;  %v8722_v53 = vld [vmem:[#allocation7 + $0xe0] ss:$16 sps:$4 sm:$0xff]   ;;  %v8724_v5 = vld [vmem:[#allocation7 + $0xe8] ss:$16 sps:$4 sm:$0xff]  }
 0x717   :  { %4507 = vmatprep.subr.bf16.mxu0 %v8706_v57  ;;  %4548 = vmatprep.subr.bf16.mxu1 %v8708_v51  ;;  %9526 = vst [vmem:[#allocation23_spill] sm:$0xff] %v8722_v53  ;;  %9527 = vst [vmem:[#allocation24_spill] sm:$0xff] %v8724_v5  ;;  %v9528_v51 = vld [vmem:[#allocation59_spill] sm:$0xff] }
 0x71a   :  { %4508 = vmatpush1.bf16.msra.mxu0 %v8710_v58  ;;  %4549 = vmatpush1.bf16.msra.mxu1 %v8712_v16 }
 0x71b   :  { %4509 = vmatprep.subr.bf16.mxu0 %v8718_v46  ;;  %4550 = vmatprep.subr.bf16.mxu1 %v8720_v47 }
 0x71e   :  { %4510 = vmatpush1.bf16.msra.mxu0 %v8722_v53  ;;  %4551 = vmatpush1.bf16.msra.mxu1 %v8724_v5 }
 0x71f   :  { %4782 = vmatprep.subr.bf16.mxu0 %v8444_v52  ;;  %4823 = vmatprep.subr.bf16.mxu1 %v8446_v38 }
 0x7d3   :  { %v4210_v16 = vpop.f32.mrb[64].mxu0  ;;  %v4251_v58 = vpop.f32.mrb[64].mxu1 }
 0x7d4   :  { %v4258_v57 = vadd.f32 %v4210_v16, %v9528_v51  ;;  %v4260_v55 = vadd.f32 %v4251_v58, %v9529_v2  ;;  %v4212_v6 = vpop.f32.mrb[65].mxu0  ;;  %v4253_v10 = vpop.f32.mrb[65].mxu1 }
 0x7d5   :  { %v4259_v46 = vadd.f32 %v4212_v6, %v9530_v8  ;;  %v4261_v47 = vadd.f32 %v4253_v10, %v9531_v63  ;;  %v4214_v0 = vpop.f32.mrb[66].mxu0  ;;  %v4255_v53 = vpop.f32.mrb[66].mxu1 }
 0x7d6   :  { %v4262_v62 = vmul.f32 0.5, %v4258_v57  ;;  %v4215_v5 = vpop.f32.mrb[67].mxu0  ;;  %v4256_v1 = vpop.f32.mrb[67].mxu1 }
 0x7d7   :  { %v4266_v52 = vmul.f32 0.5, %v4259_v46  ;;  %v4271_v38 = vmul.f32 0.5, %v4261_v47 }
 0x7d8   :  { %7369 = vtanh.f32 %v4262_v62 }
 0x7d9   :  { %7371 = vtanh.f32 %v4266_v52 }
 0x7da   :  { %7373 = vtanh.f32 %v4260_v55 }
 0x7db   :  { %7375 = vtanh.f32 %v4271_v38 }
 0x7e2   :  { %v7370_v33 = vpop.eup %7369 }
 0x7e3   :  { %v7372_v51 = vpop.eup %7371  ;;  %v4264_v16 = vadd.f32 1.0, %v7370_v33 }
 0x7e4   :  { %v4268_v2 = vadd.f32 1.0, %v7372_v51  ;;  %v7374_v15 = vpop.eup %7373 }
 0x7e5   :  { %v4265_v58 = vmul.f32 0.5, %v4264_v16  ;;  %v7376_v1 = vpop.eup %7375 }
 0x7e6   :  { %v4269_v8 = vmul.f32 0.5, %v4268_v2  ;;  %v4273_v62 = vadd.f32 1.0, %v7376_v1 }
 0x7e7   :  { %v4276_v6 = vmul.f32 %v7374_v15, %v4265_v58 }
 0x7e8   :  { %v4275_v0 = vmul.f32 %v4269_v8, %v8597_v54  ;;  %v4274_v10 = vmul.f32 0.5, %v4273_v62  ;;  %v9554_v54 = vld [vmem:[#allocation64_spill] sm:$0xff] }
 0x7e9   :  { %v8817_v62 = vld [vmem:[#allocation9] ss:$16 sps:$4 sm:$0xff]  }
 0x7ea   :  { %v8737_v63 = vadd.f32 %v4276_v6, %v4275_v0 }
 0x7ec   :  { %7377 = vtanh.f32 %v8737_v63 }
 0x7f6   :  { %v7378_v55 = vpop.eup %7377 }
 0x7f7   :  { %v4279_v5 = vmul.f32 %v7378_v55, %v4274_v10  ;;  %v8819_v10 = vld [vmem:[#allocation9 + $0x8] ss:$16 sps:$4 sm:$0xff]  }
 0x7f9   :  { %v4280_v53 = vpack.c.bf16 %v4279_v5, %v4279_v5  ;;  %v8821_v5 = vld [vmem:[#allocation9 + $0x24] ss:$16 sps:$4 sm:$0xff]  }
 0x7fb   :  { %4528 = vmatmul.mubr.bf16.vlgmr.msra.gmra.mrb[68].mxu0 %v4280_v53  ;;  %4569 = vmatmul.mubr.bf16.vlgmr.msra.gmra.mrb[68].mxu1 %v4280_v53 }
 0x7fc   :  { %4783 = vmatpush1.bf16.msra.mxu0 %v8458_v44  ;;  %4824 = vmatpush1.bf16.msra.mxu1 %v8460_v45  ;;  %v9532_v44 = vld [vmem:[#allocation43_spill] sm:$0xff]  ;;  %v9533_v45 = vld [vmem:[#allocation44_spill] sm:$0xff] }
 0x7fd   :  { %4784 = vmatprep.subr.bf16.mxu0 %v8464_v17  ;;  %4825 = vmatprep.subr.bf16.mxu1 %v8466_v31  ;;  %v9534_v17 = vld [vmem:[#allocation45_spill] sm:$0xff]  ;;  %v9535_v31 = vld [vmem:[#allocation46_spill] sm:$0xff] }
 0x7fe   :  { %4814 = vmatprep.mubr.bf16.mxu0 %v9409_v4  ;;  %4855 = vmatprep.mubr.bf16.mxu1 %v9409_v4 }
 0x800   :  { %4785 = vmatpush1.bf16.msra.mxu0 %v8472_v21  ;;  %4826 = vmatpush1.bf16.msra.mxu1 %v8474_v42  ;;  %v9536_v21 = vld [vmem:[#allocation12_spill] sm:$0xff]  ;;  %v9537_v42 = vld [vmem:[#allocation13_spill] sm:$0xff] }
 0x801   :  { %4786 = vmatprep.subr.bf16.mxu0 %v8478_v43  ;;  %4827 = vmatprep.subr.bf16.mxu1 %v8480_v35  ;;  %v9538_v43 = vld [vmem:[#allocation14_spill] sm:$0xff]  ;;  %v9539_v35 = vld [vmem:[#allocation47_spill] sm:$0xff] }
 0x804   :  { %4787 = vmatpush1.bf16.msra.mxu0 %v8486_v36  ;;  %4828 = vmatpush1.bf16.msra.mxu1 %v8488_v32  ;;  %v9540_v36 = vld [vmem:[#allocation48_spill] sm:$0xff]  ;;  %v9541_v32 = vld [vmem:[#allocation49_spill] sm:$0xff] }
 0x805   :  { %4788 = vmatprep.subr.bf16.mxu0 %v8492_v56  ;;  %4829 = vmatprep.subr.bf16.mxu1 %v8494_v27  ;;  %v9542_v56 = vld [vmem:[#allocation50_spill] sm:$0xff]  ;;  %v9543_v27 = vld [vmem:[#allocation15_spill] sm:$0xff] }
 0x808   :  { %4789 = vmatpush1.bf16.msra.mxu0 %v8498_v34  ;;  %4830 = vmatpush1.bf16.msra.mxu1 %v8500_v22  ;;  %v9544_v34 = vld [vmem:[#allocation16_spill] sm:$0xff]  ;;  %v9545_v22 = vld [vmem:[#allocation17_spill] sm:$0xff] }
 0x809   :  { %4790 = vmatprep.subr.bf16.mxu0 %v8504_v24  ;;  %4831 = vmatprep.subr.bf16.mxu1 %v8506_v20  ;;  %v9546_v24 = vld [vmem:[#allocation18_spill] sm:$0xff]  ;;  %v9547_v20 = vld [vmem:[#allocation19_spill] sm:$0xff] }
 0x80c   :  { %4791 = vmatpush1.bf16.msra.mxu0 %v8510_v18  ;;  %4832 = vmatpush1.bf16.msra.mxu1 %v8512_v19  ;;  %v9548_v18 = vld [vmem:[#allocation20_spill] sm:$0xff]  ;;  %v9549_v19 = vld [vmem:[#allocation21_spill] sm:$0xff] }
 0x80d   :  { %4792 = vmatprep.subr.bf16.mxu0 %v9504_v39  ;;  %4833 = vmatprep.subr.bf16.mxu1 %v9505_v48 }
 0x810   :  { %4793 = vmatpush1.bf16.msra.mxu0 %v9506_v49  ;;  %4834 = vmatpush1.bf16.msra.mxu1 %v8524_v29  ;;  %v8806_v29 = vld [vmem:[#allocation9 + $0x4] ss:$16 sps:$4 sm:$0xff]  }
 0x811   :  { %4794 = vmatprep.subr.bf16.mxu0 %v8528_v40  ;;  %4835 = vmatprep.subr.bf16.mxu1 %v8530_v41  ;;  %v8808_v40 = vld [vmem:[#allocation9 + $0xc] ss:$16 sps:$4 sm:$0xff]  }
 0x814   :  { %4795 = vmatpush1.bf16.msra.mxu0 %v8534_v3  ;;  %4836 = vmatpush1.bf16.msra.mxu1 %v8536_v30  ;;  %v9553_v30 = vld [vmem:[#allocation63_spill] sm:$0xff] }
 0x815   :  { %4796 = vmatprep.subr.bf16.mxu0 %v8540_v37  ;;  %4837 = vmatprep.subr.bf16.mxu1 %v8542_v23  ;;  %v9550_v23 = vld [vmem:[#allocation22_spill] sm:$0xff] }
 0x818   :  { %4797 = vmatpush1.bf16.msra.mxu0 %v8546_v25  ;;  %4838 = vmatpush1.bf16.msra.mxu1 %v8548_v28  ;;  %v9551_v25 = vld [vmem:[#allocation23_spill] sm:$0xff]  ;;  %v9552_v28 = vld [vmem:[#allocation24_spill] sm:$0xff] }
 0x819   :  { %5101 = vmatprep.subr.bf16.mxu0 %v8634_v50  ;;  %5142 = vmatprep.subr.bf16.mxu1 %v8636_v7  ;;  %v9555_v50 = vld [vmem:[#allocation65_spill] sm:$0xff] }
 0x81b   :  { %4815 = vmatmul.mubr.bf16.vlgmr.msra.gmra.mrb[72].mxu0 %v4280_v53  ;;  %4856 = vmatmul.mubr.bf16.vlgmr.msra.gmra.mrb[72].mxu1 %v4280_v53  ;;  %v8823_v53 = vld [vmem:[#allocation9 + $0x2c] ss:$16 sps:$4 sm:$0xff]  }
 0x81c   :  { %5102 = vmatpush1.bf16.msra.mxu0 %v8638_v9  ;;  %5143 = vmatpush1.bf16.msra.mxu1 %v8640_v11  ;;  %v9556_v9 = vld [vmem:[#allocation66_spill] sm:$0xff] }
 0x81d   :  { %5103 = vmatprep.subr.bf16.mxu0 %v8646_v12  ;;  %5144 = vmatprep.subr.bf16.mxu1 %v8648_v13 }
 0x81e   :  { %5133 = vmatprep.mubr.bf16.mxu0 %v9409_v4  ;;  %5174 = vmatprep.mubr.bf16.mxu1 %v9409_v4 }
 0x820   :  { %5104 = vmatpush1.bf16.msra.mxu0 %v8650_v14  ;;  %5145 = vmatpush1.bf16.msra.mxu1 %v8652_v60 }
 0x821   :  { %5105 = vmatprep.subr.bf16.mxu0 %v8658_v59  ;;  %5146 = vmatprep.subr.bf16.mxu1 %v8660_v26 }
 0x824   :  { %5106 = vmatpush1.bf16.msra.mxu0 %v8662_v61  ;;  %5147 = vmatpush1.bf16.msra.mxu1 %v9532_v44  ;;  %v8829_v44 = vld [vmem:[#allocation9 + $0x28] ss:$16 sps:$4 sm:$0xff]  }
 0x825   :  { %5107 = vmatprep.subr.bf16.mxu0 %v9533_v45  ;;  %5148 = vmatprep.subr.bf16.mxu1 %v9534_v17  ;;  %v8833_v45 = vld [vmem:[#allocation9 + $0x44] ss:$16 sps:$4 sm:$0xff]   ;;  %v8835_v17 = vld [vmem:[#allocation9 + $0x4c] ss:$16 sps:$4 sm:$0xff]  }
 0x828   :  { %5108 = vmatpush1.bf16.msra.mxu0 %v9535_v31  ;;  %5149 = vmatpush1.bf16.msra.mxu1 %v9536_v21  ;;  %v8841_v31 = vld [vmem:[#allocation9 + $0x40] ss:$16 sps:$4 sm:$0xff]   ;;  %v8843_v21 = vld [vmem:[#allocation9 + $0x48] ss:$16 sps:$4 sm:$0xff]  }
 0x829   :  { %5109 = vmatprep.subr.bf16.mxu0 %v9537_v42  ;;  %5150 = vmatprep.subr.bf16.mxu1 %v9538_v43  ;;  %v8847_v42 = vld [vmem:[#allocation9 + $0x64] ss:$16 sps:$4 sm:$0xff]   ;;  %v8849_v43 = vld [vmem:[#allocation9 + $0x6c] ss:$16 sps:$4 sm:$0xff]  }
 0x82c   :  { %5110 = vmatpush1.bf16.msra.mxu0 %v9539_v35  ;;  %5151 = vmatpush1.bf16.msra.mxu1 %v9540_v36  ;;  %v8853_v35 = vld [vmem:[#allocation9 + $0x60] ss:$16 sps:$4 sm:$0xff]   ;;  %v8855_v36 = vld [vmem:[#allocation9 + $0x68] ss:$16 sps:$4 sm:$0xff]  }
 0x82d   :  { %5111 = vmatprep.subr.bf16.mxu0 %v9541_v32  ;;  %5152 = vmatprep.subr.bf16.mxu1 %v9542_v56  ;;  %v8859_v32 = vld [vmem:[#allocation9 + $0x84] ss:$16 sps:$4 sm:$0xff]   ;;  %v8861_v56 = vld [vmem:[#allocation9 + $0x8c] ss:$16 sps:$4 sm:$0xff]  }
 0x830   :  { %5112 = vmatpush1.bf16.msra.mxu0 %v9543_v27  ;;  %5153 = vmatpush1.bf16.msra.mxu1 %v9544_v34  ;;  %v8865_v27 = vld [vmem:[#allocation9 + $0x80] ss:$16 sps:$4 sm:$0xff]   ;;  %v8867_v34 = vld [vmem:[#allocation9 + $0x88] ss:$16 sps:$4 sm:$0xff]  }
 0x831   :  { %5113 = vmatprep.subr.bf16.mxu0 %v9545_v22  ;;  %5154 = vmatprep.subr.bf16.mxu1 %v9546_v24  ;;  %v8871_v22 = vld [vmem:[#allocation9 + $0xa4] ss:$16 sps:$4 sm:$0xff]   ;;  %v8873_v24 = vld [vmem:[#allocation9 + $0xac] ss:$16 sps:$4 sm:$0xff]  }
 0x834   :  { %5114 = vmatpush1.bf16.msra.mxu0 %v9547_v20  ;;  %5155 = vmatpush1.bf16.msra.mxu1 %v9548_v18  ;;  %v8877_v20 = vld [vmem:[#allocation9 + $0xa0] ss:$16 sps:$4 sm:$0xff]   ;;  %v8879_v18 = vld [vmem:[#allocation9 + $0xa8] ss:$16 sps:$4 sm:$0xff]  }
 0x835   :  { %5115 = vmatprep.subr.bf16.mxu0 %v9549_v19  ;;  %5156 = vmatprep.subr.bf16.mxu1 %v9550_v23  ;;  %v8883_v19 = vld [vmem:[#allocation9 + $0xc4] ss:$16 sps:$4 sm:$0xff]   ;;  %v8885_v23 = vld [vmem:[#allocation9 + $0xcc] ss:$16 sps:$4 sm:$0xff]  }
 0x838   :  { %5116 = vmatpush1.bf16.msra.mxu0 %v9551_v25  ;;  %5157 = vmatpush1.bf16.msra.mxu1 %v9552_v28  ;;  %v8889_v25 = vld [vmem:[#allocation9 + $0xc0] ss:$16 sps:$4 sm:$0xff]   ;;  %v8891_v28 = vld [vmem:[#allocation9 + $0xc8] ss:$16 sps:$4 sm:$0xff]  }
 0x839   :  { %5385 = vmatprep.subr.bf16.mxu0 %v8806_v29  ;;  %5426 = vmatprep.subr.bf16.mxu1 %v8808_v40 }
 0x8ee   :  { %v4816_v41 = vpop.f32.mrb[72].mxu0  ;;  %v4857_v3 = vpop.f32.mrb[72].mxu1 }
 0x8ef   :  { %v4864_v37 = vadd.f32 %v4816_v41, %v9553_v30  ;;  %v4866_v39 = vadd.f32 %v4857_v3, %v9554_v54  ;;  %v4818_v48 = vpop.f32.mrb[73].mxu0  ;;  %v4859_v49 = vpop.f32.mrb[73].mxu1  ;;  %v8895_v41 = vld [vmem:[#allocation9 + $0xe4] ss:$16 sps:$4 sm:$0xff]   ;;  %v8897_v3 = vld [vmem:[#allocation9 + $0xec] ss:$16 sps:$4 sm:$0xff]  }
 0x8f0   :  { %v4865_v7 = vadd.f32 %v4818_v48, %v9555_v50  ;;  %v4867_v11 = vadd.f32 %v4859_v49, %v9556_v9  ;;  %v4820_v12 = vpop.f32.mrb[74].mxu0  ;;  %v4861_v13 = vpop.f32.mrb[74].mxu1  ;;  %v8901_v30 = vld [vmem:[#allocation9 + $0xe0] ss:$16 sps:$4 sm:$0xff]  }
 0x8f1   :  { %v4868_v14 = vmul.f32 0.5, %v4864_v37  ;;  %v4821_v60 = vpop.f32.mrb[75].mxu0  ;;  %v4862_v59 = vpop.f32.mrb[75].mxu1  ;;  %v8903_v37 = vld [vmem:[#allocation9 + $0xe8] ss:$16 sps:$4 sm:$0xff]   ;;  %v9558_v49 = vld [vmem:[#allocation38_spill] sm:$0xff] }
 0x8f2   :  { %v4872_v26 = vmul.f32 0.5, %v4865_v7  ;;  %v4877_v61 = vmul.f32 0.5, %v4867_v11  ;;  %v677_v54 = vld [vmem:[%s9219_s6] sm:$0xf] }
 0x8f3   :  { %7379 = vtanh.f32 %v4868_v14  ;;  %v686_v50 = vrot.slane %v677_v54, %v9558_v49  ;;  %v9559_v12 = vld [vmem:[#allocation35_spill] sm:$0xff] }
 0x8f4   :  { %7381 = vtanh.f32 %v4872_v26  ;;  %v690_v13 = vrot.slane %v677_v54, %v9559_v12 }
 0x8f5   :  { %7383 = vtanh.f32 %v4866_v39  ;;  %v9557_v39 = vld [vmem:[#allocation37_spill] sm:$0xff] }
 0x8f6   :  { %7385 = vtanh.f32 %v4877_v61  ;;  %v682_v48 = vrot.slane %v677_v54, %v9557_v39 }
 0x8fd   :  { %v7380_v15 = vpop.eup %7379 }
 0x8fe   :  { %v7382_v33 = vpop.eup %7381  ;;  %v4870_v57 = vadd.f32 1.0, %v7380_v15 }
 0x8ff   :  { %v4874_v46 = vadd.f32 1.0, %v7382_v33  ;;  %v7384_v52 = vpop.eup %7383 }
 0x900   :  { %v4871_v47 = vmul.f32 0.5, %v4870_v57  ;;  %v7386_v58 = vpop.eup %7385 }
 0x901   :  { %v4875_v38 = vmul.f32 0.5, %v4874_v46  ;;  %v4879_v8 = vadd.f32 1.0, %v7386_v58 }
 0x902   :  { %v4882_v51 = vmul.f32 %v7384_v52, %v4871_v47  ;;  %v9560_v52 = vld [vmem:[#allocation36_spill] sm:$0xff] }
 0x903   :  { %v4881_v16 = vmul.f32 %v4875_v38, %v8737_v63  ;;  %v4880_v6 = vmul.f32 0.5, %v4879_v8  ;;  %v8827_v63 = vld [vmem:[#allocation9 + $0x20] ss:$16 sps:$4 sm:$0xff]   ;;  %v694_v38 = vrot.slane %v677_v54, %v9560_v52 }
 0x905   :  { %v4883_v2 = vadd.f32 %v4882_v51, %v4881_v16 }
 0x907   :  { %7387 = vtanh.f32 %v4883_v2 }
 0x911   :  { %v7388_v0 = vpop.eup %7387 }
 0x912   :  { %v4885_v1 = vmul.f32 %v7388_v0, %v4880_v6 }
 0x914   :  { %v4886_v55 = vpack.c.bf16 %v4885_v1, %v4885_v1 }
 0x916   :  { %5134 = vmatmul.mubr.bf16.vlgmr.msra.gmra.mrb[76].mxu0 %v4886_v55  ;;  %5175 = vmatmul.mubr.bf16.vlgmr.msra.gmra.mrb[76].mxu1 %v4886_v55 }
 0x917   :  { %5386 = vmatpush1.bf16.msra.mxu0 %v8817_v62  ;;  %5427 = vmatpush1.bf16.msra.mxu1 %v8819_v10 }
 0x918   :  { %5387 = vmatprep.subr.bf16.mxu0 %v8821_v5  ;;  %5428 = vmatprep.subr.bf16.mxu1 %v8823_v53 }
 0x919   :  { %5417 = vmatprep.mubr.bf16.mxu0 %v9409_v4  ;;  %5458 = vmatprep.mubr.bf16.mxu1 %v9409_v4 }
 0x91b   :  { %5388 = vmatpush1.bf16.msra.mxu0 %v8827_v63  ;;  %5429 = vmatpush1.bf16.msra.mxu1 %v8829_v44 }
 0x91c   :  { %5389 = vmatprep.subr.bf16.mxu0 %v8833_v45  ;;  %5430 = vmatprep.subr.bf16.mxu1 %v8835_v17 }
 0x91f   :  { %5390 = vmatpush1.bf16.msra.mxu0 %v8841_v31  ;;  %5431 = vmatpush1.bf16.msra.mxu1 %v8843_v21 }
 0x920   :  { %5391 = vmatprep.subr.bf16.mxu0 %v8847_v42  ;;  %5432 = vmatprep.subr.bf16.mxu1 %v8849_v43 }
 0x923   :  { %5392 = vmatpush1.bf16.msra.mxu0 %v8853_v35  ;;  %5433 = vmatpush1.bf16.msra.mxu1 %v8855_v36 }
 0x924   :  { %5393 = vmatprep.subr.bf16.mxu0 %v8859_v32  ;;  %5434 = vmatprep.subr.bf16.mxu1 %v8861_v56 }
 0x927   :  { %5394 = vmatpush1.bf16.msra.mxu0 %v8865_v27  ;;  %5435 = vmatpush1.bf16.msra.mxu1 %v8867_v34 }
 0x928   :  { %5395 = vmatprep.subr.bf16.mxu0 %v8871_v22  ;;  %5436 = vmatprep.subr.bf16.mxu1 %v8873_v24 }
 0x92b   :  { %5396 = vmatpush1.bf16.msra.mxu0 %v8877_v20  ;;  %5437 = vmatpush1.bf16.msra.mxu1 %v8879_v18 }
 0x92c   :  { %5397 = vmatprep.subr.bf16.mxu0 %v8883_v19  ;;  %5438 = vmatprep.subr.bf16.mxu1 %v8885_v23 }
 0x92f   :  { %5398 = vmatpush1.bf16.msra.mxu0 %v8889_v25  ;;  %5439 = vmatpush1.bf16.msra.mxu1 %v8891_v28 }
 0x930   :  { %5399 = vmatprep.subr.bf16.mxu0 %v8895_v41  ;;  %5440 = vmatprep.subr.bf16.mxu1 %v8897_v3 }
 0x933   :  { %5400 = vmatpush1.bf16.msra.mxu0 %v8901_v30  ;;  %5441 = vmatpush1.bf16.msra.mxu1 %v8903_v37 }
 0x934   :  { %5494 = vmatprep.subr.bf16.mxu0 %v8806_v29  ;;  %5535 = vmatprep.subr.bf16.mxu1 %v8808_v40 }
 0x936   :  { %5418 = vmatmul.mubr.bf16.vlgmr.msra.gmra.mrb[20].mxu0 %v9409_v4  ;;  %5459 = vmatmul.mubr.bf16.vlgmr.msra.gmra.mrb[20].mxu1 %v9409_v4 }
 0x937   :  { %5495 = vmatpush1.bf16.msra.mxu0 %v8817_v62  ;;  %5536 = vmatpush1.bf16.msra.mxu1 %v8819_v10 }
 0x938   :  { %5496 = vmatprep.subr.bf16.mxu0 %v8821_v5  ;;  %5537 = vmatprep.subr.bf16.mxu1 %v8823_v53 }
 0x939   :  { %5526 = vmatprep.mubr.bf16.mxu0 %v9409_v4  ;;  %5567 = vmatprep.mubr.bf16.mxu1 %v9409_v4 }
 0x93b   :  { %5497 = vmatpush1.bf16.msra.mxu0 %v8827_v63  ;;  %5538 = vmatpush1.bf16.msra.mxu1 %v8829_v44 }
 0x93c   :  { %5498 = vmatprep.subr.bf16.mxu0 %v8833_v45  ;;  %5539 = vmatprep.subr.bf16.mxu1 %v8835_v17 }
 0x93f   :  { %5499 = vmatpush1.bf16.msra.mxu0 %v8841_v31  ;;  %5540 = vmatpush1.bf16.msra.mxu1 %v8843_v21 }
 0x940   :  { %5500 = vmatprep.subr.bf16.mxu0 %v8847_v42  ;;  %5541 = vmatprep.subr.bf16.mxu1 %v8849_v43 }
 0x943   :  { %5501 = vmatpush1.bf16.msra.mxu0 %v8853_v35  ;;  %5542 = vmatpush1.bf16.msra.mxu1 %v8855_v36 }
 0x944   :  { %5502 = vmatprep.subr.bf16.mxu0 %v8859_v32  ;;  %5543 = vmatprep.subr.bf16.mxu1 %v8861_v56 }
 0x947   :  { %5503 = vmatpush1.bf16.msra.mxu0 %v8865_v27  ;;  %5544 = vmatpush1.bf16.msra.mxu1 %v8867_v34 }
 0x948   :  { %5504 = vmatprep.subr.bf16.mxu0 %v8871_v22  ;;  %5545 = vmatprep.subr.bf16.mxu1 %v8873_v24 }
 0x94b   :  { %5505 = vmatpush1.bf16.msra.mxu0 %v8877_v20  ;;  %5546 = vmatpush1.bf16.msra.mxu1 %v8879_v18 }
 0x94c   :  { %5506 = vmatprep.subr.bf16.mxu0 %v8883_v19  ;;  %5547 = vmatprep.subr.bf16.mxu1 %v8885_v23 }
 0x94f   :  { %5507 = vmatpush1.bf16.msra.mxu0 %v8889_v25  ;;  %5548 = vmatpush1.bf16.msra.mxu1 %v8891_v28 }
 0x950   :  { %5508 = vmatprep.subr.bf16.mxu0 %v8895_v41  ;;  %5549 = vmatprep.subr.bf16.mxu1 %v8897_v3 }
 0x953   :  { %5509 = vmatpush1.bf16.msra.mxu0 %v8901_v30  ;;  %5550 = vmatpush1.bf16.msra.mxu1 %v8903_v37 }
 0x954   :  { %5603 = vmatprep.subr.bf16.mxu0 %v8806_v29  ;;  %5644 = vmatprep.subr.bf16.mxu1 %v8808_v40 }
 0xa09   :  { %v5419_v7 = vpop.f32.mrb[20].mxu0  ;;  %v5460_v9 = vpop.f32.mrb[20].mxu1 }
 0xa0a   :  { %v6861_v11 = vadd.f32 %v5419_v7, %v682_v48  ;;  %v5421_v14 = vpop.f32.mrb[21].mxu0  ;;  %v5462_v60 = vpop.f32.mrb[21].mxu1  ;;  %v6863_v47 = vadd.f32 %v5460_v9, %v690_v13 }
 0xa0b   :  { %v6862_v59 = vadd.f32 %v5421_v14, %v686_v50  ;;  %v5423_v26 = vpop.f32.mrb[22].mxu0  ;;  %v5464_v61 = vpop.f32.mrb[22].mxu1  ;;  %v6864_v51 = vadd.f32 %v5462_v60, %v694_v38 }
 0xa0c   :  { %v5471_v15 = vmul.f32 0.5, %v6861_v11  ;;  %v5424_v33 = vpop.f32.mrb[23].mxu0  ;;  %v5465_v57 = vpop.f32.mrb[23].mxu1 }
 0xa0d   :  { %v5475_v46 = vmul.f32 0.5, %v6862_v59  ;;  %v5480_v16 = vmul.f32 0.5, %v6864_v51  ;;  %v1283_v59 = vld [vmem:[%s9219_s6] sm:$0xf] }
 0xa0e   :  { %7389 = vtanh.f32 %v5471_v15  ;;  %v1288_v26 = vrot.slane %v1283_v59, %v9557_v39  ;;  %v1292_v61 = vrot.slane %v1283_v59, %v9558_v49 }
 0xa0f   :  { %7391 = vtanh.f32 %v5475_v46  ;;  %v1296_v46 = vrot.slane %v1283_v59, %v9559_v12 }
 0xa10   :  { %7393 = vtanh.f32 %v6863_v47 }
 0xa11   :  { %7395 = vtanh.f32 %v5480_v16 }
 0xa18   :  { %v7390_v2 = vpop.eup %7389 }
 0xa19   :  { %v7392_v58 = vpop.eup %7391  ;;  %v5473_v8 = vadd.f32 1.0, %v7390_v2 }
 0xa1a   :  { %v5477_v6 = vadd.f32 1.0, %v7392_v58  ;;  %v7394_v1 = vpop.eup %7393 }
 0xa1b   :  { %v5474_v0 = vmul.f32 0.5, %v5473_v8  ;;  %v7396_v9 = vpop.eup %7395 }
 0xa1c   :  { %v5478_v55 = vmul.f32 0.5, %v5477_v6  ;;  %v5482_v54 = vadd.f32 1.0, %v7396_v9 }
 0xa1d   :  { %v5485_v48 = vmul.f32 %v7394_v1, %v5474_v0 }
 0xa1e   :  { %v5484_v50 = vmul.f32 0.0, %v5478_v55  ;;  %v5483_v11 = vmul.f32 0.5, %v5482_v54  ;;  %v1300_v55 = vrot.slane %v1283_v59, %v9560_v52 }
 0xa20   :  { %v8954_v7 = vadd.f32 %v5485_v48, %v5484_v50 }
 0xa22   :  { %7397 = vtanh.f32 %v8954_v7 }
 0xa2c   :  { %v7398_v13 = vpop.eup %7397 }
 0xa2d   :  { %v5488_v14 = vmul.f32 %v7398_v13, %v5483_v11 }
 0xa2f   :  { %v5493_v60 = vpack.c.bf16 %v5488_v14, %v5488_v14 }
 0xa31   :  { %5527 = vmatmul.mubr.bf16.vlgmr.msra.gmra.mrb[28].mxu0 %v5493_v60  ;;  %5568 = vmatmul.mubr.bf16.vlgmr.msra.gmra.mrb[28].mxu1 %v5493_v60 }
 0xa32   :  { %5604 = vmatpush1.bf16.msra.mxu0 %v8817_v62  ;;  %5645 = vmatpush1.bf16.msra.mxu1 %v8819_v10 }
 0xa33   :  { %5605 = vmatprep.subr.bf16.mxu0 %v8821_v5  ;;  %5646 = vmatprep.subr.bf16.mxu1 %v8823_v53 }
 0xa34   :  { %5635 = vmatprep.mubr.bf16.mxu0 %v9409_v4  ;;  %5676 = vmatprep.mubr.bf16.mxu1 %v9409_v4 }
 0xa36   :  { %5606 = vmatpush1.bf16.msra.mxu0 %v8827_v63  ;;  %5647 = vmatpush1.bf16.msra.mxu1 %v8829_v44 }
 0xa37   :  { %5607 = vmatprep.subr.bf16.mxu0 %v8833_v45  ;;  %5648 = vmatprep.subr.bf16.mxu1 %v8835_v17 }
 0xa3a   :  { %5608 = vmatpush1.bf16.msra.mxu0 %v8841_v31  ;;  %5649 = vmatpush1.bf16.msra.mxu1 %v8843_v21 }
 0xa3b   :  { %5609 = vmatprep.subr.bf16.mxu0 %v8847_v42  ;;  %5650 = vmatprep.subr.bf16.mxu1 %v8849_v43 }
 0xa3e   :  { %5610 = vmatpush1.bf16.msra.mxu0 %v8853_v35  ;;  %5651 = vmatpush1.bf16.msra.mxu1 %v8855_v36 }
 0xa3f   :  { %5611 = vmatprep.subr.bf16.mxu0 %v8859_v32  ;;  %5652 = vmatprep.subr.bf16.mxu1 %v8861_v56 }
 0xa42   :  { %5612 = vmatpush1.bf16.msra.mxu0 %v8865_v27  ;;  %5653 = vmatpush1.bf16.msra.mxu1 %v8867_v34 }
 0xa43   :  { %5613 = vmatprep.subr.bf16.mxu0 %v8871_v22  ;;  %5654 = vmatprep.subr.bf16.mxu1 %v8873_v24 }
 0xa46   :  { %5614 = vmatpush1.bf16.msra.mxu0 %v8877_v20  ;;  %5655 = vmatpush1.bf16.msra.mxu1 %v8879_v18 }
 0xa47   :  { %5615 = vmatprep.subr.bf16.mxu0 %v8883_v19  ;;  %5656 = vmatprep.subr.bf16.mxu1 %v8885_v23 }
 0xa4a   :  { %5616 = vmatpush1.bf16.msra.mxu0 %v8889_v25  ;;  %5657 = vmatpush1.bf16.msra.mxu1 %v8891_v28 }
 0xa4b   :  { %5617 = vmatprep.subr.bf16.mxu0 %v8895_v41  ;;  %5658 = vmatprep.subr.bf16.mxu1 %v8897_v3 }
 0xa4e   :  { %5618 = vmatpush1.bf16.msra.mxu0 %v8901_v30  ;;  %5659 = vmatpush1.bf16.msra.mxu1 %v8903_v37 }
 0xa4f   :  { %5712 = vmatprep.subr.bf16.mxu0 %v8806_v29  ;;  %5753 = vmatprep.subr.bf16.mxu1 %v8808_v40 }
 0xb04   :  { %v5528_v15 = vpop.f32.mrb[28].mxu0  ;;  %v5569_v33 = vpop.f32.mrb[28].mxu1 }
 0xb05   :  { %v6865_v57 = vadd.f32 %v5528_v15, %v1288_v26  ;;  %v5530_v47 = vpop.f32.mrb[29].mxu0  ;;  %v5571_v38 = vpop.f32.mrb[29].mxu1  ;;  %v6867_v1 = vadd.f32 %v5569_v33, %v1296_v46 }
 0xb06   :  { %v6866_v51 = vadd.f32 %v5530_v47, %v1292_v61  ;;  %v5532_v16 = vpop.f32.mrb[30].mxu0  ;;  %v5573_v2 = vpop.f32.mrb[30].mxu1  ;;  %v6868_v48 = vadd.f32 %v5571_v38, %v1300_v55 }
 0xb07   :  { %v5580_v58 = vmul.f32 0.5, %v6865_v57  ;;  %v5533_v8 = vpop.f32.mrb[31].mxu0  ;;  %v5574_v6 = vpop.f32.mrb[31].mxu1 }
 0xb08   :  { %v5584_v0 = vmul.f32 0.5, %v6866_v51  ;;  %v5589_v50 = vmul.f32 0.5, %v6868_v48 }
 0xb09   :  { %7399 = vtanh.f32 %v5580_v58 }
 0xb0a   :  { %7401 = vtanh.f32 %v5584_v0 }
 0xb0b   :  { %7403 = vtanh.f32 %v6867_v1 }
 0xb0c   :  { %7405 = vtanh.f32 %v5589_v50 }
 0xb13   :  { %v7400_v9 = vpop.eup %7399 }
 0xb14   :  { %v7402_v54 = vpop.eup %7401  ;;  %v5582_v11 = vadd.f32 1.0, %v7400_v9 }
 0xb15   :  { %v5586_v13 = vadd.f32 1.0, %v7402_v54  ;;  %v7404_v60 = vpop.eup %7403 }
 0xb16   :  { %v5583_v14 = vmul.f32 0.5, %v5582_v11  ;;  %v7406_v59 = vpop.eup %7405 }
 0xb17   :  { %v5587_v26 = vmul.f32 0.5, %v5586_v13  ;;  %v5591_v33 = vadd.f32 1.0, %v7406_v59 }
 0xb18   :  { %v5594_v61 = vmul.f32 %v7404_v60, %v5583_v14 }
 0xb19   :  { %v5593_v15 = vmul.f32 %v5587_v26, %v8954_v7  ;;  %v5592_v46 = vmul.f32 0.5, %v5591_v33  ;;  %v1889_v7 = vld [vmem:[%s9219_s6] sm:$0xf] }
 0xb1a   :  { %v1894_v16 = vrot.slane %v1889_v7, %v9557_v39  ;;  %v1898_v2 = vrot.slane %v1889_v7, %v9558_v49  ;;  %v1902_v0 = vrot.slane %v1889_v7, %v9559_v12  ;;  %v1906_v26 = vrot.slane %v1889_v7, %v9560_v52 }
 0xb1b   :  { %v8999_v57 = vadd.f32 %v5594_v61, %v5593_v15 }
 0xb1d   :  { %7407 = vtanh.f32 %v8999_v57 }
 0xb27   :  { %v7408_v47 = vpop.eup %7407 }
 0xb28   :  { %v5597_v38 = vmul.f32 %v7408_v47, %v5592_v46 }
 0xb2a   :  { %v5602_v51 = vpack.c.bf16 %v5597_v38, %v5597_v38 }
 0xb2c   :  { %5636 = vmatmul.mubr.bf16.vlgmr.msra.gmra.mrb[36].mxu0 %v5602_v51  ;;  %5677 = vmatmul.mubr.bf16.vlgmr.msra.gmra.mrb[36].mxu1 %v5602_v51 }
 0xb2d   :  { %5713 = vmatpush1.bf16.msra.mxu0 %v8817_v62  ;;  %5754 = vmatpush1.bf16.msra.mxu1 %v8819_v10 }
 0xb2e   :  { %5714 = vmatprep.subr.bf16.mxu0 %v8821_v5  ;;  %5755 = vmatprep.subr.bf16.mxu1 %v8823_v53 }
 0xb2f   :  { %5744 = vmatprep.mubr.bf16.mxu0 %v9409_v4  ;;  %5785 = vmatprep.mubr.bf16.mxu1 %v9409_v4 }
 0xb31   :  { %5715 = vmatpush1.bf16.msra.mxu0 %v8827_v63  ;;  %5756 = vmatpush1.bf16.msra.mxu1 %v8829_v44 }
 0xb32   :  { %5716 = vmatprep.subr.bf16.mxu0 %v8833_v45  ;;  %5757 = vmatprep.subr.bf16.mxu1 %v8835_v17 }
 0xb35   :  { %5717 = vmatpush1.bf16.msra.mxu0 %v8841_v31  ;;  %5758 = vmatpush1.bf16.msra.mxu1 %v8843_v21 }
 0xb36   :  { %5718 = vmatprep.subr.bf16.mxu0 %v8847_v42  ;;  %5759 = vmatprep.subr.bf16.mxu1 %v8849_v43 }
 0xb39   :  { %5719 = vmatpush1.bf16.msra.mxu0 %v8853_v35  ;;  %5760 = vmatpush1.bf16.msra.mxu1 %v8855_v36 }
 0xb3a   :  { %5720 = vmatprep.subr.bf16.mxu0 %v8859_v32  ;;  %5761 = vmatprep.subr.bf16.mxu1 %v8861_v56 }
 0xb3d   :  { %5721 = vmatpush1.bf16.msra.mxu0 %v8865_v27  ;;  %5762 = vmatpush1.bf16.msra.mxu1 %v8867_v34 }
 0xb3e   :  { %5722 = vmatprep.subr.bf16.mxu0 %v8871_v22  ;;  %5763 = vmatprep.subr.bf16.mxu1 %v8873_v24 }
 0xb41   :  { %5723 = vmatpush1.bf16.msra.mxu0 %v8877_v20  ;;  %5764 = vmatpush1.bf16.msra.mxu1 %v8879_v18 }
 0xb42   :  { %5724 = vmatprep.subr.bf16.mxu0 %v8883_v19  ;;  %5765 = vmatprep.subr.bf16.mxu1 %v8885_v23 }
 0xb45   :  { %5725 = vmatpush1.bf16.msra.mxu0 %v8889_v25  ;;  %5766 = vmatpush1.bf16.msra.mxu1 %v8891_v28 }
 0xb46   :  { %5726 = vmatprep.subr.bf16.mxu0 %v8895_v41  ;;  %5767 = vmatprep.subr.bf16.mxu1 %v8897_v3 }
 0xb49   :  { %5727 = vmatpush1.bf16.msra.mxu0 %v8901_v30  ;;  %5768 = vmatpush1.bf16.msra.mxu1 %v8903_v37 }
 0xb4a   :  { %5821 = vmatprep.subr.bf16.mxu0 %v8806_v29  ;;  %5862 = vmatprep.subr.bf16.mxu1 %v8808_v40 }
 0xbff   :  { %v5637_v58 = vpop.f32.mrb[36].mxu0  ;;  %v5678_v8 = vpop.f32.mrb[36].mxu1 }
 0xc00   :  { %v6869_v6 = vadd.f32 %v5637_v58, %v1894_v16  ;;  %v5639_v1 = vpop.f32.mrb[37].mxu0  ;;  %v5680_v55 = vpop.f32.mrb[37].mxu1  ;;  %v6871_v60 = vadd.f32 %v5678_v8, %v1902_v0 }
 0xc01   :  { %v6870_v48 = vadd.f32 %v5639_v1, %v1898_v2  ;;  %v5641_v50 = vpop.f32.mrb[38].mxu0  ;;  %v5682_v9 = vpop.f32.mrb[38].mxu1  ;;  %v6872_v61 = vadd.f32 %v5680_v55, %v1906_v26 }
 0xc02   :  { %v5689_v54 = vmul.f32 0.5, %v6869_v6  ;;  %v5642_v11 = vpop.f32.mrb[39].mxu0  ;;  %v5683_v13 = vpop.f32.mrb[39].mxu1 }
 0xc03   :  { %v5693_v14 = vmul.f32 0.5, %v6870_v48  ;;  %v5698_v15 = vmul.f32 0.5, %v6872_v61 }
 0xc04   :  { %7409 = vtanh.f32 %v5689_v54 }
 0xc05   :  { %7411 = vtanh.f32 %v5693_v14 }
 0xc06   :  { %7413 = vtanh.f32 %v6871_v60 }
 0xc07   :  { %7415 = vtanh.f32 %v5698_v15 }
 0xc0e   :  { %v7410_v59 = vpop.eup %7409 }
 0xc0f   :  { %v7412_v33 = vpop.eup %7411  ;;  %v5691_v46 = vadd.f32 1.0, %v7410_v59 }
 0xc10   :  { %v5695_v47 = vadd.f32 1.0, %v7412_v33  ;;  %v7414_v51 = vpop.eup %7413 }
 0xc11   :  { %v5692_v38 = vmul.f32 0.5, %v5691_v46  ;;  %v7416_v7 = vpop.eup %7415 }
 0xc12   :  { %v5696_v16 = vmul.f32 0.5, %v5695_v47  ;;  %v5700_v8 = vadd.f32 1.0, %v7416_v7 }
 0xc13   :  { %v5703_v2 = vmul.f32 %v7414_v51, %v5692_v38 }
 0xc14   :  { %v5702_v58 = vmul.f32 %v5696_v16, %v8999_v57  ;;  %v5701_v0 = vmul.f32 0.5, %v5700_v8  ;;  %v2495_v57 = vld [vmem:[%s9219_s6] sm:$0xf] }
 0xc15   :  { %v2500_v50 = vrot.slane %v2495_v57, %v9557_v39  ;;  %v2504_v9 = vrot.slane %v2495_v57, %v9558_v49  ;;  %v2508_v14 = vrot.slane %v2495_v57, %v9559_v12  ;;  %v2512_v16 = vrot.slane %v2495_v57, %v9560_v52 }
 0xc16   :  { %v9044_v6 = vadd.f32 %v5703_v2, %v5702_v58 }
 0xc18   :  { %7417 = vtanh.f32 %v9044_v6 }
 0xc22   :  { %v7418_v1 = vpop.eup %7417 }
 0xc23   :  { %v5706_v55 = vmul.f32 %v7418_v1, %v5701_v0 }
 0xc25   :  { %v5711_v48 = vpack.c.bf16 %v5706_v55, %v5706_v55 }
 0xc27   :  { %5745 = vmatmul.mubr.bf16.vlgmr.msra.gmra.mrb[44].mxu0 %v5711_v48  ;;  %5786 = vmatmul.mubr.bf16.vlgmr.msra.gmra.mrb[44].mxu1 %v5711_v48 }
 0xc28   :  { %5822 = vmatpush1.bf16.msra.mxu0 %v8817_v62  ;;  %5863 = vmatpush1.bf16.msra.mxu1 %v8819_v10 }
 0xc29   :  { %5823 = vmatprep.subr.bf16.mxu0 %v8821_v5  ;;  %5864 = vmatprep.subr.bf16.mxu1 %v8823_v53 }
 0xc2a   :  { %5853 = vmatprep.mubr.bf16.mxu0 %v9409_v4  ;;  %5894 = vmatprep.mubr.bf16.mxu1 %v9409_v4 }
 0xc2c   :  { %5824 = vmatpush1.bf16.msra.mxu0 %v8827_v63  ;;  %5865 = vmatpush1.bf16.msra.mxu1 %v8829_v44 }
 0xc2d   :  { %5825 = vmatprep.subr.bf16.mxu0 %v8833_v45  ;;  %5866 = vmatprep.subr.bf16.mxu1 %v8835_v17 }
 0xc30   :  { %5826 = vmatpush1.bf16.msra.mxu0 %v8841_v31  ;;  %5867 = vmatpush1.bf16.msra.mxu1 %v8843_v21 }
 0xc31   :  { %5827 = vmatprep.subr.bf16.mxu0 %v8847_v42  ;;  %5868 = vmatprep.subr.bf16.mxu1 %v8849_v43 }
 0xc34   :  { %5828 = vmatpush1.bf16.msra.mxu0 %v8853_v35  ;;  %5869 = vmatpush1.bf16.msra.mxu1 %v8855_v36 }
 0xc35   :  { %5829 = vmatprep.subr.bf16.mxu0 %v8859_v32  ;;  %5870 = vmatprep.subr.bf16.mxu1 %v8861_v56 }
 0xc38   :  { %5830 = vmatpush1.bf16.msra.mxu0 %v8865_v27  ;;  %5871 = vmatpush1.bf16.msra.mxu1 %v8867_v34 }
 0xc39   :  { %5831 = vmatprep.subr.bf16.mxu0 %v8871_v22  ;;  %5872 = vmatprep.subr.bf16.mxu1 %v8873_v24 }
 0xc3c   :  { %5832 = vmatpush1.bf16.msra.mxu0 %v8877_v20  ;;  %5873 = vmatpush1.bf16.msra.mxu1 %v8879_v18 }
 0xc3d   :  { %5833 = vmatprep.subr.bf16.mxu0 %v8883_v19  ;;  %5874 = vmatprep.subr.bf16.mxu1 %v8885_v23 }
 0xc40   :  { %5834 = vmatpush1.bf16.msra.mxu0 %v8889_v25  ;;  %5875 = vmatpush1.bf16.msra.mxu1 %v8891_v28 }
 0xc41   :  { %5835 = vmatprep.subr.bf16.mxu0 %v8895_v41  ;;  %5876 = vmatprep.subr.bf16.mxu1 %v8897_v3 }
 0xc44   :  { %5836 = vmatpush1.bf16.msra.mxu0 %v8901_v30  ;;  %5877 = vmatpush1.bf16.msra.mxu1 %v8903_v37 }
 0xc45   :  { %5930 = vmatprep.subr.bf16.mxu0 %v8806_v29  ;;  %5971 = vmatprep.subr.bf16.mxu1 %v8808_v40 }
 0xcfa   :  { %v5746_v54 = vpop.f32.mrb[44].mxu0  ;;  %v5787_v11 = vpop.f32.mrb[44].mxu1 }
 0xcfb   :  { %v6873_v13 = vadd.f32 %v5746_v54, %v2500_v50  ;;  %v5748_v60 = vpop.f32.mrb[45].mxu0  ;;  %v5789_v26 = vpop.f32.mrb[45].mxu1  ;;  %v6875_v51 = vadd.f32 %v5787_v11, %v2508_v14 }
 0xcfc   :  { %v6874_v61 = vadd.f32 %v5748_v60, %v2504_v9  ;;  %v5750_v15 = vpop.f32.mrb[46].mxu0  ;;  %v5791_v59 = vpop.f32.mrb[46].mxu1  ;;  %v6876_v2 = vadd.f32 %v5789_v26, %v2512_v16 }
 0xcfd   :  { %v5798_v33 = vmul.f32 0.5, %v6873_v13  ;;  %v5751_v46 = vpop.f32.mrb[47].mxu0  ;;  %v5792_v47 = vpop.f32.mrb[47].mxu1 }
 0xcfe   :  { %v5802_v38 = vmul.f32 0.5, %v6874_v61  ;;  %v5807_v58 = vmul.f32 0.5, %v6876_v2 }
 0xcff   :  { %7419 = vtanh.f32 %v5798_v33 }
 0xd00   :  { %7421 = vtanh.f32 %v5802_v38 }
 0xd01   :  { %7423 = vtanh.f32 %v6875_v51 }
 0xd02   :  { %7425 = vtanh.f32 %v5807_v58 }
 0xd09   :  { %v7420_v7 = vpop.eup %7419 }
 0xd0a   :  { %v7422_v8 = vpop.eup %7421  ;;  %v5800_v0 = vadd.f32 1.0, %v7420_v7 }
 0xd0b   :  { %v5804_v1 = vadd.f32 1.0, %v7422_v8  ;;  %v7424_v48 = vpop.eup %7423 }
 0xd0c   :  { %v5801_v55 = vmul.f32 0.5, %v5800_v0  ;;  %v7426_v57 = vpop.eup %7425 }
 0xd0d   :  { %v5805_v50 = vmul.f32 0.5, %v5804_v1  ;;  %v5809_v11 = vadd.f32 1.0, %v7426_v57 }
 0xd0e   :  { %v5812_v9 = vmul.f32 %v7424_v48, %v5801_v55 }
 0xd0f   :  { %v5811_v54 = vmul.f32 %v5805_v50, %v9044_v6  ;;  %v5810_v14 = vmul.f32 0.5, %v5809_v11  ;;  %v3101_v6 = vld [vmem:[%s9219_s6] sm:$0xf] }
 0xd10   :  { %v3106_v15 = vrot.slane %v3101_v6, %v9557_v39  ;;  %v3110_v59 = vrot.slane %v3101_v6, %v9558_v49  ;;  %v3114_v38 = vrot.slane %v3101_v6, %v9559_v12  ;;  %v3118_v55 = vrot.slane %v3101_v6, %v9560_v52 }
 0xd11   :  { %v9089_v13 = vadd.f32 %v5812_v9, %v5811_v54 }
 0xd13   :  { %7427 = vtanh.f32 %v9089_v13 }
 0xd1d   :  { %v7428_v60 = vpop.eup %7427 }
 0xd1e   :  { %v5815_v26 = vmul.f32 %v7428_v60, %v5810_v14 }
 0xd20   :  { %v5820_v61 = vpack.c.bf16 %v5815_v26, %v5815_v26 }
 0xd22   :  { %5854 = vmatmul.mubr.bf16.vlgmr.msra.gmra.mrb[52].mxu0 %v5820_v61  ;;  %5895 = vmatmul.mubr.bf16.vlgmr.msra.gmra.mrb[52].mxu1 %v5820_v61 }
 0xd23   :  { %5931 = vmatpush1.bf16.msra.mxu0 %v8817_v62  ;;  %5972 = vmatpush1.bf16.msra.mxu1 %v8819_v10 }
 0xd24   :  { %5932 = vmatprep.subr.bf16.mxu0 %v8821_v5  ;;  %5973 = vmatprep.subr.bf16.mxu1 %v8823_v53 }
 0xd25   :  { %5962 = vmatprep.mubr.bf16.mxu0 %v9409_v4  ;;  %6003 = vmatprep.mubr.bf16.mxu1 %v9409_v4 }
 0xd27   :  { %5933 = vmatpush1.bf16.msra.mxu0 %v8827_v63  ;;  %5974 = vmatpush1.bf16.msra.mxu1 %v8829_v44 }
 0xd28   :  { %5934 = vmatprep.subr.bf16.mxu0 %v8833_v45  ;;  %5975 = vmatprep.subr.bf16.mxu1 %v8835_v17 }
 0xd2b   :  { %5935 = vmatpush1.bf16.msra.mxu0 %v8841_v31  ;;  %5976 = vmatpush1.bf16.msra.mxu1 %v8843_v21 }
 0xd2c   :  { %5936 = vmatprep.subr.bf16.mxu0 %v8847_v42  ;;  %5977 = vmatprep.subr.bf16.mxu1 %v8849_v43 }
 0xd2f   :  { %5937 = vmatpush1.bf16.msra.mxu0 %v8853_v35  ;;  %5978 = vmatpush1.bf16.msra.mxu1 %v8855_v36 }
 0xd30   :  { %5938 = vmatprep.subr.bf16.mxu0 %v8859_v32  ;;  %5979 = vmatprep.subr.bf16.mxu1 %v8861_v56 }
 0xd33   :  { %5939 = vmatpush1.bf16.msra.mxu0 %v8865_v27  ;;  %5980 = vmatpush1.bf16.msra.mxu1 %v8867_v34 }
 0xd34   :  { %5940 = vmatprep.subr.bf16.mxu0 %v8871_v22  ;;  %5981 = vmatprep.subr.bf16.mxu1 %v8873_v24 }
 0xd37   :  { %5941 = vmatpush1.bf16.msra.mxu0 %v8877_v20  ;;  %5982 = vmatpush1.bf16.msra.mxu1 %v8879_v18 }
 0xd38   :  { %5942 = vmatprep.subr.bf16.mxu0 %v8883_v19  ;;  %5983 = vmatprep.subr.bf16.mxu1 %v8885_v23 }
 0xd3b   :  { %5943 = vmatpush1.bf16.msra.mxu0 %v8889_v25  ;;  %5984 = vmatpush1.bf16.msra.mxu1 %v8891_v28 }
 0xd3c   :  { %5944 = vmatprep.subr.bf16.mxu0 %v8895_v41  ;;  %5985 = vmatprep.subr.bf16.mxu1 %v8897_v3 }
 0xd3f   :  { %5945 = vmatpush1.bf16.msra.mxu0 %v8901_v30  ;;  %5986 = vmatpush1.bf16.msra.mxu1 %v8903_v37 }
 0xd40   :  { %6039 = vmatprep.subr.bf16.mxu0 %v8806_v29  ;;  %6080 = vmatprep.subr.bf16.mxu1 %v8808_v40 }
 0xdf5   :  { %v5855_v33 = vpop.f32.mrb[52].mxu0  ;;  %v5896_v46 = vpop.f32.mrb[52].mxu1 }
 0xdf6   :  { %v6877_v47 = vadd.f32 %v5855_v33, %v3106_v15  ;;  %v5857_v51 = vpop.f32.mrb[53].mxu0  ;;  %v5898_v16 = vpop.f32.mrb[53].mxu1  ;;  %v6879_v1 = vadd.f32 %v5896_v46, %v3114_v38 }
 0xdf7   :  { %v6878_v2 = vadd.f32 %v5857_v51, %v3110_v59  ;;  %v5859_v58 = vpop.f32.mrb[54].mxu0  ;;  %v5900_v29 = vpop.f32.mrb[54].mxu1  ;;  %v6880_v48 = vadd.f32 %v5898_v16, %v3118_v55 }
 0xdf8   :  { %v5907_v7 = vmul.f32 0.5, %v6877_v47  ;;  %v5860_v40 = vpop.f32.mrb[55].mxu0  ;;  %v5901_v8 = vpop.f32.mrb[55].mxu1 }
 0xdf9   :  { %v5911_v0 = vmul.f32 0.5, %v6878_v2  ;;  %v5916_v50 = vmul.f32 0.5, %v6880_v48 }
 0xdfa   :  { %7429 = vtanh.f32 %v5907_v7 }
 0xdfb   :  { %7431 = vtanh.f32 %v5911_v0 }
 0xdfc   :  { %7433 = vtanh.f32 %v6879_v1 }
 0xdfd   :  { %7435 = vtanh.f32 %v5916_v50 }
 0xe04   :  { %v7430_v9 = vpop.eup %7429 }
 0xe05   :  { %v7432_v54 = vpop.eup %7431  ;;  %v5909_v57 = vadd.f32 1.0, %v7430_v9 }
 0xe06   :  { %v5913_v11 = vadd.f32 1.0, %v7432_v54  ;;  %v7434_v60 = vpop.eup %7433 }
 0xe07   :  { %v5910_v14 = vmul.f32 0.5, %v5909_v57  ;;  %v7436_v6 = vpop.eup %7435 }
 0xe08   :  { %v5914_v26 = vmul.f32 0.5, %v5913_v11  ;;  %v5918_v33 = vadd.f32 1.0, %v7436_v6  ;;  %v7480_v6 = vld [vmem:[#allocation9 + $0x28] ss:$16 sps:$4 sm:$0xff]  }
 0xe09   :  { %v5921_v61 = vmul.f32 %v7434_v60, %v5910_v14  ;;  %v7475_v60 = vld [vmem:[#allocation9] ss:$16 sps:$4 sm:$0xff]  }
 0xe0a   :  { %v5920_v15 = vmul.f32 %v5914_v26, %v9089_v13  ;;  %v5919_v46 = vmul.f32 0.5, %v5918_v33  ;;  %v7476_v26 = vld [vmem:[#allocation9 + $0x8] ss:$16 sps:$4 sm:$0xff]   ;;  %v7481_v33 = vld [vmem:[#allocation9 + $0x44] ss:$16 sps:$4 sm:$0xff]  }
 0xe0c   :  { %v9134_v59 = vadd.f32 %v5921_v61, %v5920_v15  ;;  %v7477_v61 = vld [vmem:[#allocation9 + $0x24] ss:$16 sps:$4 sm:$0xff]   ;;  %v7478_v15 = vld [vmem:[#allocation9 + $0x2c] ss:$16 sps:$4 sm:$0xff]  }
 0xe0e   :  { %7437 = vtanh.f32 %v9134_v59 }
 0xe18   :  { %v7438_v47 = vpop.eup %7437 }
 0xe19   :  { %v5924_v38 = vmul.f32 %v7438_v47, %v5919_v46  ;;  %v7482_v46 = vld [vmem:[#allocation9 + $0x4c] ss:$16 sps:$4 sm:$0xff]   ;;  %v7483_v47 = vld [vmem:[#allocation9 + $0x40] ss:$16 sps:$4 sm:$0xff]  }
 0xe1b   :  { %v5929_v51 = vpack.c.bf16 %v5924_v38, %v5924_v38  ;;  %v7484_v38 = vld [vmem:[#allocation9 + $0x48] ss:$16 sps:$4 sm:$0xff]  }
 0xe1d   :  { %5963 = vmatmul.mubr.bf16.vlgmr.msra.gmra.mrb[60].mxu0 %v5929_v51  ;;  %6004 = vmatmul.mubr.bf16.vlgmr.msra.gmra.mrb[60].mxu1 %v5929_v51  ;;  %v7485_v51 = vld [vmem:[#allocation9 + $0x64] ss:$16 sps:$4 sm:$0xff]  }
 0xe1e   :  { %6040 = vmatpush1.bf16.msra.mxu0 %v8817_v62  ;;  %6081 = vmatpush1.bf16.msra.mxu1 %v8819_v10  ;;  %v7473_v62 = vld [vmem:[#allocation9 + $0x4] ss:$16 sps:$4 sm:$0xff]   ;;  %v7474_v10 = vld [vmem:[#allocation9 + $0xc] ss:$16 sps:$4 sm:$0xff]  }
 0xe1f   :  { %6041 = vmatprep.subr.bf16.mxu0 %v8821_v5  ;;  %6082 = vmatprep.subr.bf16.mxu1 %v8823_v53  ;;  %v3707_v5 = vld [vmem:[%s9219_s6] sm:$0xf] }
 0xe20   :  { %6071 = vmatprep.mubr.bf16.mxu0 %v9409_v4  ;;  %6112 = vmatprep.mubr.bf16.mxu1 %v9409_v4  ;;  %v3712_v53 = vrot.slane %v3707_v5, %v9557_v39 }
 0xe22   :  { %6042 = vmatpush1.bf16.msra.mxu0 %v8827_v63  ;;  %6083 = vmatpush1.bf16.msra.mxu1 %v8829_v44  ;;  %v3716_v63 = vrot.slane %v3707_v5, %v9558_v49 }
 0xe23   :  { %6043 = vmatprep.subr.bf16.mxu0 %v8833_v45  ;;  %6084 = vmatprep.subr.bf16.mxu1 %v8835_v17 }
 0xe26   :  { %6044 = vmatpush1.bf16.msra.mxu0 %v8841_v31  ;;  %6085 = vmatpush1.bf16.msra.mxu1 %v8843_v21  ;;  %v3720_v31 = vrot.slane %v3707_v5, %v9559_v12 }
 0xe27   :  { %6045 = vmatprep.subr.bf16.mxu0 %v8847_v42  ;;  %6086 = vmatprep.subr.bf16.mxu1 %v8849_v43 }
 0xe2a   :  { %6046 = vmatpush1.bf16.msra.mxu0 %v8853_v35  ;;  %6087 = vmatpush1.bf16.msra.mxu1 %v8855_v36 }
 0xe2b   :  { %6047 = vmatprep.subr.bf16.mxu0 %v8859_v32  ;;  %6088 = vmatprep.subr.bf16.mxu1 %v8861_v56 }
 0xe2e   :  { %6048 = vmatpush1.bf16.msra.mxu0 %v8865_v27  ;;  %6089 = vmatpush1.bf16.msra.mxu1 %v8867_v34 }
 0xe2f   :  { %6049 = vmatprep.subr.bf16.mxu0 %v8871_v22  ;;  %6090 = vmatprep.subr.bf16.mxu1 %v8873_v24  ;;  %v3724_v24 = vrot.slane %v3707_v5, %v9560_v52  ;;  %v7488_v5 = vld [vmem:[#allocation9 + $0x68] ss:$16 sps:$4 sm:$0xff]  }
 0xe32   :  { %6050 = vmatpush1.bf16.msra.mxu0 %v8877_v20  ;;  %6091 = vmatpush1.bf16.msra.mxu1 %v8879_v18 }
 0xe33   :  { %6051 = vmatprep.subr.bf16.mxu0 %v8883_v19  ;;  %6092 = vmatprep.subr.bf16.mxu1 %v8885_v23 }
 0xe36   :  { %6052 = vmatpush1.bf16.msra.mxu0 %v8889_v25  ;;  %6093 = vmatpush1.bf16.msra.mxu1 %v8891_v28 }
 0xe37   :  { %6053 = vmatprep.subr.bf16.mxu0 %v8895_v41  ;;  %6094 = vmatprep.subr.bf16.mxu1 %v8897_v3 }
 0xe3a   :  { %6054 = vmatpush1.bf16.msra.mxu0 %v8901_v30  ;;  %6095 = vmatpush1.bf16.msra.mxu1 %v8903_v37 }
 0xe3b   :  { %6148 = vmatprep.subr.bf16.mxu0 %v7473_v62  ;;  %6189 = vmatprep.subr.bf16.mxu1 %v7474_v10  ;;  %v7486_v62 = vld [vmem:[#allocation9 + $0x6c] ss:$16 sps:$4 sm:$0xff]   ;;  %v7487_v10 = vld [vmem:[#allocation9 + $0x60] ss:$16 sps:$4 sm:$0xff]  }
 0xef0   :  { %v5964_v44 = vpop.f32.mrb[60].mxu0  ;;  %v6005_v45 = vpop.f32.mrb[60].mxu1 }
 0xef1   :  { %v6881_v17 = vadd.f32 %v5964_v44, %v3712_v53  ;;  %v5966_v21 = vpop.f32.mrb[61].mxu0  ;;  %v6007_v42 = vpop.f32.mrb[61].mxu1  ;;  %v6883_v22 = vadd.f32 %v6005_v45, %v3720_v31  ;;  %v7490_v53 = vld [vmem:[#allocation9 + $0x8c] ss:$16 sps:$4 sm:$0xff]   ;;  %v7492_v44 = vld [vmem:[#allocation9 + $0x88] ss:$16 sps:$4 sm:$0xff]  }
 0xef2   :  { %v6882_v43 = vadd.f32 %v5966_v21, %v3716_v63  ;;  %v5968_v35 = vpop.f32.mrb[62].mxu0  ;;  %v6009_v36 = vpop.f32.mrb[62].mxu1  ;;  %v6884_v13 = vadd.f32 %v6007_v42, %v3724_v24  ;;  %v7491_v63 = vld [vmem:[#allocation9 + $0x80] ss:$16 sps:$4 sm:$0xff]   ;;  %v7493_v45 = vld [vmem:[#allocation9 + $0xa4] ss:$16 sps:$4 sm:$0xff]  }
 0xef3   :  { %v6016_v32 = vmul.f32 0.5, %v6881_v17  ;;  %v5969_v56 = vpop.f32.mrb[63].mxu0  ;;  %v6010_v27 = vpop.f32.mrb[63].mxu1  ;;  %v7494_v17 = vld [vmem:[#allocation9 + $0xac] ss:$16 sps:$4 sm:$0xff]  }
 0xef4   :  { %v6020_v34 = vmul.f32 0.5, %v6882_v43  ;;  %v6025_v16 = vmul.f32 0.5, %v6884_v13 }
 0xef5   :  { %7439 = vtanh.f32 %v6016_v32 }
 0xef6   :  { %7441 = vtanh.f32 %v6020_v34 }
 0xef7   :  { %7443 = vtanh.f32 %v6883_v22 }
 0xef8   :  { %7445 = vtanh.f32 %v6025_v16 }
 0xeff   :  { %v7440_v2 = vpop.eup %7439 }
 0xf00   :  { %v7442_v58 = vpop.eup %7441  ;;  %v6018_v29 = vadd.f32 1.0, %v7440_v2 }
 0xf01   :  { %v6022_v7 = vadd.f32 1.0, %v7442_v58  ;;  %v7444_v8 = vpop.eup %7443 }
 0xf02   :  { %v6019_v40 = vmul.f32 0.5, %v6018_v29  ;;  %v7446_v50 = vpop.eup %7445 }
 0xf03   :  { %v6023_v0 = vmul.f32 0.5, %v6022_v7  ;;  %v6027_v9 = vadd.f32 1.0, %v7446_v50 }
 0xf04   :  { %v6030_v1 = vmul.f32 %v7444_v8, %v6019_v40 }
 0xf05   :  { %v6029_v55 = vmul.f32 %v6023_v0, %v9134_v59  ;;  %v6028_v54 = vmul.f32 0.5, %v6027_v9  ;;  %v7479_v59 = vld [vmem:[#allocation9 + $0x20] ss:$16 sps:$4 sm:$0xff]  }
 0xf07   :  { %v9177_v48 = vadd.f32 %v6030_v1, %v6029_v55 }
 0xf09   :  { %7447 = vtanh.f32 %v9177_v48 }
 0xf13   :  { %v7448_v57 = vpop.eup %7447 }
 0xf14   :  { %v6033_v11 = vmul.f32 %v7448_v57, %v6028_v54  ;;  %v4919_v57 = vld [vmem:[%s9219_s6] sm:$0xf] }
 0xf16   :  { %v6038_v14 = vpack.c.bf16 %v6033_v11, %v6033_v11  ;;  %v4924_v11 = vrot.slane %v4919_v57, %v9557_v39 }
 0xf18   :  { %6072 = vmatmul.mubr.bf16.vlgmr.msra.gmra.mrb[68].mxu0 %v6038_v14  ;;  %6113 = vmatmul.mubr.bf16.vlgmr.msra.gmra.mrb[68].mxu1 %v6038_v14  ;;  %v4928_v14 = vrot.slane %v4919_v57, %v9558_v49 }
 0xf19   :  { %6149 = vmatpush1.bf16.msra.mxu0 %v7475_v60  ;;  %6190 = vmatpush1.bf16.msra.mxu1 %v7476_v26 }
 0xf1a   :  { %6150 = vmatprep.subr.bf16.mxu0 %v7477_v61  ;;  %6191 = vmatprep.subr.bf16.mxu1 %v7478_v15  ;;  %v4932_v61 = vrot.slane %v4919_v57, %v9559_v12 }
 0xf1b   :  { %6180 = vmatprep.mubr.bf16.mxu0 %v9409_v4  ;;  %6221 = vmatprep.mubr.bf16.mxu1 %v9409_v4  ;;  %v7489_v4 = vld [vmem:[#allocation9 + $0x84] ss:$16 sps:$4 sm:$0xff]  }
 0xf1d   :  { %6151 = vmatpush1.bf16.msra.mxu0 %v7479_v59  ;;  %6192 = vmatpush1.bf16.msra.mxu1 %v7480_v6 }
 0xf1e   :  { %6152 = vmatprep.subr.bf16.mxu0 %v7481_v33  ;;  %6193 = vmatprep.subr.bf16.mxu1 %v7482_v46 }
 0xf21   :  { %6153 = vmatpush1.bf16.msra.mxu0 %v7483_v47  ;;  %6194 = vmatpush1.bf16.msra.mxu1 %v7484_v38 }
 0xf22   :  { %6154 = vmatprep.subr.bf16.mxu0 %v7485_v51  ;;  %6195 = vmatprep.subr.bf16.mxu1 %v7486_v62 }
 0xf25   :  { %6155 = vmatpush1.bf16.msra.mxu0 %v7487_v10  ;;  %6196 = vmatpush1.bf16.msra.mxu1 %v7488_v5 }
 0xf26   :  { %6156 = vmatprep.subr.bf16.mxu0 %v7489_v4  ;;  %6197 = vmatprep.subr.bf16.mxu1 %v7490_v53 }
 0xf29   :  { %6157 = vmatpush1.bf16.msra.mxu0 %v7491_v63  ;;  %6198 = vmatpush1.bf16.msra.mxu1 %v7492_v44 }
 0xf2a   :  { %6158 = vmatprep.subr.bf16.mxu0 %v7493_v45  ;;  %6199 = vmatprep.subr.bf16.mxu1 %v7494_v17 }
 0xf2d   :  { %6159 = vmatpush1.bf16.msra.mxu0 %v8877_v20  ;;  %6200 = vmatpush1.bf16.msra.mxu1 %v8879_v18  ;;  %v4313_v20 = vld [vmem:[%s9219_s6] sm:$0xf] }
 0xf2e   :  { %6160 = vmatprep.subr.bf16.mxu0 %v8883_v19  ;;  %6201 = vmatprep.subr.bf16.mxu1 %v8885_v23  ;;  %v4318_v18 = vrot.slane %v4313_v20, %v9557_v39  ;;  %v4322_v19 = vrot.slane %v4313_v20, %v9558_v49  ;;  %v4330_v56 = vrot.slane %v4313_v20, %v9560_v52 }
 0xf2f   :  { %v4936_v39 = vrot.slane %v4919_v57, %v9560_v52 }
 0xf31   :  { %6161 = vmatpush1.bf16.msra.mxu0 %v8889_v25  ;;  %6202 = vmatpush1.bf16.msra.mxu1 %v8891_v28  ;;  %v4326_v28 = vrot.slane %v4313_v20, %v9559_v12 }
 0xf32   :  { %6162 = vmatprep.subr.bf16.mxu0 %v8895_v41  ;;  %6203 = vmatprep.subr.bf16.mxu1 %v8897_v3 }
 0xf35   :  { %6163 = vmatpush1.bf16.msra.mxu0 %v8901_v30  ;;  %6204 = vmatpush1.bf16.msra.mxu1 %v8903_v37 }
 0xfeb   :  { %v6073_v23 = vpop.f32.mrb[68].mxu0  ;;  %v6114_v25 = vpop.f32.mrb[68].mxu1 }
 0xfec   :  { %v6885_v31 = vadd.f32 %v6073_v23, %v4318_v18  ;;  %v6075_v41 = vpop.f32.mrb[69].mxu0  ;;  %v6116_v21 = vpop.f32.mrb[69].mxu1  ;;  %v6887_v32 = vadd.f32 %v6114_v25, %v4326_v28  ;;  %v6858_v28 = vld [vmem:[%s9220_s7] ss:$0 sm:$0xff] }
 0xfed   :  { %v6886_v3 = vadd.f32 %v6075_v41, %v4322_v19  ;;  %v6077_v42 = vpop.f32.mrb[70].mxu0  ;;  %v6118_v30 = vpop.f32.mrb[70].mxu1  ;;  %v6888_v27 = vadd.f32 %v6116_v21, %v4330_v56 }
 0xfee   :  { %v6125_v43 = vmul.f32 0.5, %v6885_v31  ;;  %v6078_v37 = vpop.f32.mrb[71].mxu0  ;;  %v6119_v35 = vpop.f32.mrb[71].mxu1 }
 0xfef   :  { %v6129_v36 = vmul.f32 0.5, %v6886_v3  ;;  %v6134_v34 = vmul.f32 0.5, %v6888_v27  ;;  %v6859_v3 = vld [vmem:[#allocation4] ss:$0 sm:$0xff] }
 0xff0   :  { %7449 = vtanh.f32 %v6125_v43 }
 0xff1   :  { %7451 = vtanh.f32 %v6129_v36 }
 0xff2   :  { %7453 = vtanh.f32 %v6887_v32 }
 0xff3   :  { %7455 = vtanh.f32 %v6134_v34 }
 0xffa   :  { %v7450_v22 = vpop.eup %7449 }
 0xffb   :  { %v7452_v24 = vpop.eup %7451  ;;  %v6127_v13 = vadd.f32 1.0, %v7450_v22 }
 0xffc   :  { %v6131_v16 = vadd.f32 1.0, %v7452_v24  ;;  %v7454_v58 = vpop.eup %7453 }
 0xffd   :  { %v6128_v2 = vmul.f32 0.5, %v6127_v13  ;;  %v7456_v0 = vpop.eup %7455 }
 0xffe   :  { %v6132_v29 = vmul.f32 0.5, %v6131_v16  ;;  %v6136_v1 = vadd.f32 1.0, %v7456_v0 }
 0xfff   :  { %v6139_v7 = vmul.f32 %v7454_v58, %v6128_v2 }
0x1000   :  { %v6138_v40 = vmul.f32 %v6132_v29, %v9177_v48  ;;  %v6137_v55 = vmul.f32 0.5, %v6136_v1 }
0x1002   :  { %v6140_v8 = vadd.f32 %v6139_v7, %v6138_v40 }
0x1004   :  { %7457 = vtanh.f32 %v6140_v8 }
0x100e   :  { %v7458_v50 = vpop.eup %7457 }
0x100f   :  { %v6142_v9 = vmul.f32 %v7458_v50, %v6137_v55 }
0x1011   :  { %v6147_v54 = vpack.c.bf16 %v6142_v9, %v6142_v9 }
0x1013   :  { %6181 = vmatmul.mubr.bf16.vlgmr.msra.gmra.mrb[76].mxu0 %v6147_v54  ;;  %6222 = vmatmul.mubr.bf16.vlgmr.msra.gmra.mrb[76].mxu1 %v6147_v54 }
0x10e6   :  { %v6182_v60 = vpop.f32.mrb[76].mxu0  ;;  %v6223_v48 = vpop.f32.mrb[76].mxu1 }
0x10e7   :  { %v6889_v26 = vadd.f32 %v6182_v60, %v4924_v11  ;;  %v6184_v15 = vpop.f32.mrb[77].mxu0  ;;  %v6225_v59 = vpop.f32.mrb[77].mxu1  ;;  %v6891_v10 = vadd.f32 %v6223_v48, %v4932_v61 }
0x10e8   :  { %v6890_v6 = vadd.f32 %v6184_v15, %v4928_v14  ;;  %v6186_v33 = vpop.f32.mrb[78].mxu0  ;;  %v6227_v46 = vpop.f32.mrb[78].mxu1  ;;  %v6892_v49 = vadd.f32 %v6225_v59, %v4936_v39 }
0x10e9   :  { %v6234_v47 = vmul.f32 0.5, %v6889_v26  ;;  %v6187_v38 = vpop.f32.mrb[79].mxu0  ;;  %v6228_v51 = vpop.f32.mrb[79].mxu1 }
0x10ea   :  { %v6238_v62 = vmul.f32 0.5, %v6890_v6  ;;  %v6243_v5 = vmul.f32 0.5, %v6892_v49 }
0x10eb   :  { %7459 = vtanh.f32 %v6234_v47 }
0x10ec   :  { %7461 = vtanh.f32 %v6238_v62 }
0x10ed   :  { %7463 = vtanh.f32 %v6891_v10 }
0x10ee   :  { %7465 = vtanh.f32 %v6243_v5 }
0x10f5   :  { %v7460_v4 = vpop.eup %7459 }
0x10f6   :  { %v7462_v53 = vpop.eup %7461  ;;  %v6236_v12 = vadd.f32 1.0, %v7460_v4 }
0x10f7   :  { %v6240_v63 = vadd.f32 1.0, %v7462_v53  ;;  %v7464_v45 = vpop.eup %7463 }
0x10f8   :  { %v6237_v44 = vmul.f32 0.5, %v6236_v12  ;;  %v7466_v23 = vpop.eup %7465 }
0x10f9   :  { %v6241_v17 = vmul.f32 0.5, %v6240_v63  ;;  %v6245_v25 = vadd.f32 1.0, %v7466_v23 }
0x10fa   :  { %v6248_v20 = vmul.f32 %v7464_v45, %v6237_v44 }
0x10fb   :  { %v6247_v18 = vmul.f32 %v6241_v17, %v6140_v8  ;;  %v6246_v31 = vmul.f32 0.5, %v6245_v25 }
0x10fd   :  { %v6249_v19 = vadd.f32 %v6248_v20, %v6247_v18 }
0x10ff   :  { %7467 = vtanh.f32 %v6249_v19 }
0x1109   :  { %v7468_v52 = vpop.eup %7467 }
0x110a   :  { %v6251_v41 = vmul.f32 %v7468_v52, %v6246_v31 }
0x110c   :  { %v6259_v21 = vmul.f32 %v6858_v28, %v6251_v41 }
0x110e   :  { %6260 = vadd.xlane.f32.xlu0 %v6259_v21 }
0x119b   :  { %v6261_v42 = vpop.xlane.xlu0 %6260 }
0x119c   :  { %v6269_v30 = vadd.f32 %v6859_v3, %v6261_v42 }
0x119e   :  { %v6860_v43 = vmul.f32 -1.442695, %v6269_v30 }
0x11a0   :  { %7469 = vpow2.f32 %v6860_v43 }
0x11aa   :  { %v7470_v37 = vpop.eup %7469 }
0x11ab   :  { %v6273_v35 = vadd.f32 1.0, %v7470_v37 }
0x11ad   :  { %7471 = vrcp.f32 %v6273_v35 }
0x11b7   :  { %v7472_v36 = vpop.eup %7471 }
0x11b8   :  { %6277 = vst.msk [vmem:[%s9222_s9] sm:$0xff] %vm6276_vm1, %v7472_v36 }
0x11b9   :  { %6282 = vsyncpa [#allocation6], 1 }
0x11ba   :  { %6283 = vsyncpa [#allocation8], 1 }

</bundles_post_ra>
